<compile_context>
chip_gen: v7x
topology: tpu7x:2x2x1
jax: 0.10.0
libtpu: 0.0.40
codegen_flags: <defaults>
</compile_context>

<pallas_src>
import math

import jax
import jax.numpy as jnp
from jax.experimental import pallas as pl
from jax.experimental.pallas import tpu as pltpu

D_MODEL = 32
N_HEAD = 4
D_HEAD = D_MODEL // N_HEAD
D_FF = 64
N_LAYER = 2
LN_EPS = 1e-5
NEG_INF = -1e9

# ---------------------------------------------------------------------------
# Packed parameter slab layout (per layer)
# ---------------------------------------------------------------------------
LANES = 128

# bf16 matrix-weight slab: every matrix starts at lane 0; row offsets are multiples of 16
# (bf16 sublane tile) so every static slice below is tile-aligned.
R_SQKV = 0                     # (D, 3D)  fused self  [Wq/sqrt(Dh) | Wk | Wv]
R_CQKV = R_SQKV + D_MODEL      # (D, 3D)  fused cross [Wq/sqrt(Dh) | Wk | Wv]
R_SO = R_CQKV + D_MODEL        # (D, D)   self  output projection
R_CO = R_SO + D_MODEL          # (D, D)   cross output projection
R_FF1 = R_CO + D_MODEL         # (D, D_FF)
R_FF2 = R_FF1 + D_MODEL        # (D_FF, D)
RW = R_FF2 + D_FF              # = 224 rows per layer

# f32 bias / LayerNorm slab: one logical vector per row.
P_BSQKV, P_BCQKV, P_BSO, P_BCO, P_BFF1, P_BFF2 = 0, 1, 2, 3, 4, 5
P_LNG = 6   # rows 6,7,8  : gamma (self-attn, cross-attn, ff)
P_LNB = 9   # rows 9,10,11: beta
RP = 16


# ---------------------------------------------------------------------------
# In-kernel helpers
# ---------------------------------------------------------------------------
def _layer_norm(x, g, b):
    # x: (N, D) f32, g/b: (1, D) f32
    mu = jnp.mean(x, axis=-1, keepdims=True)
    var = jnp.mean((x - mu) ** 2, axis=-1, keepdims=True)
    return (x - mu) * jax.lax.rsqrt(var + LN_EPS) * g + b


def _attention(q, k, v, bias, w_o_bf, b_o):
    """Attention core on already-projected q/k/v.

    q: (Nq, D) f32, k/v: (Nk, D) f32 with head-contiguous columns (head h = cols [h*Dh,(h+1)*Dh)).
    bias: (Nq, Nk) additive mask bias (0 keep / -1e9 blocked; block-diagonal over batch).
    w_o_bf: (D, D) bf16 output projection, b_o: (1, D) f32.
    """
    ctx_heads = []
    for h in range(N_HEAD):                      # H = 4, statically unrolled; 2-D ops only
        sl = slice(h * D_HEAD, (h + 1) * D_HEAD)
        qh, kh, vh = q[:, sl], k[:, sl], v[:, sl]
        s = jax.lax.dot_general(qh, kh, (((1,), (1,)), ((), ())),
                                preferred_element_type=jnp.float32) + bias
        s = s - jnp.max(s, axis=-1, keepdims=True)
        prob = jnp.exp(s)
        prob = prob * pl.reciprocal(jnp.sum(prob, axis=-1, keepdims=True), approx=True)
        ctx_heads.append(jnp.dot(prob, vh, preferred_element_type=jnp.float32))
    ctx = jnp.concatenate(ctx_heads, axis=-1)    # (Nq, D), head-contiguous columns
    return jnp.dot(ctx.astype(jnp.bfloat16), w_o_bf,
                   preferred_element_type=jnp.float32) + b_o


def decoder_stack_kernel(tgt_ref, enc_ref, tbias_ref, sbias_ref, w_ref, p_ref, out_ref):
    n_layer = w_ref.shape[0]

    x = tgt_ref[...]                              # (B*T, D) f32 residual stream
    enc_bf = enc_ref[...].astype(jnp.bfloat16)    # (B*S, D) bf16, reused by every layer
    tbias = tbias_ref[...]                        # (B*T, B*T)
    sbias = sbias_ref[...]                        # (B*T, B*S)

    for l in range(n_layer):                      # static unroll over the small layer stack
        # ---- static, lane-aligned slices of the packed parameter slabs ----
        w_sqkv = w_ref[l, R_SQKV:R_SQKV + D_MODEL, 0:3 * D_MODEL]     # bf16 (D, 3D)
        w_cqkv = w_ref[l, R_CQKV:R_CQKV + D_MODEL, 0:3 * D_MODEL]
        w_so = w_ref[l, R_SO:R_SO + D_MODEL, 0:D_MODEL]
        w_co = w_ref[l, R_CO:R_CO + D_MODEL, 0:D_MODEL]
        w_ff1 = w_ref[l, R_FF1:R_FF1 + D_MODEL, 0:D_FF]
        w_ff2 = w_ref[l, R_FF2:R_FF2 + D_FF, 0:D_MODEL]

        b_sqkv = p_ref[l, P_BSQKV:P_BSQKV + 1, 0:3 * D_MODEL]         # f32 (1, 3D)
        b_cqkv = p_ref[l, P_BCQKV:P_BCQKV + 1, 0:3 * D_MODEL]
        b_so = p_ref[l, P_BSO:P_BSO + 1, 0:D_MODEL]
        b_co = p_ref[l, P_BCO:P_BCO + 1, 0:D_MODEL]
        b_ff1 = p_ref[l, P_BFF1:P_BFF1 + 1, 0:D_FF]
        b_ff2 = p_ref[l, P_BFF2:P_BFF2 + 1, 0:D_MODEL]

        g_s = p_ref[l, P_LNG:P_LNG + 1, 0:D_MODEL]
        g_c = p_ref[l, P_LNG + 1:P_LNG + 2, 0:D_MODEL]
        g_f = p_ref[l, P_LNG + 2:P_LNG + 3, 0:D_MODEL]
        be_s = p_ref[l, P_LNB:P_LNB + 1, 0:D_MODEL]
        be_c = p_ref[l, P_LNB + 1:P_LNB + 2, 0:D_MODEL]
        be_f = p_ref[l, P_LNB + 2:P_LNB + 3, 0:D_MODEL]

        # --- masked self-attention + residual (pre-LN); one fused QKV matmul ---
        h = _layer_norm(x, g_s, be_s)
        qkv = jnp.dot(h.astype(jnp.bfloat16), w_sqkv,
                      preferred_element_type=jnp.float32) + b_sqkv    # (N, 3D)
        x = x + _attention(qkv[:, 0:D_MODEL],
                           qkv[:, D_MODEL:2 * D_MODEL],
                           qkv[:, 2 * D_MODEL:3 * D_MODEL],
                           tbias, w_so, b_so)

        # --- cross-attention over encoder output + residual (pre-LN) ---
        h = _layer_norm(x, g_c, be_c)
        q_proj = jnp.dot(h.astype(jnp.bfloat16), w_cqkv,
                         preferred_element_type=jnp.float32) + b_cqkv   # uses Q columns
        kv_proj = jnp.dot(enc_bf, w_cqkv,
                          preferred_element_type=jnp.float32) + b_cqkv  # uses K,V columns
        x = x + _attention(q_proj[:, 0:D_MODEL],
                           kv_proj[:, D_MODEL:2 * D_MODEL],
                           kv_proj[:, 2 * D_MODEL:3 * D_MODEL],
                           sbias, w_co, b_co)

        # --- position-wise feed-forward + residual (pre-LN) ---
        h = _layer_norm(x, g_f, be_f)
        f = jnp.dot(h.astype(jnp.bfloat16), w_ff1, preferred_element_type=jnp.float32) + b_ff1
        f = jnp.maximum(f, 0.0)
        f = jnp.dot(f.astype(jnp.bfloat16), w_ff2, preferred_element_type=jnp.float32) + b_ff2
        x = x + f

    out_ref[...] = x.astype(out_ref.dtype)        # single unconditional writeback


# ---------------------------------------------------------------------------
# Host-side parameter / mask preparation (plain JAX, outside the kernel)
# ---------------------------------------------------------------------------
def _block_diag_bias(mask):
    """(B, T, S) keep-mask -> (B*T, B*S) additive bias, block-diagonal over batch."""
    B, T, S = mask.shape
    eye = jnp.eye(B, dtype=jnp.float32)
    keep = mask.astype(jnp.float32)[:, :, None, :] * eye[:, None, :, None]   # (B, T, B, S)
    keep = keep.reshape(B * T, B * S)
    return jnp.where(keep != 0, 0.0, NEG_INF).astype(jnp.float32)


def _pack_layer_params(layer_params):
    """Pack per-layer params into two lane-dense slabs: bf16 weights (L,RW,128), f32 vecs (L,RP,128)."""
    inv_sqrt = 1.0 / math.sqrt(D_HEAD)
    w_layers, p_layers = [], []
    for p in layer_params:
        w = jnp.zeros((RW, LANES), jnp.float32)
        w = w.at[R_SQKV:R_SQKV + D_MODEL, 0:3 * D_MODEL].set(
            jnp.concatenate([p["self_wq"] * inv_sqrt, p["self_wk"], p["self_wv"]], axis=1))
        w = w.at[R_CQKV:R_CQKV + D_MODEL, 0:3 * D_MODEL].set(
            jnp.concatenate([p["cross_wq"] * inv_sqrt, p["cross_wk"], p["cross_wv"]], axis=1))
        w = w.at[R_SO:R_SO + D_MODEL, 0:D_MODEL].set(p["self_wo"])
        w = w.at[R_CO:R_CO + D_MODEL, 0:D_MODEL].set(p["cross_wo"])
        w = w.at[R_FF1:R_FF1 + D_MODEL, 0:D_FF].set(p["w_ff1"])
        w = w.at[R_FF2:R_FF2 + D_FF, 0:D_MODEL].set(p["w_ff2"])
        w_layers.append(w.astype(jnp.bfloat16))

        v = jnp.zeros((RP, LANES), jnp.float32)
        v = v.at[P_BSQKV, 0:3 * D_MODEL].set(
            jnp.concatenate([p["self_bq"] * inv_sqrt, p["self_bk"], p["self_bv"]]))
        v = v.at[P_BCQKV, 0:3 * D_MODEL].set(
            jnp.concatenate([p["cross_bq"] * inv_sqrt, p["cross_bk"], p["cross_bv"]]))
        v = v.at[P_BSO, 0:D_MODEL].set(p["self_bo"])
        v = v.at[P_BCO, 0:D_MODEL].set(p["cross_bo"])
        v = v.at[P_BFF1, 0:D_FF].set(p["b_ff1"])
        v = v.at[P_BFF2, 0:D_MODEL].set(p["b_ff2"])
        for j in range(3):
            v = v.at[P_LNG + j, 0:D_MODEL].set(p["ln_g"][j])
            v = v.at[P_LNB + j, 0:D_MODEL].set(p["ln_b"][j])
        p_layers.append(v)
    return jnp.stack(w_layers), jnp.stack(p_layers)


def decoder_forward(tgt, encoder_out, tgt_mask, src_tgt_mask, layer_params):
    """Mirrors Decoder.forward: sequentially applies every decoder block (single fused kernel)."""
    B, T, D = tgt.shape
    S = encoder_out.shape[1]
    NQ, NK = B * T, B * S
    w_slab, p_slab = _pack_layer_params(layer_params)

    # Fold batch into the row dimension outside the kernel (free XLA reshapes).
    tgt2 = tgt.reshape(NQ, D).astype(jnp.float32)
    enc2 = encoder_out.reshape(NK, D).astype(jnp.float32)
    # TODO(synk): for large B*T (v7x, 64 MiB VMEM) generate these block-diagonal biases in-kernel
    # from broadcasted_iota instead of materializing dense (B*T, B*S) f32 arrays.
    tbias = _block_diag_bias(tgt_mask)        # (NQ, NQ)
    sbias = _block_diag_bias(src_tgt_mask)    # (NQ, NK)

    out2 = pl.pallas_call(
        decoder_stack_kernel,
        out_shape=jax.ShapeDtypeStruct((NQ, D), jnp.float32),
        in_specs=[pl.BlockSpec(memory_space=pltpu.MemorySpace.VMEM) for _ in range(6)],
        out_specs=pl.BlockSpec(memory_space=pltpu.MemorySpace.VMEM),
    )(tgt2, enc2, tbias, sbias, w_slab, p_slab)

    return out2.reshape(B, T, D)


# ---------------------------------------------------------------------------
# Parameters + pure-JAX reference (for a built-in correctness check)
# ---------------------------------------------------------------------------
def init_decoder_params(key, n_layer=N_LAYER):
    params = []
    wscale = 0.02
    for i in range(n_layer):
        k = jax.random.fold_in(key, i)
        ks = jax.random.split(k, 20)

        def w(kk, shape):
            return wscale * jax.random.normal(kk, shape, jnp.float32)

        p = {}
        names = ["self_q", "self_k", "self_v", "self_o",
                 "cross_q", "cross_k", "cross_v", "cross_o"]
        for j, nm in enumerate(names):
            pre, kind = nm.split("_")
            p[f"{pre}_w{kind}"] = w(ks[2 * j], (D_MODEL, D_MODEL))
            p[f"{pre}_b{kind}"] = w(ks[2 * j + 1], (D_MODEL,)).reshape(D_MODEL)
        p["w_ff1"] = w(ks[16], (D_MODEL, D_FF))
        p["b_ff1"] = w(ks[17], (D_FF,))
        p["w_ff2"] = w(ks[18], (D_FF, D_MODEL))
        p["b_ff2"] = w(ks[19], (D_MODEL,))
        p["ln_g"] = jnp.ones((3, D_MODEL), jnp.float32)
        p["ln_b"] = jnp.zeros((3, D_MODEL), jnp.float32)
        params.append(p)
    return params


def _reference_decoder(tgt, encoder_out, tgt_mask, src_tgt_mask, layer_params):
    def ln(x, g, b):
        mu = x.mean(-1, keepdims=True)
        var = ((x - mu) ** 2).mean(-1, keepdims=True)
        return (x - mu) * jax.lax.rsqrt(var + LN_EPS) * g + b

    def mha(q_in, kv_in, mask, wq, bq, wk, bk, wv, bv, wo, bo):
        B, T, _ = q_in.shape
        S = kv_in.shape[1]
        q = (q_in @ wq + bq).reshape(B, T, N_HEAD, D_HEAD).transpose(0, 2, 1, 3)
        k = (kv_in @ wk + bk).reshape(B, S, N_HEAD, D_HEAD).transpose(0, 2, 1, 3)
        v = (kv_in @ wv + bv).reshape(B, S, N_HEAD, D_HEAD).transpose(0, 2, 1, 3)
        s = jnp.einsum('bhtd,bhsd->bhts', q, k) / math.sqrt(D_HEAD)
        s = jnp.where(mask[:, None] != 0, s, NEG_INF)
        p = jax.nn.softmax(s, axis=-1)
        o = jnp.einsum('bhts,bhsd->bhtd', p, v).transpose(0, 2, 1, 3).reshape(B, T, D_MODEL)
        return o @ wo + bo

    x = tgt.astype(jnp.float32)
    enc = encoder_out.astype(jnp.float32)
    for p in layer_params:
        h = ln(x, p["ln_g"][0], p["ln_b"][0])
        x = x + mha(h, h, tgt_mask, p["self_wq"], p["self_bq"], p["self_wk"], p["self_bk"],
                    p["self_wv"], p["self_bv"], p["self_wo"], p["self_bo"])
        h = ln(x, p["ln_g"][1], p["ln_b"][1])
        x = x + mha(h, enc, src_tgt_mask, p["cross_wq"], p["cross_bq"], p["cross_wk"],
                    p["cross_bk"], p["cross_wv"], p["cross_bv"], p["cross_wo"], p["cross_bo"])
        h = ln(x, p["ln_g"][2], p["ln_b"][2])
        f = jnp.maximum(h @ p["w_ff1"] + p["b_ff1"], 0.0)
        x = x + f @ p["w_ff2"] + p["b_ff2"]
    return x


if __name__ == "__main__":
    B, T, S = 2, 8, 8
    key = jax.random.PRNGKey(0)
    k_tgt, k_enc, k_par = jax.random.split(key, 3)

    tgt = jax.random.normal(k_tgt, (B, T, D_MODEL), jnp.float32)
    encoder_out = jax.random.normal(k_enc, (B, S, D_MODEL), jnp.float32)

    # causal target mask, full source-target mask (1 = attend, 0 = blocked)
    causal = jnp.tril(jnp.ones((T, T), jnp.float32))
    tgt_mask = jnp.broadcast_to(causal, (B, T, T))
    src_tgt_mask = jnp.ones((B, T, S), jnp.float32)

    layer_params = init_decoder_params(k_par, N_LAYER)

    out = decoder_forward(tgt, encoder_out, tgt_mask, src_tgt_mask, layer_params)
    out = jax.block_until_ready(out)
    assert out.shape == (B, T, D_MODEL)
    assert bool(jnp.all(jnp.isfinite(out)))

    ref = _reference_decoder(tgt, encoder_out, tgt_mask, src_tgt_mask, layer_params)
    err = float(jnp.max(jnp.abs(out - ref)))
    assert err < 1e-2, f"kernel/reference mismatch, max abs err = {err}"

    print("KERNEL_OK")
</pallas_src>

<mosaic_0001>
module attributes {stable_mosaic.version = 11 : i64} {
  func.func @decoder_stack_kernel(%arg0: memref<16x32xf32, #tpu.memory_space<vmem>>, %arg1: memref<16x32xf32, #tpu.memory_space<vmem>>, %arg2: memref<16x16xf32, #tpu.memory_space<vmem>>, %arg3: memref<16x16xf32, #tpu.memory_space<vmem>>, %arg4: memref<2x224x128xbf16, #tpu.memory_space<vmem>>, %arg5: memref<2x16x128xf32, #tpu.memory_space<vmem>>, %arg6: memref<16x32xf32, #tpu.memory_space<vmem>>) attributes {dimension_semantics = [], scalar_prefetch = 0 : i64, scratch_operands = 0 : i64, tpu.core_type = #tpu.core_type<tc>} {
    %c0 = arith.constant 0 : index
    %c0_0 = arith.constant 0 : index
    %0 = vector.load %arg0[%c0, %c0_0] : memref<16x32xf32, #tpu.memory_space<vmem>>, vector<16x32xf32>
    %c0_1 = arith.constant 0 : index
    %c0_2 = arith.constant 0 : index
    %1 = vector.load %arg1[%c0_1, %c0_2] : memref<16x32xf32, #tpu.memory_space<vmem>>, vector<16x32xf32>
    %2 = arith.truncf %1 : vector<16x32xf32> to vector<16x32xbf16>
    %c0_3 = arith.constant 0 : index
    %c0_4 = arith.constant 0 : index
    %3 = vector.load %arg2[%c0_3, %c0_4] : memref<16x16xf32, #tpu.memory_space<vmem>>, vector<16x16xf32>
    %c0_5 = arith.constant 0 : index
    %c0_6 = arith.constant 0 : index
    %4 = vector.load %arg3[%c0_5, %c0_6] : memref<16x16xf32, #tpu.memory_space<vmem>>, vector<16x16xf32>
    %c0_7 = arith.constant 0 : index
    %c0_8 = arith.constant 0 : index
    %c0_9 = arith.constant 0 : index
    %5 = vector.load %arg4[%c0_7, %c0_8, %c0_9] : memref<2x224x128xbf16, #tpu.memory_space<vmem>>, vector<1x32x96xbf16>
    %6 = vector.shape_cast %5 : vector<1x32x96xbf16> to vector<32x96xbf16>
    %c0_10 = arith.constant 0 : index
    %c32 = arith.constant 32 : index
    %c0_11 = arith.constant 0 : index
    %7 = vector.load %arg4[%c0_10, %c32, %c0_11] : memref<2x224x128xbf16, #tpu.memory_space<vmem>>, vector<1x32x96xbf16>
    %8 = vector.shape_cast %7 : vector<1x32x96xbf16> to vector<32x96xbf16>
    %c0_12 = arith.constant 0 : index
    %c64 = arith.constant 64 : index
    %c0_13 = arith.constant 0 : index
    %9 = vector.load %arg4[%c0_12, %c64, %c0_13] : memref<2x224x128xbf16, #tpu.memory_space<vmem>>, vector<1x32x32xbf16>
    %10 = vector.shape_cast %9 : vector<1x32x32xbf16> to vector<32x32xbf16>
    %c0_14 = arith.constant 0 : index
    %c96 = arith.constant 96 : index
    %c0_15 = arith.constant 0 : index
    %11 = vector.load %arg4[%c0_14, %c96, %c0_15] : memref<2x224x128xbf16, #tpu.memory_space<vmem>>, vector<1x32x32xbf16>
    %12 = vector.shape_cast %11 : vector<1x32x32xbf16> to vector<32x32xbf16>
    %c0_16 = arith.constant 0 : index
    %c128 = arith.constant 128 : index
    %c0_17 = arith.constant 0 : index
    %13 = vector.load %arg4[%c0_16, %c128, %c0_17] : memref<2x224x128xbf16, #tpu.memory_space<vmem>>, vector<1x32x64xbf16>
    %14 = vector.shape_cast %13 : vector<1x32x64xbf16> to vector<32x64xbf16>
    %c0_18 = arith.constant 0 : index
    %c160 = arith.constant 160 : index
    %c0_19 = arith.constant 0 : index
    %15 = vector.load %arg4[%c0_18, %c160, %c0_19] : memref<2x224x128xbf16, #tpu.memory_space<vmem>>, vector<1x64x32xbf16>
    %16 = vector.shape_cast %15 : vector<1x64x32xbf16> to vector<64x32xbf16>
    %c0_20 = arith.constant 0 : index
    %c0_21 = arith.constant 0 : index
    %c0_22 = arith.constant 0 : index
    %17 = vector.load %arg5[%c0_20, %c0_21, %c0_22] : memref<2x16x128xf32, #tpu.memory_space<vmem>>, vector<1x1x96xf32>
    %18 = vector.shape_cast %17 : vector<1x1x96xf32> to vector<1x96xf32>
    %c0_23 = arith.constant 0 : index
    %c1 = arith.constant 1 : index
    %c0_24 = arith.constant 0 : index
    %19 = vector.load %arg5[%c0_23, %c1, %c0_24] : memref<2x16x128xf32, #tpu.memory_space<vmem>>, vector<1x1x96xf32>
    %20 = vector.shape_cast %19 : vector<1x1x96xf32> to vector<1x96xf32>
    %c0_25 = arith.constant 0 : index
    %c2 = arith.constant 2 : index
    %c0_26 = arith.constant 0 : index
    %21 = vector.load %arg5[%c0_25, %c2, %c0_26] : memref<2x16x128xf32, #tpu.memory_space<vmem>>, vector<1x1x32xf32>
    %22 = vector.shape_cast %21 : vector<1x1x32xf32> to vector<1x32xf32>
    %c0_27 = arith.constant 0 : index
    %c3 = arith.constant 3 : index
    %c0_28 = arith.constant 0 : index
    %23 = vector.load %arg5[%c0_27, %c3, %c0_28] : memref<2x16x128xf32, #tpu.memory_space<vmem>>, vector<1x1x32xf32>
    %24 = vector.shape_cast %23 : vector<1x1x32xf32> to vector<1x32xf32>
    %c0_29 = arith.constant 0 : index
    %c4 = arith.constant 4 : index
    %c0_30 = arith.constant 0 : index
    %25 = vector.load %arg5[%c0_29, %c4, %c0_30] : memref<2x16x128xf32, #tpu.memory_space<vmem>>, vector<1x1x64xf32>
    %26 = vector.shape_cast %25 : vector<1x1x64xf32> to vector<1x64xf32>
    %c0_31 = arith.constant 0 : index
    %c5 = arith.constant 5 : index
    %c0_32 = arith.constant 0 : index
    %27 = vector.load %arg5[%c0_31, %c5, %c0_32] : memref<2x16x128xf32, #tpu.memory_space<vmem>>, vector<1x1x32xf32>
    %28 = vector.shape_cast %27 : vector<1x1x32xf32> to vector<1x32xf32>
    %c0_33 = arith.constant 0 : index
    %c6 = arith.constant 6 : index
    %c0_34 = arith.constant 0 : index
    %29 = vector.load %arg5[%c0_33, %c6, %c0_34] : memref<2x16x128xf32, #tpu.memory_space<vmem>>, vector<1x1x32xf32>
    %30 = vector.shape_cast %29 : vector<1x1x32xf32> to vector<1x32xf32>
    %c0_35 = arith.constant 0 : index
    %c7 = arith.constant 7 : index
    %c0_36 = arith.constant 0 : index
    %31 = vector.load %arg5[%c0_35, %c7, %c0_36] : memref<2x16x128xf32, #tpu.memory_space<vmem>>, vector<1x1x32xf32>
    %32 = vector.shape_cast %31 : vector<1x1x32xf32> to vector<1x32xf32>
    %c0_37 = arith.constant 0 : index
    %c8 = arith.constant 8 : index
    %c0_38 = arith.constant 0 : index
    %33 = vector.load %arg5[%c0_37, %c8, %c0_38] : memref<2x16x128xf32, #tpu.memory_space<vmem>>, vector<1x1x32xf32>
    %34 = vector.shape_cast %33 : vector<1x1x32xf32> to vector<1x32xf32>
    %c0_39 = arith.constant 0 : index
    %c9 = arith.constant 9 : index
    %c0_40 = arith.constant 0 : index
    %35 = vector.load %arg5[%c0_39, %c9, %c0_40] : memref<2x16x128xf32, #tpu.memory_space<vmem>>, vector<1x1x32xf32>
    %36 = vector.shape_cast %35 : vector<1x1x32xf32> to vector<1x32xf32>
    %c0_41 = arith.constant 0 : index
    %c10 = arith.constant 10 : index
    %c0_42 = arith.constant 0 : index
    %37 = vector.load %arg5[%c0_41, %c10, %c0_42] : memref<2x16x128xf32, #tpu.memory_space<vmem>>, vector<1x1x32xf32>
    %38 = vector.shape_cast %37 : vector<1x1x32xf32> to vector<1x32xf32>
    %c0_43 = arith.constant 0 : index
    %c11 = arith.constant 11 : index
    %c0_44 = arith.constant 0 : index
    %39 = vector.load %arg5[%c0_43, %c11, %c0_44] : memref<2x16x128xf32, #tpu.memory_space<vmem>>, vector<1x1x32xf32>
    %40 = vector.shape_cast %39 : vector<1x1x32xf32> to vector<1x32xf32>
    %cst = arith.constant dense<0.000000e+00> : vector<16xf32>
    %41 = vector.multi_reduction <add>, %0, %cst [1] : vector<16x32xf32> to vector<16xf32>
    %42 = vector.shape_cast %41 : vector<16xf32> to vector<16x1xf32>
    %cst_45 = arith.constant 3.200000e+01 : f32
    %43 = vector.broadcast %cst_45 : f32 to vector<16x1xf32>
    %44 = arith.divf %42, %43 : vector<16x1xf32>
    %45 = vector.broadcast %44 : vector<16x1xf32> to vector<16x32xf32>
    %46 = arith.subf %0, %45 : vector<16x32xf32>
    %47 = arith.mulf %46, %46 : vector<16x32xf32>
    %cst_46 = arith.constant dense<0.000000e+00> : vector<16xf32>
    %48 = vector.multi_reduction <add>, %47, %cst_46 [1] : vector<16x32xf32> to vector<16xf32>
    %49 = vector.shape_cast %48 : vector<16xf32> to vector<16x1xf32>
    %cst_47 = arith.constant 3.200000e+01 : f32
    %50 = vector.broadcast %cst_47 : f32 to vector<16x1xf32>
    %51 = arith.divf %49, %50 : vector<16x1xf32>
    %52 = vector.broadcast %44 : vector<16x1xf32> to vector<16x32xf32>
    %53 = arith.subf %0, %52 : vector<16x32xf32>
    %cst_48 = arith.constant 9.99999974E-6 : f32
    %54 = vector.broadcast %cst_48 : f32 to vector<16x1xf32>
    %55 = arith.addf %51, %54 : vector<16x1xf32>
    %56 = math.rsqrt %55 : vector<16x1xf32>
    %57 = vector.broadcast %56 : vector<16x1xf32> to vector<16x32xf32>
    %58 = arith.mulf %53, %57 : vector<16x32xf32>
    %59 = vector.broadcast %30 : vector<1x32xf32> to vector<16x32xf32>
    %60 = arith.mulf %58, %59 : vector<16x32xf32>
    %61 = vector.broadcast %36 : vector<1x32xf32> to vector<16x32xf32>
    %62 = arith.addf %60, %61 : vector<16x32xf32>
    %63 = arith.truncf %62 : vector<16x32xf32> to vector<16x32xbf16>
    %cst_49 = arith.constant dense<0.000000e+00> : vector<16x96xf32>
    %64 = tpu.matmul %63, %6, %cst_49 {dimension_numbers = #tpu.dot_dimension_numbers<[1], [0], [0], [1], [0, 0, 1, 1], [], []>} : vector<16x32xbf16>, vector<32x96xbf16>, vector<16x96xf32> -> vector<16x96xf32>
    %65 = vector.broadcast %18 : vector<1x96xf32> to vector<16x96xf32>
    %66 = arith.addf %64, %65 : vector<16x96xf32>
    %67 = vector.extract_strided_slice %66 {offsets = [0, 0], sizes = [16, 32], strides = [1, 1]} : vector<16x96xf32> to vector<16x32xf32>
    %68 = vector.extract_strided_slice %66 {offsets = [0, 32], sizes = [16, 32], strides = [1, 1]} : vector<16x96xf32> to vector<16x32xf32>
    %69 = vector.extract_strided_slice %66 {offsets = [0, 64], sizes = [16, 32], strides = [1, 1]} : vector<16x96xf32> to vector<16x32xf32>
    %70 = vector.extract_strided_slice %67 {offsets = [0, 0], sizes = [16, 8], strides = [1, 1]} : vector<16x32xf32> to vector<16x8xf32>
    %71 = vector.extract_strided_slice %68 {offsets = [0, 0], sizes = [16, 8], strides = [1, 1]} : vector<16x32xf32> to vector<16x8xf32>
    %72 = vector.extract_strided_slice %69 {offsets = [0, 0], sizes = [16, 8], strides = [1, 1]} : vector<16x32xf32> to vector<16x8xf32>
    %cst_50 = arith.constant dense<0.000000e+00> : vector<16x16xf32>
    %73 = tpu.matmul %70, %71, %cst_50 {dimension_numbers = #tpu.dot_dimension_numbers<[1], [1], [0], [0], [0, 0, 1, 0], [], []>} : vector<16x8xf32>, vector<16x8xf32>, vector<16x16xf32> -> vector<16x16xf32>
    %74 = arith.addf %73, %3 : vector<16x16xf32>
    %cst_51 = arith.constant dense<0xFF800000> : vector<16xf32>
    %75 = vector.multi_reduction <maximumf>, %74, %cst_51 [1] : vector<16x16xf32> to vector<16xf32>
    %76 = vector.shape_cast %75 : vector<16xf32> to vector<16x1xf32>
    %77 = vector.broadcast %76 : vector<16x1xf32> to vector<16x16xf32>
    %78 = arith.subf %74, %77 : vector<16x16xf32>
    %79 = math.exp %78 : vector<16x16xf32>
    %cst_52 = arith.constant dense<0.000000e+00> : vector<16xf32>
    %80 = vector.multi_reduction <add>, %79, %cst_52 [1] : vector<16x16xf32> to vector<16xf32>
    %81 = vector.shape_cast %80 : vector<16xf32> to vector<16x1xf32>
    %82 = tpu.reciprocal %81 {approx = true} : vector<16x1xf32> -> vector<16x1xf32>
    %83 = vector.broadcast %82 : vector<16x1xf32> to vector<16x16xf32>
    %84 = arith.mulf %79, %83 : vector<16x16xf32>
    %cst_53 = arith.constant dense<0.000000e+00> : vector<16x8xf32>
    %85 = tpu.matmul %84, %72, %cst_53 {dimension_numbers = #tpu.dot_dimension_numbers<[1], [0], [0], [1], [0, 0, 1, 1], [], []>} : vector<16x16xf32>, vector<16x8xf32>, vector<16x8xf32> -> vector<16x8xf32>
    %86 = vector.extract_strided_slice %67 {offsets = [0, 8], sizes = [16, 8], strides = [1, 1]} : vector<16x32xf32> to vector<16x8xf32>
    %87 = vector.extract_strided_slice %68 {offsets = [0, 8], sizes = [16, 8], strides = [1, 1]} : vector<16x32xf32> to vector<16x8xf32>
    %88 = vector.extract_strided_slice %69 {offsets = [0, 8], sizes = [16, 8], strides = [1, 1]} : vector<16x32xf32> to vector<16x8xf32>
    %cst_54 = arith.constant dense<0.000000e+00> : vector<16x16xf32>
    %89 = tpu.matmul %86, %87, %cst_54 {dimension_numbers = #tpu.dot_dimension_numbers<[1], [1], [0], [0], [0, 0, 1, 0], [], []>} : vector<16x8xf32>, vector<16x8xf32>, vector<16x16xf32> -> vector<16x16xf32>
    %90 = arith.addf %89, %3 : vector<16x16xf32>
    %cst_55 = arith.constant dense<0xFF800000> : vector<16xf32>
    %91 = vector.multi_reduction <maximumf>, %90, %cst_55 [1] : vector<16x16xf32> to vector<16xf32>
    %92 = vector.shape_cast %91 : vector<16xf32> to vector<16x1xf32>
    %93 = vector.broadcast %92 : vector<16x1xf32> to vector<16x16xf32>
    %94 = arith.subf %90, %93 : vector<16x16xf32>
    %95 = math.exp %94 : vector<16x16xf32>
    %cst_56 = arith.constant dense<0.000000e+00> : vector<16xf32>
    %96 = vector.multi_reduction <add>, %95, %cst_56 [1] : vector<16x16xf32> to vector<16xf32>
    %97 = vector.shape_cast %96 : vector<16xf32> to vector<16x1xf32>
    %98 = tpu.reciprocal %97 {approx = true} : vector<16x1xf32> -> vector<16x1xf32>
    %99 = vector.broadcast %98 : vector<16x1xf32> to vector<16x16xf32>
    %100 = arith.mulf %95, %99 : vector<16x16xf32>
    %cst_57 = arith.constant dense<0.000000e+00> : vector<16x8xf32>
    %101 = tpu.matmul %100, %88, %cst_57 {dimension_numbers = #tpu.dot_dimension_numbers<[1], [0], [0], [1], [0, 0, 1, 1], [], []>} : vector<16x16xf32>, vector<16x8xf32>, vector<16x8xf32> -> vector<16x8xf32>
    %102 = vector.extract_strided_slice %67 {offsets = [0, 16], sizes = [16, 8], strides = [1, 1]} : vector<16x32xf32> to vector<16x8xf32>
    %103 = vector.extract_strided_slice %68 {offsets = [0, 16], sizes = [16, 8], strides = [1, 1]} : vector<16x32xf32> to vector<16x8xf32>
    %104 = vector.extract_strided_slice %69 {offsets = [0, 16], sizes = [16, 8], strides = [1, 1]} : vector<16x32xf32> to vector<16x8xf32>
    %cst_58 = arith.constant dense<0.000000e+00> : vector<16x16xf32>
    %105 = tpu.matmul %102, %103, %cst_58 {dimension_numbers = #tpu.dot_dimension_numbers<[1], [1], [0], [0], [0, 0, 1, 0], [], []>} : vector<16x8xf32>, vector<16x8xf32>, vector<16x16xf32> -> vector<16x16xf32>
    %106 = arith.addf %105, %3 : vector<16x16xf32>
    %cst_59 = arith.constant dense<0xFF800000> : vector<16xf32>
    %107 = vector.multi_reduction <maximumf>, %106, %cst_59 [1] : vector<16x16xf32> to vector<16xf32>
    %108 = vector.shape_cast %107 : vector<16xf32> to vector<16x1xf32>
    %109 = vector.broadcast %108 : vector<16x1xf32> to vector<16x16xf32>
    %110 = arith.subf %106, %109 : vector<16x16xf32>
    %111 = math.exp %110 : vector<16x16xf32>
    %cst_60 = arith.constant dense<0.000000e+00> : vector<16xf32>
    %112 = vector.multi_reduction <add>, %111, %cst_60 [1] : vector<16x16xf32> to vector<16xf32>
    %113 = vector.shape_cast %112 : vector<16xf32> to vector<16x1xf32>
    %114 = tpu.reciprocal %113 {approx = true} : vector<16x1xf32> -> vector<16x1xf32>
    %115 = vector.broadcast %114 : vector<16x1xf32> to vector<16x16xf32>
    %116 = arith.mulf %111, %115 : vector<16x16xf32>
    %cst_61 = arith.constant dense<0.000000e+00> : vector<16x8xf32>
    %117 = tpu.matmul %116, %104, %cst_61 {dimension_numbers = #tpu.dot_dimension_numbers<[1], [0], [0], [1], [0, 0, 1, 1], [], []>} : vector<16x16xf32>, vector<16x8xf32>, vector<16x8xf32> -> vector<16x8xf32>
    %118 = vector.extract_strided_slice %67 {offsets = [0, 24], sizes = [16, 8], strides = [1, 1]} : vector<16x32xf32> to vector<16x8xf32>
    %119 = vector.extract_strided_slice %68 {offsets = [0, 24], sizes = [16, 8], strides = [1, 1]} : vector<16x32xf32> to vector<16x8xf32>
    %120 = vector.extract_strided_slice %69 {offsets = [0, 24], sizes = [16, 8], strides = [1, 1]} : vector<16x32xf32> to vector<16x8xf32>
    %cst_62 = arith.constant dense<0.000000e+00> : vector<16x16xf32>
    %121 = tpu.matmul %118, %119, %cst_62 {dimension_numbers = #tpu.dot_dimension_numbers<[1], [1], [0], [0], [0, 0, 1, 0], [], []>} : vector<16x8xf32>, vector<16x8xf32>, vector<16x16xf32> -> vector<16x16xf32>
    %122 = arith.addf %121, %3 : vector<16x16xf32>
    %cst_63 = arith.constant dense<0xFF800000> : vector<16xf32>
    %123 = vector.multi_reduction <maximumf>, %122, %cst_63 [1] : vector<16x16xf32> to vector<16xf32>
    %124 = vector.shape_cast %123 : vector<16xf32> to vector<16x1xf32>
    %125 = vector.broadcast %124 : vector<16x1xf32> to vector<16x16xf32>
    %126 = arith.subf %122, %125 : vector<16x16xf32>
    %127 = math.exp %126 : vector<16x16xf32>
    %cst_64 = arith.constant dense<0.000000e+00> : vector<16xf32>
    %128 = vector.multi_reduction <add>, %127, %cst_64 [1] : vector<16x16xf32> to vector<16xf32>
    %129 = vector.shape_cast %128 : vector<16xf32> to vector<16x1xf32>
    %130 = tpu.reciprocal %129 {approx = true} : vector<16x1xf32> -> vector<16x1xf32>
    %131 = vector.broadcast %130 : vector<16x1xf32> to vector<16x16xf32>
    %132 = arith.mulf %127, %131 : vector<16x16xf32>
    %cst_65 = arith.constant dense<0.000000e+00> : vector<16x8xf32>
    %133 = tpu.matmul %132, %120, %cst_65 {dimension_numbers = #tpu.dot_dimension_numbers<[1], [0], [0], [1], [0, 0, 1, 1], [], []>} : vector<16x16xf32>, vector<16x8xf32>, vector<16x8xf32> -> vector<16x8xf32>
    %134 = tpu.concatenate %85, %101, %117, %133 in 1 : vector<16x8xf32>, vector<16x8xf32>, vector<16x8xf32>, vector<16x8xf32> -> vector<16x32xf32>
    %135 = arith.truncf %134 : vector<16x32xf32> to vector<16x32xbf16>
    %cst_66 = arith.constant dense<0.000000e+00> : vector<16x32xf32>
    %136 = tpu.matmul %135, %10, %cst_66 {dimension_numbers = #tpu.dot_dimension_numbers<[1], [0], [0], [1], [0, 0, 1, 1], [], []>} : vector<16x32xbf16>, vector<32x32xbf16>, vector<16x32xf32> -> vector<16x32xf32>
    %137 = vector.broadcast %22 : vector<1x32xf32> to vector<16x32xf32>
    %138 = arith.addf %136, %137 : vector<16x32xf32>
    %139 = arith.addf %0, %138 : vector<16x32xf32>
    %cst_67 = arith.constant dense<0.000000e+00> : vector<16xf32>
    %140 = vector.multi_reduction <add>, %139, %cst_67 [1] : vector<16x32xf32> to vector<16xf32>
    %141 = vector.shape_cast %140 : vector<16xf32> to vector<16x1xf32>
    %cst_68 = arith.constant 3.200000e+01 : f32
    %142 = vector.broadcast %cst_68 : f32 to vector<16x1xf32>
    %143 = arith.divf %141, %142 : vector<16x1xf32>
    %144 = vector.broadcast %143 : vector<16x1xf32> to vector<16x32xf32>
    %145 = arith.subf %139, %144 : vector<16x32xf32>
    %146 = arith.mulf %145, %145 : vector<16x32xf32>
    %cst_69 = arith.constant dense<0.000000e+00> : vector<16xf32>
    %147 = vector.multi_reduction <add>, %146, %cst_69 [1] : vector<16x32xf32> to vector<16xf32>
    %148 = vector.shape_cast %147 : vector<16xf32> to vector<16x1xf32>
    %cst_70 = arith.constant 3.200000e+01 : f32
    %149 = vector.broadcast %cst_70 : f32 to vector<16x1xf32>
    %150 = arith.divf %148, %149 : vector<16x1xf32>
    %151 = vector.broadcast %143 : vector<16x1xf32> to vector<16x32xf32>
    %152 = arith.subf %139, %151 : vector<16x32xf32>
    %cst_71 = arith.constant 9.99999974E-6 : f32
    %153 = vector.broadcast %cst_71 : f32 to vector<16x1xf32>
    %154 = arith.addf %150, %153 : vector<16x1xf32>
    %155 = math.rsqrt %154 : vector<16x1xf32>
    %156 = vector.broadcast %155 : vector<16x1xf32> to vector<16x32xf32>
    %157 = arith.mulf %152, %156 : vector<16x32xf32>
    %158 = vector.broadcast %32 : vector<1x32xf32> to vector<16x32xf32>
    %159 = arith.mulf %157, %158 : vector<16x32xf32>
    %160 = vector.broadcast %38 : vector<1x32xf32> to vector<16x32xf32>
    %161 = arith.addf %159, %160 : vector<16x32xf32>
    %162 = arith.truncf %161 : vector<16x32xf32> to vector<16x32xbf16>
    %cst_72 = arith.constant dense<0.000000e+00> : vector<16x96xf32>
    %163 = tpu.matmul %162, %8, %cst_72 {dimension_numbers = #tpu.dot_dimension_numbers<[1], [0], [0], [1], [0, 0, 1, 1], [], []>} : vector<16x32xbf16>, vector<32x96xbf16>, vector<16x96xf32> -> vector<16x96xf32>
    %164 = vector.broadcast %20 : vector<1x96xf32> to vector<16x96xf32>
    %165 = arith.addf %163, %164 : vector<16x96xf32>
    %cst_73 = arith.constant dense<0.000000e+00> : vector<16x96xf32>
    %166 = tpu.matmul %2, %8, %cst_73 {dimension_numbers = #tpu.dot_dimension_numbers<[1], [0], [0], [1], [0, 0, 1, 1], [], []>} : vector<16x32xbf16>, vector<32x96xbf16>, vector<16x96xf32> -> vector<16x96xf32>
    %167 = vector.broadcast %20 : vector<1x96xf32> to vector<16x96xf32>
    %168 = arith.addf %166, %167 : vector<16x96xf32>
    %169 = vector.extract_strided_slice %165 {offsets = [0, 0], sizes = [16, 32], strides = [1, 1]} : vector<16x96xf32> to vector<16x32xf32>
    %170 = vector.extract_strided_slice %168 {offsets = [0, 32], sizes = [16, 32], strides = [1, 1]} : vector<16x96xf32> to vector<16x32xf32>
    %171 = vector.extract_strided_slice %168 {offsets = [0, 64], sizes = [16, 32], strides = [1, 1]} : vector<16x96xf32> to vector<16x32xf32>
    %172 = vector.extract_strided_slice %169 {offsets = [0, 0], sizes = [16, 8], strides = [1, 1]} : vector<16x32xf32> to vector<16x8xf32>
    %173 = vector.extract_strided_slice %170 {offsets = [0, 0], sizes = [16, 8], strides = [1, 1]} : vector<16x32xf32> to vector<16x8xf32>
    %174 = vector.extract_strided_slice %171 {offsets = [0, 0], sizes = [16, 8], strides = [1, 1]} : vector<16x32xf32> to vector<16x8xf32>
    %cst_74 = arith.constant dense<0.000000e+00> : vector<16x16xf32>
    %175 = tpu.matmul %172, %173, %cst_74 {dimension_numbers = #tpu.dot_dimension_numbers<[1], [1], [0], [0], [0, 0, 1, 0], [], []>} : vector<16x8xf32>, vector<16x8xf32>, vector<16x16xf32> -> vector<16x16xf32>
    %176 = arith.addf %175, %4 : vector<16x16xf32>
    %cst_75 = arith.constant dense<0xFF800000> : vector<16xf32>
    %177 = vector.multi_reduction <maximumf>, %176, %cst_75 [1] : vector<16x16xf32> to vector<16xf32>
    %178 = vector.shape_cast %177 : vector<16xf32> to vector<16x1xf32>
    %179 = vector.broadcast %178 : vector<16x1xf32> to vector<16x16xf32>
    %180 = arith.subf %176, %179 : vector<16x16xf32>
    %181 = math.exp %180 : vector<16x16xf32>
    %cst_76 = arith.constant dense<0.000000e+00> : vector<16xf32>
    %182 = vector.multi_reduction <add>, %181, %cst_76 [1] : vector<16x16xf32> to vector<16xf32>
    %183 = vector.shape_cast %182 : vector<16xf32> to vector<16x1xf32>
    %184 = tpu.reciprocal %183 {approx = true} : vector<16x1xf32> -> vector<16x1xf32>
    %185 = vector.broadcast %184 : vector<16x1xf32> to vector<16x16xf32>
    %186 = arith.mulf %181, %185 : vector<16x16xf32>
    %cst_77 = arith.constant dense<0.000000e+00> : vector<16x8xf32>
    %187 = tpu.matmul %186, %174, %cst_77 {dimension_numbers = #tpu.dot_dimension_numbers<[1], [0], [0], [1], [0, 0, 1, 1], [], []>} : vector<16x16xf32>, vector<16x8xf32>, vector<16x8xf32> -> vector<16x8xf32>
    %188 = vector.extract_strided_slice %169 {offsets = [0, 8], sizes = [16, 8], strides = [1, 1]} : vector<16x32xf32> to vector<16x8xf32>
    %189 = vector.extract_strided_slice %170 {offsets = [0, 8], sizes = [16, 8], strides = [1, 1]} : vector<16x32xf32> to vector<16x8xf32>
    %190 = vector.extract_strided_slice %171 {offsets = [0, 8], sizes = [16, 8], strides = [1, 1]} : vector<16x32xf32> to vector<16x8xf32>
    %cst_78 = arith.constant dense<0.000000e+00> : vector<16x16xf32>
    %191 = tpu.matmul %188, %189, %cst_78 {dimension_numbers = #tpu.dot_dimension_numbers<[1], [1], [0], [0], [0, 0, 1, 0], [], []>} : vector<16x8xf32>, vector<16x8xf32>, vector<16x16xf32> -> vector<16x16xf32>
    %192 = arith.addf %191, %4 : vector<16x16xf32>
    %cst_79 = arith.constant dense<0xFF800000> : vector<16xf32>
    %193 = vector.multi_reduction <maximumf>, %192, %cst_79 [1] : vector<16x16xf32> to vector<16xf32>
    %194 = vector.shape_cast %193 : vector<16xf32> to vector<16x1xf32>
    %195 = vector.broadcast %194 : vector<16x1xf32> to vector<16x16xf32>
    %196 = arith.subf %192, %195 : vector<16x16xf32>
    %197 = math.exp %196 : vector<16x16xf32>
    %cst_80 = arith.constant dense<0.000000e+00> : vector<16xf32>
    %198 = vector.multi_reduction <add>, %197, %cst_80 [1] : vector<16x16xf32> to vector<16xf32>
    %199 = vector.shape_cast %198 : vector<16xf32> to vector<16x1xf32>
    %200 = tpu.reciprocal %199 {approx = true} : vector<16x1xf32> -> vector<16x1xf32>
    %201 = vector.broadcast %200 : vector<16x1xf32> to vector<16x16xf32>
    %202 = arith.mulf %197, %201 : vector<16x16xf32>
    %cst_81 = arith.constant dense<0.000000e+00> : vector<16x8xf32>
    %203 = tpu.matmul %202, %190, %cst_81 {dimension_numbers = #tpu.dot_dimension_numbers<[1], [0], [0], [1], [0, 0, 1, 1], [], []>} : vector<16x16xf32>, vector<16x8xf32>, vector<16x8xf32> -> vector<16x8xf32>
    %204 = vector.extract_strided_slice %169 {offsets = [0, 16], sizes = [16, 8], strides = [1, 1]} : vector<16x32xf32> to vector<16x8xf32>
    %205 = vector.extract_strided_slice %170 {offsets = [0, 16], sizes = [16, 8], strides = [1, 1]} : vector<16x32xf32> to vector<16x8xf32>
    %206 = vector.extract_strided_slice %171 {offsets = [0, 16], sizes = [16, 8], strides = [1, 1]} : vector<16x32xf32> to vector<16x8xf32>
    %cst_82 = arith.constant dense<0.000000e+00> : vector<16x16xf32>
    %207 = tpu.matmul %204, %205, %cst_82 {dimension_numbers = #tpu.dot_dimension_numbers<[1], [1], [0], [0], [0, 0, 1, 0], [], []>} : vector<16x8xf32>, vector<16x8xf32>, vector<16x16xf32> -> vector<16x16xf32>
    %208 = arith.addf %207, %4 : vector<16x16xf32>
    %cst_83 = arith.constant dense<0xFF800000> : vector<16xf32>
    %209 = vector.multi_reduction <maximumf>, %208, %cst_83 [1] : vector<16x16xf32> to vector<16xf32>
    %210 = vector.shape_cast %209 : vector<16xf32> to vector<16x1xf32>
    %211 = vector.broadcast %210 : vector<16x1xf32> to vector<16x16xf32>
    %212 = arith.subf %208, %211 : vector<16x16xf32>
    %213 = math.exp %212 : vector<16x16xf32>
    %cst_84 = arith.constant dense<0.000000e+00> : vector<16xf32>
    %214 = vector.multi_reduction <add>, %213, %cst_84 [1] : vector<16x16xf32> to vector<16xf32>
    %215 = vector.shape_cast %214 : vector<16xf32> to vector<16x1xf32>
    %216 = tpu.reciprocal %215 {approx = true} : vector<16x1xf32> -> vector<16x1xf32>
    %217 = vector.broadcast %216 : vector<16x1xf32> to vector<16x16xf32>
    %218 = arith.mulf %213, %217 : vector<16x16xf32>
    %cst_85 = arith.constant dense<0.000000e+00> : vector<16x8xf32>
    %219 = tpu.matmul %218, %206, %cst_85 {dimension_numbers = #tpu.dot_dimension_numbers<[1], [0], [0], [1], [0, 0, 1, 1], [], []>} : vector<16x16xf32>, vector<16x8xf32>, vector<16x8xf32> -> vector<16x8xf32>
    %220 = vector.extract_strided_slice %169 {offsets = [0, 24], sizes = [16, 8], strides = [1, 1]} : vector<16x32xf32> to vector<16x8xf32>
    %221 = vector.extract_strided_slice %170 {offsets = [0, 24], sizes = [16, 8], strides = [1, 1]} : vector<16x32xf32> to vector<16x8xf32>
    %222 = vector.extract_strided_slice %171 {offsets = [0, 24], sizes = [16, 8], strides = [1, 1]} : vector<16x32xf32> to vector<16x8xf32>
    %cst_86 = arith.constant dense<0.000000e+00> : vector<16x16xf32>
    %223 = tpu.matmul %220, %221, %cst_86 {dimension_numbers = #tpu.dot_dimension_numbers<[1], [1], [0], [0], [0, 0, 1, 0], [], []>} : vector<16x8xf32>, vector<16x8xf32>, vector<16x16xf32> -> vector<16x16xf32>
    %224 = arith.addf %223, %4 : vector<16x16xf32>
    %cst_87 = arith.constant dense<0xFF800000> : vector<16xf32>
    %225 = vector.multi_reduction <maximumf>, %224, %cst_87 [1] : vector<16x16xf32> to vector<16xf32>
    %226 = vector.shape_cast %225 : vector<16xf32> to vector<16x1xf32>
    %227 = vector.broadcast %226 : vector<16x1xf32> to vector<16x16xf32>
    %228 = arith.subf %224, %227 : vector<16x16xf32>
    %229 = math.exp %228 : vector<16x16xf32>
    %cst_88 = arith.constant dense<0.000000e+00> : vector<16xf32>
    %230 = vector.multi_reduction <add>, %229, %cst_88 [1] : vector<16x16xf32> to vector<16xf32>
    %231 = vector.shape_cast %230 : vector<16xf32> to vector<16x1xf32>
    %232 = tpu.reciprocal %231 {approx = true} : vector<16x1xf32> -> vector<16x1xf32>
    %233 = vector.broadcast %232 : vector<16x1xf32> to vector<16x16xf32>
    %234 = arith.mulf %229, %233 : vector<16x16xf32>
    %cst_89 = arith.constant dense<0.000000e+00> : vector<16x8xf32>
    %235 = tpu.matmul %234, %222, %cst_89 {dimension_numbers = #tpu.dot_dimension_numbers<[1], [0], [0], [1], [0, 0, 1, 1], [], []>} : vector<16x16xf32>, vector<16x8xf32>, vector<16x8xf32> -> vector<16x8xf32>
    %236 = tpu.concatenate %187, %203, %219, %235 in 1 : vector<16x8xf32>, vector<16x8xf32>, vector<16x8xf32>, vector<16x8xf32> -> vector<16x32xf32>
    %237 = arith.truncf %236 : vector<16x32xf32> to vector<16x32xbf16>
    %cst_90 = arith.constant dense<0.000000e+00> : vector<16x32xf32>
    %238 = tpu.matmul %237, %12, %cst_90 {dimension_numbers = #tpu.dot_dimension_numbers<[1], [0], [0], [1], [0, 0, 1, 1], [], []>} : vector<16x32xbf16>, vector<32x32xbf16>, vector<16x32xf32> -> vector<16x32xf32>
    %239 = vector.broadcast %24 : vector<1x32xf32> to vector<16x32xf32>
    %240 = arith.addf %238, %239 : vector<16x32xf32>
    %241 = arith.addf %139, %240 : vector<16x32xf32>
    %cst_91 = arith.constant dense<0.000000e+00> : vector<16xf32>
    %242 = vector.multi_reduction <add>, %241, %cst_91 [1] : vector<16x32xf32> to vector<16xf32>
    %243 = vector.shape_cast %242 : vector<16xf32> to vector<16x1xf32>
    %cst_92 = arith.constant 3.200000e+01 : f32
    %244 = vector.broadcast %cst_92 : f32 to vector<16x1xf32>
    %245 = arith.divf %243, %244 : vector<16x1xf32>
    %246 = vector.broadcast %245 : vector<16x1xf32> to vector<16x32xf32>
    %247 = arith.subf %241, %246 : vector<16x32xf32>
    %248 = arith.mulf %247, %247 : vector<16x32xf32>
    %cst_93 = arith.constant dense<0.000000e+00> : vector<16xf32>
    %249 = vector.multi_reduction <add>, %248, %cst_93 [1] : vector<16x32xf32> to vector<16xf32>
    %250 = vector.shape_cast %249 : vector<16xf32> to vector<16x1xf32>
    %cst_94 = arith.constant 3.200000e+01 : f32
    %251 = vector.broadcast %cst_94 : f32 to vector<16x1xf32>
    %252 = arith.divf %250, %251 : vector<16x1xf32>
    %253 = vector.broadcast %245 : vector<16x1xf32> to vector<16x32xf32>
    %254 = arith.subf %241, %253 : vector<16x32xf32>
    %cst_95 = arith.constant 9.99999974E-6 : f32
    %255 = vector.broadcast %cst_95 : f32 to vector<16x1xf32>
    %256 = arith.addf %252, %255 : vector<16x1xf32>
    %257 = math.rsqrt %256 : vector<16x1xf32>
    %258 = vector.broadcast %257 : vector<16x1xf32> to vector<16x32xf32>
    %259 = arith.mulf %254, %258 : vector<16x32xf32>
    %260 = vector.broadcast %34 : vector<1x32xf32> to vector<16x32xf32>
    %261 = arith.mulf %259, %260 : vector<16x32xf32>
    %262 = vector.broadcast %40 : vector<1x32xf32> to vector<16x32xf32>
    %263 = arith.addf %261, %262 : vector<16x32xf32>
    %264 = arith.truncf %263 : vector<16x32xf32> to vector<16x32xbf16>
    %cst_96 = arith.constant dense<0.000000e+00> : vector<16x64xf32>
    %265 = tpu.matmul %264, %14, %cst_96 {dimension_numbers = #tpu.dot_dimension_numbers<[1], [0], [0], [1], [0, 0, 1, 1], [], []>} : vector<16x32xbf16>, vector<32x64xbf16>, vector<16x64xf32> -> vector<16x64xf32>
    %266 = vector.broadcast %26 : vector<1x64xf32> to vector<16x64xf32>
    %267 = arith.addf %265, %266 : vector<16x64xf32>
    %cst_97 = arith.constant 0.000000e+00 : f32
    %268 = vector.broadcast %cst_97 : f32 to vector<16x64xf32>
    %269 = arith.maximumf %267, %268 : vector<16x64xf32>
    %270 = arith.truncf %269 : vector<16x64xf32> to vector<16x64xbf16>
    %cst_98 = arith.constant dense<0.000000e+00> : vector<16x32xf32>
    %271 = tpu.matmul %270, %16, %cst_98 {dimension_numbers = #tpu.dot_dimension_numbers<[1], [0], [0], [1], [0, 0, 1, 1], [], []>} : vector<16x64xbf16>, vector<64x32xbf16>, vector<16x32xf32> -> vector<16x32xf32>
    %272 = vector.broadcast %28 : vector<1x32xf32> to vector<16x32xf32>
    %273 = arith.addf %271, %272 : vector<16x32xf32>
    %274 = arith.addf %241, %273 : vector<16x32xf32>
    %c1_99 = arith.constant 1 : index
    %c0_100 = arith.constant 0 : index
    %c0_101 = arith.constant 0 : index
    %275 = vector.load %arg4[%c1_99, %c0_100, %c0_101] : memref<2x224x128xbf16, #tpu.memory_space<vmem>>, vector<1x32x96xbf16>
    %276 = vector.shape_cast %275 : vector<1x32x96xbf16> to vector<32x96xbf16>
    %c1_102 = arith.constant 1 : index
    %c32_103 = arith.constant 32 : index
    %c0_104 = arith.constant 0 : index
    %277 = vector.load %arg4[%c1_102, %c32_103, %c0_104] : memref<2x224x128xbf16, #tpu.memory_space<vmem>>, vector<1x32x96xbf16>
    %278 = vector.shape_cast %277 : vector<1x32x96xbf16> to vector<32x96xbf16>
    %c1_105 = arith.constant 1 : index
    %c64_106 = arith.constant 64 : index
    %c0_107 = arith.constant 0 : index
    %279 = vector.load %arg4[%c1_105, %c64_106, %c0_107] : memref<2x224x128xbf16, #tpu.memory_space<vmem>>, vector<1x32x32xbf16>
    %280 = vector.shape_cast %279 : vector<1x32x32xbf16> to vector<32x32xbf16>
    %c1_108 = arith.constant 1 : index
    %c96_109 = arith.constant 96 : index
    %c0_110 = arith.constant 0 : index
    %281 = vector.load %arg4[%c1_108, %c96_109, %c0_110] : memref<2x224x128xbf16, #tpu.memory_space<vmem>>, vector<1x32x32xbf16>
    %282 = vector.shape_cast %281 : vector<1x32x32xbf16> to vector<32x32xbf16>
    %c1_111 = arith.constant 1 : index
    %c128_112 = arith.constant 128 : index
    %c0_113 = arith.constant 0 : index
    %283 = vector.load %arg4[%c1_111, %c128_112, %c0_113] : memref<2x224x128xbf16, #tpu.memory_space<vmem>>, vector<1x32x64xbf16>
    %284 = vector.shape_cast %283 : vector<1x32x64xbf16> to vector<32x64xbf16>
    %c1_114 = arith.constant 1 : index
    %c160_115 = arith.constant 160 : index
    %c0_116 = arith.constant 0 : index
    %285 = vector.load %arg4[%c1_114, %c160_115, %c0_116] : memref<2x224x128xbf16, #tpu.memory_space<vmem>>, vector<1x64x32xbf16>
    %286 = vector.shape_cast %285 : vector<1x64x32xbf16> to vector<64x32xbf16>
    %c1_117 = arith.constant 1 : index
    %c0_118 = arith.constant 0 : index
    %c0_119 = arith.constant 0 : index
    %287 = vector.load %arg5[%c1_117, %c0_118, %c0_119] : memref<2x16x128xf32, #tpu.memory_space<vmem>>, vector<1x1x96xf32>
    %288 = vector.shape_cast %287 : vector<1x1x96xf32> to vector<1x96xf32>
    %c1_120 = arith.constant 1 : index
    %c1_121 = arith.constant 1 : index
    %c0_122 = arith.constant 0 : index
    %289 = vector.load %arg5[%c1_120, %c1_121, %c0_122] : memref<2x16x128xf32, #tpu.memory_space<vmem>>, vector<1x1x96xf32>
    %290 = vector.shape_cast %289 : vector<1x1x96xf32> to vector<1x96xf32>
    %c1_123 = arith.constant 1 : index
    %c2_124 = arith.constant 2 : index
    %c0_125 = arith.constant 0 : index
    %291 = vector.load %arg5[%c1_123, %c2_124, %c0_125] : memref<2x16x128xf32, #tpu.memory_space<vmem>>, vector<1x1x32xf32>
    %292 = vector.shape_cast %291 : vector<1x1x32xf32> to vector<1x32xf32>
    %c1_126 = arith.constant 1 : index
    %c3_127 = arith.constant 3 : index
    %c0_128 = arith.constant 0 : index
    %293 = vector.load %arg5[%c1_126, %c3_127, %c0_128] : memref<2x16x128xf32, #tpu.memory_space<vmem>>, vector<1x1x32xf32>
    %294 = vector.shape_cast %293 : vector<1x1x32xf32> to vector<1x32xf32>
    %c1_129 = arith.constant 1 : index
    %c4_130 = arith.constant 4 : index
    %c0_131 = arith.constant 0 : index
    %295 = vector.load %arg5[%c1_129, %c4_130, %c0_131] : memref<2x16x128xf32, #tpu.memory_space<vmem>>, vector<1x1x64xf32>
    %296 = vector.shape_cast %295 : vector<1x1x64xf32> to vector<1x64xf32>
    %c1_132 = arith.constant 1 : index
    %c5_133 = arith.constant 5 : index
    %c0_134 = arith.constant 0 : index
    %297 = vector.load %arg5[%c1_132, %c5_133, %c0_134] : memref<2x16x128xf32, #tpu.memory_space<vmem>>, vector<1x1x32xf32>
    %298 = vector.shape_cast %297 : vector<1x1x32xf32> to vector<1x32xf32>
    %c1_135 = arith.constant 1 : index
    %c6_136 = arith.constant 6 : index
    %c0_137 = arith.constant 0 : index
    %299 = vector.load %arg5[%c1_135, %c6_136, %c0_137] : memref<2x16x128xf32, #tpu.memory_space<vmem>>, vector<1x1x32xf32>
    %300 = vector.shape_cast %299 : vector<1x1x32xf32> to vector<1x32xf32>
    %c1_138 = arith.constant 1 : index
    %c7_139 = arith.constant 7 : index
    %c0_140 = arith.constant 0 : index
    %301 = vector.load %arg5[%c1_138, %c7_139, %c0_140] : memref<2x16x128xf32, #tpu.memory_space<vmem>>, vector<1x1x32xf32>
    %302 = vector.shape_cast %301 : vector<1x1x32xf32> to vector<1x32xf32>
    %c1_141 = arith.constant 1 : index
    %c8_142 = arith.constant 8 : index
    %c0_143 = arith.constant 0 : index
    %303 = vector.load %arg5[%c1_141, %c8_142, %c0_143] : memref<2x16x128xf32, #tpu.memory_space<vmem>>, vector<1x1x32xf32>
    %304 = vector.shape_cast %303 : vector<1x1x32xf32> to vector<1x32xf32>
    %c1_144 = arith.constant 1 : index
    %c9_145 = arith.constant 9 : index
    %c0_146 = arith.constant 0 : index
    %305 = vector.load %arg5[%c1_144, %c9_145, %c0_146] : memref<2x16x128xf32, #tpu.memory_space<vmem>>, vector<1x1x32xf32>
    %306 = vector.shape_cast %305 : vector<1x1x32xf32> to vector<1x32xf32>
    %c1_147 = arith.constant 1 : index
    %c10_148 = arith.constant 10 : index
    %c0_149 = arith.constant 0 : index
    %307 = vector.load %arg5[%c1_147, %c10_148, %c0_149] : memref<2x16x128xf32, #tpu.memory_space<vmem>>, vector<1x1x32xf32>
    %308 = vector.shape_cast %307 : vector<1x1x32xf32> to vector<1x32xf32>
    %c1_150 = arith.constant 1 : index
    %c11_151 = arith.constant 11 : index
    %c0_152 = arith.constant 0 : index
    %309 = vector.load %arg5[%c1_150, %c11_151, %c0_152] : memref<2x16x128xf32, #tpu.memory_space<vmem>>, vector<1x1x32xf32>
    %310 = vector.shape_cast %309 : vector<1x1x32xf32> to vector<1x32xf32>
    %cst_153 = arith.constant dense<0.000000e+00> : vector<16xf32>
    %311 = vector.multi_reduction <add>, %274, %cst_153 [1] : vector<16x32xf32> to vector<16xf32>
    %312 = vector.shape_cast %311 : vector<16xf32> to vector<16x1xf32>
    %cst_154 = arith.constant 3.200000e+01 : f32
    %313 = vector.broadcast %cst_154 : f32 to vector<16x1xf32>
    %314 = arith.divf %312, %313 : vector<16x1xf32>
    %315 = vector.broadcast %314 : vector<16x1xf32> to vector<16x32xf32>
    %316 = arith.subf %274, %315 : vector<16x32xf32>
    %317 = arith.mulf %316, %316 : vector<16x32xf32>
    %cst_155 = arith.constant dense<0.000000e+00> : vector<16xf32>
    %318 = vector.multi_reduction <add>, %317, %cst_155 [1] : vector<16x32xf32> to vector<16xf32>
    %319 = vector.shape_cast %318 : vector<16xf32> to vector<16x1xf32>
    %cst_156 = arith.constant 3.200000e+01 : f32
    %320 = vector.broadcast %cst_156 : f32 to vector<16x1xf32>
    %321 = arith.divf %319, %320 : vector<16x1xf32>
    %322 = vector.broadcast %314 : vector<16x1xf32> to vector<16x32xf32>
    %323 = arith.subf %274, %322 : vector<16x32xf32>
    %cst_157 = arith.constant 9.99999974E-6 : f32
    %324 = vector.broadcast %cst_157 : f32 to vector<16x1xf32>
    %325 = arith.addf %321, %324 : vector<16x1xf32>
    %326 = math.rsqrt %325 : vector<16x1xf32>
    %327 = vector.broadcast %326 : vector<16x1xf32> to vector<16x32xf32>
    %328 = arith.mulf %323, %327 : vector<16x32xf32>
    %329 = vector.broadcast %300 : vector<1x32xf32> to vector<16x32xf32>
    %330 = arith.mulf %328, %329 : vector<16x32xf32>
    %331 = vector.broadcast %306 : vector<1x32xf32> to vector<16x32xf32>
    %332 = arith.addf %330, %331 : vector<16x32xf32>
    %333 = arith.truncf %332 : vector<16x32xf32> to vector<16x32xbf16>
    %cst_158 = arith.constant dense<0.000000e+00> : vector<16x96xf32>
    %334 = tpu.matmul %333, %276, %cst_158 {dimension_numbers = #tpu.dot_dimension_numbers<[1], [0], [0], [1], [0, 0, 1, 1], [], []>} : vector<16x32xbf16>, vector<32x96xbf16>, vector<16x96xf32> -> vector<16x96xf32>
    %335 = vector.broadcast %288 : vector<1x96xf32> to vector<16x96xf32>
    %336 = arith.addf %334, %335 : vector<16x96xf32>
    %337 = vector.extract_strided_slice %336 {offsets = [0, 0], sizes = [16, 32], strides = [1, 1]} : vector<16x96xf32> to vector<16x32xf32>
    %338 = vector.extract_strided_slice %336 {offsets = [0, 32], sizes = [16, 32], strides = [1, 1]} : vector<16x96xf32> to vector<16x32xf32>
    %339 = vector.extract_strided_slice %336 {offsets = [0, 64], sizes = [16, 32], strides = [1, 1]} : vector<16x96xf32> to vector<16x32xf32>
    %340 = vector.extract_strided_slice %337 {offsets = [0, 0], sizes = [16, 8], strides = [1, 1]} : vector<16x32xf32> to vector<16x8xf32>
    %341 = vector.extract_strided_slice %338 {offsets = [0, 0], sizes = [16, 8], strides = [1, 1]} : vector<16x32xf32> to vector<16x8xf32>
    %342 = vector.extract_strided_slice %339 {offsets = [0, 0], sizes = [16, 8], strides = [1, 1]} : vector<16x32xf32> to vector<16x8xf32>
    %cst_159 = arith.constant dense<0.000000e+00> : vector<16x16xf32>
    %343 = tpu.matmul %340, %341, %cst_159 {dimension_numbers = #tpu.dot_dimension_numbers<[1], [1], [0], [0], [0, 0, 1, 0], [], []>} : vector<16x8xf32>, vector<16x8xf32>, vector<16x16xf32> -> vector<16x16xf32>
    %344 = arith.addf %343, %3 : vector<16x16xf32>
    %cst_160 = arith.constant dense<0xFF800000> : vector<16xf32>
    %345 = vector.multi_reduction <maximumf>, %344, %cst_160 [1] : vector<16x16xf32> to vector<16xf32>
    %346 = vector.shape_cast %345 : vector<16xf32> to vector<16x1xf32>
    %347 = vector.broadcast %346 : vector<16x1xf32> to vector<16x16xf32>
    %348 = arith.subf %344, %347 : vector<16x16xf32>
    %349 = math.exp %348 : vector<16x16xf32>
    %cst_161 = arith.constant dense<0.000000e+00> : vector<16xf32>
    %350 = vector.multi_reduction <add>, %349, %cst_161 [1] : vector<16x16xf32> to vector<16xf32>
    %351 = vector.shape_cast %350 : vector<16xf32> to vector<16x1xf32>
    %352 = tpu.reciprocal %351 {approx = true} : vector<16x1xf32> -> vector<16x1xf32>
    %353 = vector.broadcast %352 : vector<16x1xf32> to vector<16x16xf32>
    %354 = arith.mulf %349, %353 : vector<16x16xf32>
    %cst_162 = arith.constant dense<0.000000e+00> : vector<16x8xf32>
    %355 = tpu.matmul %354, %342, %cst_162 {dimension_numbers = #tpu.dot_dimension_numbers<[1], [0], [0], [1], [0, 0, 1, 1], [], []>} : vector<16x16xf32>, vector<16x8xf32>, vector<16x8xf32> -> vector<16x8xf32>
    %356 = vector.extract_strided_slice %337 {offsets = [0, 8], sizes = [16, 8], strides = [1, 1]} : vector<16x32xf32> to vector<16x8xf32>
    %357 = vector.extract_strided_slice %338 {offsets = [0, 8], sizes = [16, 8], strides = [1, 1]} : vector<16x32xf32> to vector<16x8xf32>
    %358 = vector.extract_strided_slice %339 {offsets = [0, 8], sizes = [16, 8], strides = [1, 1]} : vector<16x32xf32> to vector<16x8xf32>
    %cst_163 = arith.constant dense<0.000000e+00> : vector<16x16xf32>
    %359 = tpu.matmul %356, %357, %cst_163 {dimension_numbers = #tpu.dot_dimension_numbers<[1], [1], [0], [0], [0, 0, 1, 0], [], []>} : vector<16x8xf32>, vector<16x8xf32>, vector<16x16xf32> -> vector<16x16xf32>
    %360 = arith.addf %359, %3 : vector<16x16xf32>
    %cst_164 = arith.constant dense<0xFF800000> : vector<16xf32>
    %361 = vector.multi_reduction <maximumf>, %360, %cst_164 [1] : vector<16x16xf32> to vector<16xf32>
    %362 = vector.shape_cast %361 : vector<16xf32> to vector<16x1xf32>
    %363 = vector.broadcast %362 : vector<16x1xf32> to vector<16x16xf32>
    %364 = arith.subf %360, %363 : vector<16x16xf32>
    %365 = math.exp %364 : vector<16x16xf32>
    %cst_165 = arith.constant dense<0.000000e+00> : vector<16xf32>
    %366 = vector.multi_reduction <add>, %365, %cst_165 [1] : vector<16x16xf32> to vector<16xf32>
    %367 = vector.shape_cast %366 : vector<16xf32> to vector<16x1xf32>
    %368 = tpu.reciprocal %367 {approx = true} : vector<16x1xf32> -> vector<16x1xf32>
    %369 = vector.broadcast %368 : vector<16x1xf32> to vector<16x16xf32>
    %370 = arith.mulf %365, %369 : vector<16x16xf32>
    %cst_166 = arith.constant dense<0.000000e+00> : vector<16x8xf32>
    %371 = tpu.matmul %370, %358, %cst_166 {dimension_numbers = #tpu.dot_dimension_numbers<[1], [0], [0], [1], [0, 0, 1, 1], [], []>} : vector<16x16xf32>, vector<16x8xf32>, vector<16x8xf32> -> vector<16x8xf32>
    %372 = vector.extract_strided_slice %337 {offsets = [0, 16], sizes = [16, 8], strides = [1, 1]} : vector<16x32xf32> to vector<16x8xf32>
    %373 = vector.extract_strided_slice %338 {offsets = [0, 16], sizes = [16, 8], strides = [1, 1]} : vector<16x32xf32> to vector<16x8xf32>
    %374 = vector.extract_strided_slice %339 {offsets = [0, 16], sizes = [16, 8], strides = [1, 1]} : vector<16x32xf32> to vector<16x8xf32>
    %cst_167 = arith.constant dense<0.000000e+00> : vector<16x16xf32>
    %375 = tpu.matmul %372, %373, %cst_167 {dimension_numbers = #tpu.dot_dimension_numbers<[1], [1], [0], [0], [0, 0, 1, 0], [], []>} : vector<16x8xf32>, vector<16x8xf32>, vector<16x16xf32> -> vector<16x16xf32>
    %376 = arith.addf %375, %3 : vector<16x16xf32>
    %cst_168 = arith.constant dense<0xFF800000> : vector<16xf32>
    %377 = vector.multi_reduction <maximumf>, %376, %cst_168 [1] : vector<16x16xf32> to vector<16xf32>
    %378 = vector.shape_cast %377 : vector<16xf32> to vector<16x1xf32>
    %379 = vector.broadcast %378 : vector<16x1xf32> to vector<16x16xf32>
    %380 = arith.subf %376, %379 : vector<16x16xf32>
    %381 = math.exp %380 : vector<16x16xf32>
    %cst_169 = arith.constant dense<0.000000e+00> : vector<16xf32>
    %382 = vector.multi_reduction <add>, %381, %cst_169 [1] : vector<16x16xf32> to vector<16xf32>
    %383 = vector.shape_cast %382 : vector<16xf32> to vector<16x1xf32>
    %384 = tpu.reciprocal %383 {approx = true} : vector<16x1xf32> -> vector<16x1xf32>
    %385 = vector.broadcast %384 : vector<16x1xf32> to vector<16x16xf32>
    %386 = arith.mulf %381, %385 : vector<16x16xf32>
    %cst_170 = arith.constant dense<0.000000e+00> : vector<16x8xf32>
    %387 = tpu.matmul %386, %374, %cst_170 {dimension_numbers = #tpu.dot_dimension_numbers<[1], [0], [0], [1], [0, 0, 1, 1], [], []>} : vector<16x16xf32>, vector<16x8xf32>, vector<16x8xf32> -> vector<16x8xf32>
    %388 = vector.extract_strided_slice %337 {offsets = [0, 24], sizes = [16, 8], strides = [1, 1]} : vector<16x32xf32> to vector<16x8xf32>
    %389 = vector.extract_strided_slice %338 {offsets = [0, 24], sizes = [16, 8], strides = [1, 1]} : vector<16x32xf32> to vector<16x8xf32>
    %390 = vector.extract_strided_slice %339 {offsets = [0, 24], sizes = [16, 8], strides = [1, 1]} : vector<16x32xf32> to vector<16x8xf32>
    %cst_171 = arith.constant dense<0.000000e+00> : vector<16x16xf32>
    %391 = tpu.matmul %388, %389, %cst_171 {dimension_numbers = #tpu.dot_dimension_numbers<[1], [1], [0], [0], [0, 0, 1, 0], [], []>} : vector<16x8xf32>, vector<16x8xf32>, vector<16x16xf32> -> vector<16x16xf32>
    %392 = arith.addf %391, %3 : vector<16x16xf32>
    %cst_172 = arith.constant dense<0xFF800000> : vector<16xf32>
    %393 = vector.multi_reduction <maximumf>, %392, %cst_172 [1] : vector<16x16xf32> to vector<16xf32>
    %394 = vector.shape_cast %393 : vector<16xf32> to vector<16x1xf32>
    %395 = vector.broadcast %394 : vector<16x1xf32> to vector<16x16xf32>
    %396 = arith.subf %392, %395 : vector<16x16xf32>
    %397 = math.exp %396 : vector<16x16xf32>
    %cst_173 = arith.constant dense<0.000000e+00> : vector<16xf32>
    %398 = vector.multi_reduction <add>, %397, %cst_173 [1] : vector<16x16xf32> to vector<16xf32>
    %399 = vector.shape_cast %398 : vector<16xf32> to vector<16x1xf32>
    %400 = tpu.reciprocal %399 {approx = true} : vector<16x1xf32> -> vector<16x1xf32>
    %401 = vector.broadcast %400 : vector<16x1xf32> to vector<16x16xf32>
    %402 = arith.mulf %397, %401 : vector<16x16xf32>
    %cst_174 = arith.constant dense<0.000000e+00> : vector<16x8xf32>
    %403 = tpu.matmul %402, %390, %cst_174 {dimension_numbers = #tpu.dot_dimension_numbers<[1], [0], [0], [1], [0, 0, 1, 1], [], []>} : vector<16x16xf32>, vector<16x8xf32>, vector<16x8xf32> -> vector<16x8xf32>
    %404 = tpu.concatenate %355, %371, %387, %403 in 1 : vector<16x8xf32>, vector<16x8xf32>, vector<16x8xf32>, vector<16x8xf32> -> vector<16x32xf32>
    %405 = arith.truncf %404 : vector<16x32xf32> to vector<16x32xbf16>
    %cst_175 = arith.constant dense<0.000000e+00> : vector<16x32xf32>
    %406 = tpu.matmul %405, %280, %cst_175 {dimension_numbers = #tpu.dot_dimension_numbers<[1], [0], [0], [1], [0, 0, 1, 1], [], []>} : vector<16x32xbf16>, vector<32x32xbf16>, vector<16x32xf32> -> vector<16x32xf32>
    %407 = vector.broadcast %292 : vector<1x32xf32> to vector<16x32xf32>
    %408 = arith.addf %406, %407 : vector<16x32xf32>
    %409 = arith.addf %274, %408 : vector<16x32xf32>
    %cst_176 = arith.constant dense<0.000000e+00> : vector<16xf32>
    %410 = vector.multi_reduction <add>, %409, %cst_176 [1] : vector<16x32xf32> to vector<16xf32>
    %411 = vector.shape_cast %410 : vector<16xf32> to vector<16x1xf32>
    %cst_177 = arith.constant 3.200000e+01 : f32
    %412 = vector.broadcast %cst_177 : f32 to vector<16x1xf32>
    %413 = arith.divf %411, %412 : vector<16x1xf32>
    %414 = vector.broadcast %413 : vector<16x1xf32> to vector<16x32xf32>
    %415 = arith.subf %409, %414 : vector<16x32xf32>
    %416 = arith.mulf %415, %415 : vector<16x32xf32>
    %cst_178 = arith.constant dense<0.000000e+00> : vector<16xf32>
    %417 = vector.multi_reduction <add>, %416, %cst_178 [1] : vector<16x32xf32> to vector<16xf32>
    %418 = vector.shape_cast %417 : vector<16xf32> to vector<16x1xf32>
    %cst_179 = arith.constant 3.200000e+01 : f32
    %419 = vector.broadcast %cst_179 : f32 to vector<16x1xf32>
    %420 = arith.divf %418, %419 : vector<16x1xf32>
    %421 = vector.broadcast %413 : vector<16x1xf32> to vector<16x32xf32>
    %422 = arith.subf %409, %421 : vector<16x32xf32>
    %cst_180 = arith.constant 9.99999974E-6 : f32
    %423 = vector.broadcast %cst_180 : f32 to vector<16x1xf32>
    %424 = arith.addf %420, %423 : vector<16x1xf32>
    %425 = math.rsqrt %424 : vector<16x1xf32>
    %426 = vector.broadcast %425 : vector<16x1xf32> to vector<16x32xf32>
    %427 = arith.mulf %422, %426 : vector<16x32xf32>
    %428 = vector.broadcast %302 : vector<1x32xf32> to vector<16x32xf32>
    %429 = arith.mulf %427, %428 : vector<16x32xf32>
    %430 = vector.broadcast %308 : vector<1x32xf32> to vector<16x32xf32>
    %431 = arith.addf %429, %430 : vector<16x32xf32>
    %432 = arith.truncf %431 : vector<16x32xf32> to vector<16x32xbf16>
    %cst_181 = arith.constant dense<0.000000e+00> : vector<16x96xf32>
    %433 = tpu.matmul %432, %278, %cst_181 {dimension_numbers = #tpu.dot_dimension_numbers<[1], [0], [0], [1], [0, 0, 1, 1], [], []>} : vector<16x32xbf16>, vector<32x96xbf16>, vector<16x96xf32> -> vector<16x96xf32>
    %434 = vector.broadcast %290 : vector<1x96xf32> to vector<16x96xf32>
    %435 = arith.addf %433, %434 : vector<16x96xf32>
    %cst_182 = arith.constant dense<0.000000e+00> : vector<16x96xf32>
    %436 = tpu.matmul %2, %278, %cst_182 {dimension_numbers = #tpu.dot_dimension_numbers<[1], [0], [0], [1], [0, 0, 1, 1], [], []>} : vector<16x32xbf16>, vector<32x96xbf16>, vector<16x96xf32> -> vector<16x96xf32>
    %437 = vector.broadcast %290 : vector<1x96xf32> to vector<16x96xf32>
    %438 = arith.addf %436, %437 : vector<16x96xf32>
    %439 = vector.extract_strided_slice %435 {offsets = [0, 0], sizes = [16, 32], strides = [1, 1]} : vector<16x96xf32> to vector<16x32xf32>
    %440 = vector.extract_strided_slice %438 {offsets = [0, 32], sizes = [16, 32], strides = [1, 1]} : vector<16x96xf32> to vector<16x32xf32>
    %441 = vector.extract_strided_slice %438 {offsets = [0, 64], sizes = [16, 32], strides = [1, 1]} : vector<16x96xf32> to vector<16x32xf32>
    %442 = vector.extract_strided_slice %439 {offsets = [0, 0], sizes = [16, 8], strides = [1, 1]} : vector<16x32xf32> to vector<16x8xf32>
    %443 = vector.extract_strided_slice %440 {offsets = [0, 0], sizes = [16, 8], strides = [1, 1]} : vector<16x32xf32> to vector<16x8xf32>
    %444 = vector.extract_strided_slice %441 {offsets = [0, 0], sizes = [16, 8], strides = [1, 1]} : vector<16x32xf32> to vector<16x8xf32>
    %cst_183 = arith.constant dense<0.000000e+00> : vector<16x16xf32>
    %445 = tpu.matmul %442, %443, %cst_183 {dimension_numbers = #tpu.dot_dimension_numbers<[1], [1], [0], [0], [0, 0, 1, 0], [], []>} : vector<16x8xf32>, vector<16x8xf32>, vector<16x16xf32> -> vector<16x16xf32>
    %446 = arith.addf %445, %4 : vector<16x16xf32>
    %cst_184 = arith.constant dense<0xFF800000> : vector<16xf32>
    %447 = vector.multi_reduction <maximumf>, %446, %cst_184 [1] : vector<16x16xf32> to vector<16xf32>
    %448 = vector.shape_cast %447 : vector<16xf32> to vector<16x1xf32>
    %449 = vector.broadcast %448 : vector<16x1xf32> to vector<16x16xf32>
    %450 = arith.subf %446, %449 : vector<16x16xf32>
    %451 = math.exp %450 : vector<16x16xf32>
    %cst_185 = arith.constant dense<0.000000e+00> : vector<16xf32>
    %452 = vector.multi_reduction <add>, %451, %cst_185 [1] : vector<16x16xf32> to vector<16xf32>
    %453 = vector.shape_cast %452 : vector<16xf32> to vector<16x1xf32>
    %454 = tpu.reciprocal %453 {approx = true} : vector<16x1xf32> -> vector<16x1xf32>
    %455 = vector.broadcast %454 : vector<16x1xf32> to vector<16x16xf32>
    %456 = arith.mulf %451, %455 : vector<16x16xf32>
    %cst_186 = arith.constant dense<0.000000e+00> : vector<16x8xf32>
    %457 = tpu.matmul %456, %444, %cst_186 {dimension_numbers = #tpu.dot_dimension_numbers<[1], [0], [0], [1], [0, 0, 1, 1], [], []>} : vector<16x16xf32>, vector<16x8xf32>, vector<16x8xf32> -> vector<16x8xf32>
    %458 = vector.extract_strided_slice %439 {offsets = [0, 8], sizes = [16, 8], strides = [1, 1]} : vector<16x32xf32> to vector<16x8xf32>
    %459 = vector.extract_strided_slice %440 {offsets = [0, 8], sizes = [16, 8], strides = [1, 1]} : vector<16x32xf32> to vector<16x8xf32>
    %460 = vector.extract_strided_slice %441 {offsets = [0, 8], sizes = [16, 8], strides = [1, 1]} : vector<16x32xf32> to vector<16x8xf32>
    %cst_187 = arith.constant dense<0.000000e+00> : vector<16x16xf32>
    %461 = tpu.matmul %458, %459, %cst_187 {dimension_numbers = #tpu.dot_dimension_numbers<[1], [1], [0], [0], [0, 0, 1, 0], [], []>} : vector<16x8xf32>, vector<16x8xf32>, vector<16x16xf32> -> vector<16x16xf32>
    %462 = arith.addf %461, %4 : vector<16x16xf32>
    %cst_188 = arith.constant dense<0xFF800000> : vector<16xf32>
    %463 = vector.multi_reduction <maximumf>, %462, %cst_188 [1] : vector<16x16xf32> to vector<16xf32>
    %464 = vector.shape_cast %463 : vector<16xf32> to vector<16x1xf32>
    %465 = vector.broadcast %464 : vector<16x1xf32> to vector<16x16xf32>
    %466 = arith.subf %462, %465 : vector<16x16xf32>
    %467 = math.exp %466 : vector<16x16xf32>
    %cst_189 = arith.constant dense<0.000000e+00> : vector<16xf32>
    %468 = vector.multi_reduction <add>, %467, %cst_189 [1] : vector<16x16xf32> to vector<16xf32>
    %469 = vector.shape_cast %468 : vector<16xf32> to vector<16x1xf32>
    %470 = tpu.reciprocal %469 {approx = true} : vector<16x1xf32> -> vector<16x1xf32>
    %471 = vector.broadcast %470 : vector<16x1xf32> to vector<16x16xf32>
    %472 = arith.mulf %467, %471 : vector<16x16xf32>
    %cst_190 = arith.constant dense<0.000000e+00> : vector<16x8xf32>
    %473 = tpu.matmul %472, %460, %cst_190 {dimension_numbers = #tpu.dot_dimension_numbers<[1], [0], [0], [1], [0, 0, 1, 1], [], []>} : vector<16x16xf32>, vector<16x8xf32>, vector<16x8xf32> -> vector<16x8xf32>
    %474 = vector.extract_strided_slice %439 {offsets = [0, 16], sizes = [16, 8], strides = [1, 1]} : vector<16x32xf32> to vector<16x8xf32>
    %475 = vector.extract_strided_slice %440 {offsets = [0, 16], sizes = [16, 8], strides = [1, 1]} : vector<16x32xf32> to vector<16x8xf32>
    %476 = vector.extract_strided_slice %441 {offsets = [0, 16], sizes = [16, 8], strides = [1, 1]} : vector<16x32xf32> to vector<16x8xf32>
    %cst_191 = arith.constant dense<0.000000e+00> : vector<16x16xf32>
    %477 = tpu.matmul %474, %475, %cst_191 {dimension_numbers = #tpu.dot_dimension_numbers<[1], [1], [0], [0], [0, 0, 1, 0], [], []>} : vector<16x8xf32>, vector<16x8xf32>, vector<16x16xf32> -> vector<16x16xf32>
    %478 = arith.addf %477, %4 : vector<16x16xf32>
    %cst_192 = arith.constant dense<0xFF800000> : vector<16xf32>
    %479 = vector.multi_reduction <maximumf>, %478, %cst_192 [1] : vector<16x16xf32> to vector<16xf32>
    %480 = vector.shape_cast %479 : vector<16xf32> to vector<16x1xf32>
    %481 = vector.broadcast %480 : vector<16x1xf32> to vector<16x16xf32>
    %482 = arith.subf %478, %481 : vector<16x16xf32>
    %483 = math.exp %482 : vector<16x16xf32>
    %cst_193 = arith.constant dense<0.000000e+00> : vector<16xf32>
    %484 = vector.multi_reduction <add>, %483, %cst_193 [1] : vector<16x16xf32> to vector<16xf32>
    %485 = vector.shape_cast %484 : vector<16xf32> to vector<16x1xf32>
    %486 = tpu.reciprocal %485 {approx = true} : vector<16x1xf32> -> vector<16x1xf32>
    %487 = vector.broadcast %486 : vector<16x1xf32> to vector<16x16xf32>
    %488 = arith.mulf %483, %487 : vector<16x16xf32>
    %cst_194 = arith.constant dense<0.000000e+00> : vector<16x8xf32>
    %489 = tpu.matmul %488, %476, %cst_194 {dimension_numbers = #tpu.dot_dimension_numbers<[1], [0], [0], [1], [0, 0, 1, 1], [], []>} : vector<16x16xf32>, vector<16x8xf32>, vector<16x8xf32> -> vector<16x8xf32>
    %490 = vector.extract_strided_slice %439 {offsets = [0, 24], sizes = [16, 8], strides = [1, 1]} : vector<16x32xf32> to vector<16x8xf32>
    %491 = vector.extract_strided_slice %440 {offsets = [0, 24], sizes = [16, 8], strides = [1, 1]} : vector<16x32xf32> to vector<16x8xf32>
    %492 = vector.extract_strided_slice %441 {offsets = [0, 24], sizes = [16, 8], strides = [1, 1]} : vector<16x32xf32> to vector<16x8xf32>
    %cst_195 = arith.constant dense<0.000000e+00> : vector<16x16xf32>
    %493 = tpu.matmul %490, %491, %cst_195 {dimension_numbers = #tpu.dot_dimension_numbers<[1], [1], [0], [0], [0, 0, 1, 0], [], []>} : vector<16x8xf32>, vector<16x8xf32>, vector<16x16xf32> -> vector<16x16xf32>
    %494 = arith.addf %493, %4 : vector<16x16xf32>
    %cst_196 = arith.constant dense<0xFF800000> : vector<16xf32>
    %495 = vector.multi_reduction <maximumf>, %494, %cst_196 [1] : vector<16x16xf32> to vector<16xf32>
    %496 = vector.shape_cast %495 : vector<16xf32> to vector<16x1xf32>
    %497 = vector.broadcast %496 : vector<16x1xf32> to vector<16x16xf32>
    %498 = arith.subf %494, %497 : vector<16x16xf32>
    %499 = math.exp %498 : vector<16x16xf32>
    %cst_197 = arith.constant dense<0.000000e+00> : vector<16xf32>
    %500 = vector.multi_reduction <add>, %499, %cst_197 [1] : vector<16x16xf32> to vector<16xf32>
    %501 = vector.shape_cast %500 : vector<16xf32> to vector<16x1xf32>
    %502 = tpu.reciprocal %501 {approx = true} : vector<16x1xf32> -> vector<16x1xf32>
    %503 = vector.broadcast %502 : vector<16x1xf32> to vector<16x16xf32>
    %504 = arith.mulf %499, %503 : vector<16x16xf32>
    %cst_198 = arith.constant dense<0.000000e+00> : vector<16x8xf32>
    %505 = tpu.matmul %504, %492, %cst_198 {dimension_numbers = #tpu.dot_dimension_numbers<[1], [0], [0], [1], [0, 0, 1, 1], [], []>} : vector<16x16xf32>, vector<16x8xf32>, vector<16x8xf32> -> vector<16x8xf32>
    %506 = tpu.concatenate %457, %473, %489, %505 in 1 : vector<16x8xf32>, vector<16x8xf32>, vector<16x8xf32>, vector<16x8xf32> -> vector<16x32xf32>
    %507 = arith.truncf %506 : vector<16x32xf32> to vector<16x32xbf16>
    %cst_199 = arith.constant dense<0.000000e+00> : vector<16x32xf32>
    %508 = tpu.matmul %507, %282, %cst_199 {dimension_numbers = #tpu.dot_dimension_numbers<[1], [0], [0], [1], [0, 0, 1, 1], [], []>} : vector<16x32xbf16>, vector<32x32xbf16>, vector<16x32xf32> -> vector<16x32xf32>
    %509 = vector.broadcast %294 : vector<1x32xf32> to vector<16x32xf32>
    %510 = arith.addf %508, %509 : vector<16x32xf32>
    %511 = arith.addf %409, %510 : vector<16x32xf32>
    %cst_200 = arith.constant dense<0.000000e+00> : vector<16xf32>
    %512 = vector.multi_reduction <add>, %511, %cst_200 [1] : vector<16x32xf32> to vector<16xf32>
    %513 = vector.shape_cast %512 : vector<16xf32> to vector<16x1xf32>
    %cst_201 = arith.constant 3.200000e+01 : f32
    %514 = vector.broadcast %cst_201 : f32 to vector<16x1xf32>
    %515 = arith.divf %513, %514 : vector<16x1xf32>
    %516 = vector.broadcast %515 : vector<16x1xf32> to vector<16x32xf32>
    %517 = arith.subf %511, %516 : vector<16x32xf32>
    %518 = arith.mulf %517, %517 : vector<16x32xf32>
    %cst_202 = arith.constant dense<0.000000e+00> : vector<16xf32>
    %519 = vector.multi_reduction <add>, %518, %cst_202 [1] : vector<16x32xf32> to vector<16xf32>
    %520 = vector.shape_cast %519 : vector<16xf32> to vector<16x1xf32>
    %cst_203 = arith.constant 3.200000e+01 : f32
    %521 = vector.broadcast %cst_203 : f32 to vector<16x1xf32>
    %522 = arith.divf %520, %521 : vector<16x1xf32>
    %523 = vector.broadcast %515 : vector<16x1xf32> to vector<16x32xf32>
    %524 = arith.subf %511, %523 : vector<16x32xf32>
    %cst_204 = arith.constant 9.99999974E-6 : f32
    %525 = vector.broadcast %cst_204 : f32 to vector<16x1xf32>
    %526 = arith.addf %522, %525 : vector<16x1xf32>
    %527 = math.rsqrt %526 : vector<16x1xf32>
    %528 = vector.broadcast %527 : vector<16x1xf32> to vector<16x32xf32>
    %529 = arith.mulf %524, %528 : vector<16x32xf32>
    %530 = vector.broadcast %304 : vector<1x32xf32> to vector<16x32xf32>
    %531 = arith.mulf %529, %530 : vector<16x32xf32>
    %532 = vector.broadcast %310 : vector<1x32xf32> to vector<16x32xf32>
    %533 = arith.addf %531, %532 : vector<16x32xf32>
    %534 = arith.truncf %533 : vector<16x32xf32> to vector<16x32xbf16>
    %cst_205 = arith.constant dense<0.000000e+00> : vector<16x64xf32>
    %535 = tpu.matmul %534, %284, %cst_205 {dimension_numbers = #tpu.dot_dimension_numbers<[1], [0], [0], [1], [0, 0, 1, 1], [], []>} : vector<16x32xbf16>, vector<32x64xbf16>, vector<16x64xf32> -> vector<16x64xf32>
    %536 = vector.broadcast %296 : vector<1x64xf32> to vector<16x64xf32>
    %537 = arith.addf %535, %536 : vector<16x64xf32>
    %cst_206 = arith.constant 0.000000e+00 : f32
    %538 = vector.broadcast %cst_206 : f32 to vector<16x64xf32>
    %539 = arith.maximumf %537, %538 : vector<16x64xf32>
    %540 = arith.truncf %539 : vector<16x64xf32> to vector<16x64xbf16>
    %cst_207 = arith.constant dense<0.000000e+00> : vector<16x32xf32>
    %541 = tpu.matmul %540, %286, %cst_207 {dimension_numbers = #tpu.dot_dimension_numbers<[1], [0], [0], [1], [0, 0, 1, 1], [], []>} : vector<16x64xbf16>, vector<64x32xbf16>, vector<16x32xf32> -> vector<16x32xf32>
    %542 = vector.broadcast %298 : vector<1x32xf32> to vector<16x32xf32>
    %543 = arith.addf %541, %542 : vector<16x32xf32>
    %544 = arith.addf %511, %543 : vector<16x32xf32>
    %c0_208 = arith.constant 0 : index
    %c0_209 = arith.constant 0 : index
    %545 = vector.load %arg6[%c0_208, %c0_209] : memref<16x32xf32, #tpu.memory_space<vmem>>, vector<16x32xf32>
    tpu.vector_store %arg6[%c0_208, %c0_209], %544 {strides = array<i32>} : memref<16x32xf32, #tpu.memory_space<vmem>>, vector<16x32xf32>,
    return
  }
}

</mosaic_0001>

<bundles_post_ra>
// kernel: tpu_custom_call.1
= control target key start
LH: loop header
LB: loop body
LE: loop exit
PB: predicated region body
PF: predicated region fallthrough
CT: control target
= control target key end

     0   :  { %11 = vsyncpa [#allocation3], 0  ;;  %s6864_s0 = inlined_call_operand.hbm [shape: f32[16,32], index: 0, kind: input, shape index: {}]   ;;  %s6865_s1 = inlined_call_operand.hbm [shape: f32[16,32], index: 1, kind: input, shape index: {}]   ;;  %s6866_s2 = inlined_call_operand.hbm [shape: f32[16,16], index: 2, kind: input, shape index: {}]   ;;  %s6867_s3 = inlined_call_operand.hbm [shape: f32[16,16], index: 3, kind: input, shape index: {}]   ;;  %s6868_s4 = inlined_call_operand.hbm [shape: bf16[2,224,128], index: 4, kind: input, shape index: {}]   ;;  %s6869_s5 = inlined_call_operand.hbm [shape: f32[2,16,128], index: 5, kind: input, shape index: {}]   ;;  %s6870_s6 = inlined_call_operand.hbm [shape: f32[16,32], index: 6, kind: output, shape index: {}]  }
   0x1   :  { %12 = vsyncpa [#allocation6], 0 }
   0x2   :  { %13 = vsyncpa [#allocation9], 0 }
   0x3   :  { %14 = vsyncpa [#allocation12], 0 }
   0x4   :  { %15 = vsyncpa [#allocation4], 0  ;;  %s6060_s21 = smov [#allocation5]   ;;  %s6061_s23 = smov [#allocation8]  }
   0x5   :  { %s33_s22 = sshll.u32 %s6060_s21, 4  ;;  %s57_s24 = sshll.u32 %s6061_s23, 4  ;;  %s34_s22 = int_to_ptr.vmem [resolvable:$true] %s33_s22  ;;  %s6120_s24 = int_to_ptr.vmem [resolvable:$true] %s57_s24 }
   0x6   :  { %s5896_s27 = scalar_lea.hbm %s6865_s1, 256 }
   0x7   :  { %p5897_p0 = scmp.ne.s32.totalorder %s6865_s1, %s5896_s27  ;;  %p5900_p1 = scmp.lt.u32.totalorder %s5896_s27, %s6865_s1 }
   0x9   :  { %p5902_p2 = pnand %p5900_p1, %p5897_p0 }
   0xb   :  { %5905 = shalt.err (!%p5902_p2)
}
   0xc   :  { %s5906_s8 = scalar_lea.vmem %s34_s22, 256  ;;  %p5911_p4 = scmp.lt.s32.totalorder %s34_s22, %s34_s22 }
   0xd   :  { %p5907_p3 = scmp.ne.s32.totalorder %s34_s22, %s5906_s8  ;;  %p5912_p5 = scmp.lt.s32.totalorder %s5906_s8, %s5906_s8 }
   0xf   :  { %p5913_p6 = por %p5912_p5, %p5911_p4 }
  0x11   :  { %p5914_p7 = pnand %p5913_p6, %p5907_p3 }
  0x13   :  { %5917 = shalt.err (!%p5914_p7)
}
  0x14   :  { %s6062_s9 = smov 128   ;;  %s6063_s10 = smov 8  }
  0x15   :  { %39 = dma.hbm_to_vmem [thread:$0]  %s6865_s1, 256, %s34_s22, [#allocation6], %s6062_s9, %s6062_s9, %s6063_s10  }
  0x16   :  { %s5918_s15 = scalar_lea.hbm %s6867_s3, 256 }
  0x17   :  { %p5919_p8 = scmp.ne.s32.totalorder %s6867_s3, %s5918_s15  ;;  %p5922_p9 = scmp.lt.u32.totalorder %s5918_s15, %s6867_s3 }
  0x19   :  { %p5924_p10 = pnand %p5922_p9, %p5919_p8 }
  0x1b   :  { %5927 = shalt.err (!%p5924_p10)
}
  0x1c   :  { %s5928_s20 = scalar_lea.vmem %s6120_s24, 256  ;;  %p5933_p12 = scmp.lt.s32.totalorder %s6120_s24, %s6120_s24 }
  0x1d   :  { %p5929_p11 = scmp.ne.s32.totalorder %s6120_s24, %s5928_s20  ;;  %p5934_p13 = scmp.lt.s32.totalorder %s5928_s20, %s5928_s20 }
  0x1f   :  { %p5935_p0 = por %p5934_p13, %p5933_p12 }
  0x21   :  { %p5936_p1 = pnand %p5935_p0, %p5929_p11 }
  0x23   :  { %5939 = shalt.err (!%p5936_p1)
}
  0x24   :  { %63 = dma.hbm_to_vmem [thread:$0]  %s6867_s3, 256, %s6120_s24, [#allocation9], %s6062_s9, %s6062_s9, %s6063_s10  }
  0x25   :  { %s6064_s22 = smov [#allocation2]   ;;  %s6065_s25 = smov [#allocation7]  }
  0x26   :  { %s21_s23 = sshll.u32 %s6064_s22, 4  ;;  %s45_s26 = sshll.u32 %s6065_s25, 4  ;;  %s22_s23 = int_to_ptr.vmem [resolvable:$true] %s21_s23  ;;  %s6157_s26 = int_to_ptr.vmem [resolvable:$true] %s45_s26 }
  0x27   :  { %s5940_s29 = scalar_lea.hbm %s6864_s0, 256 }
  0x28   :  { %p5941_p2 = scmp.ne.s32.totalorder %s6864_s0, %s5940_s29  ;;  %p5944_p3 = scmp.lt.u32.totalorder %s5940_s29, %s6864_s0 }
  0x2a   :  { %p5946_p4 = pnand %p5944_p3, %p5941_p2 }
  0x2c   :  { %5949 = shalt.err (!%p5946_p4)
}
  0x2d   :  { %s5950_s3 = scalar_lea.vmem %s22_s23, 256  ;;  %p5955_p6 = scmp.lt.s32.totalorder %s22_s23, %s22_s23 }
  0x2e   :  { %p5951_p5 = scmp.ne.s32.totalorder %s22_s23, %s5950_s3  ;;  %p5956_p7 = scmp.lt.s32.totalorder %s5950_s3, %s5950_s3 }
  0x30   :  { %p5957_p8 = por %p5956_p7, %p5955_p6 }
  0x32   :  { %p5958_p9 = pnand %p5957_p8, %p5951_p5 }
  0x34   :  { %5961 = shalt.err (!%p5958_p9)
}
  0x35   :  { %27 = dma.hbm_to_vmem [thread:$0]  %s6864_s0, 256, %s22_s23, [#allocation3], %s6062_s9, %s6062_s9, %s6063_s10  }
  0x36   :  { %s5962_s15 = scalar_lea.hbm %s6866_s2, 256 }
  0x37   :  { %p5963_p10 = scmp.ne.s32.totalorder %s6866_s2, %s5962_s15  ;;  %p5966_p11 = scmp.lt.u32.totalorder %s5962_s15, %s6866_s2 }
  0x39   :  { %p5968_p12 = pnand %p5966_p11, %p5963_p10 }
  0x3b   :  { %5971 = shalt.err (!%p5968_p12)
}
  0x3c   :  { %s5972_s20 = scalar_lea.vmem %s6157_s26, 256  ;;  %p5977_p0 = scmp.lt.s32.totalorder %s6157_s26, %s6157_s26 }
  0x3d   :  { %p5973_p13 = scmp.ne.s32.totalorder %s6157_s26, %s5972_s20  ;;  %p5978_p1 = scmp.lt.s32.totalorder %s5972_s20, %s5972_s20 }
  0x3f   :  { %p5979_p2 = por %p5978_p1, %p5977_p0 }
  0x41   :  { %p5980_p3 = pnand %p5979_p2, %p5973_p13 }
  0x43   :  { %5983 = shalt.err (!%p5980_p3)
}
  0x44   :  { %51 = dma.hbm_to_vmem [thread:$0]  %s6866_s2, 256, %s6157_s26, [#allocation6], %s6062_s9, %s6062_s9, %s6063_s10  }
  0x45   :  { %s6066_s21 = smov [#allocation10]   ;;  %s5984_s27 = scalar_lea.hbm %s6868_s4, 3584 }
  0x46   :  { %s69_s22 = sshll.u32 %s6066_s21, 4  ;;  %p5985_p4 = scmp.ne.s32.totalorder %s6868_s4, %s5984_s27  ;;  %s70_s22 = int_to_ptr.vmem [resolvable:$true] %s69_s22 }
  0x47   :  { %p5988_p5 = scmp.lt.u32.totalorder %s5984_s27, %s6868_s4 }
  0x49   :  { %p5990_p6 = pnand %p5988_p5, %p5985_p4 }
  0x4b   :  { %5993 = shalt.err (!%p5990_p6)
}
  0x4c   :  { %s5994_s8 = scalar_lea.vmem %s70_s22, 3584  ;;  %p5999_p8 = scmp.lt.s32.totalorder %s70_s22, %s70_s22 }
  0x4d   :  { %p5995_p7 = scmp.ne.s32.totalorder %s70_s22, %s5994_s8  ;;  %p6000_p9 = scmp.lt.s32.totalorder %s5994_s8, %s5994_s8 }
  0x4f   :  { %p6001_p10 = por %p6000_p9, %p5999_p8 }
  0x51   :  { %p6002_p11 = pnand %p6001_p10, %p5995_p7 }
  0x53   :  { %6005 = shalt.err (!%p6002_p11)
}
  0x54   :  { %s6067_s2 = smov 64   ;;  %s6068_s26 = smov 4  }
  0x55   :  { %75 = dma.hbm_to_vmem [thread:$0]  %s6868_s4, 3584, %s70_s22, [#allocation9], %s6067_s2, %s6067_s2, %s6068_s26  }
  0x56   :  { %s6069_s24 = smov [#allocation11]   ;;  %s6006_s15 = scalar_lea.hbm %s6869_s5, 512 }
  0x57   :  { %s81_s12 = sshll.u32 %s6069_s24, 4  ;;  %p6007_p12 = scmp.ne.s32.totalorder %s6869_s5, %s6006_s15  ;;  %s82_s12 = int_to_ptr.vmem [resolvable:$true] %s81_s12 }
  0x58   :  { %p6010_p13 = scmp.lt.u32.totalorder %s6006_s15, %s6869_s5 }
  0x5a   :  { %p6012_p0 = pnand %p6010_p13, %p6007_p12 }
  0x5c   :  { %6015 = shalt.err (!%p6012_p0)
}
  0x5d   :  { %s6016_s20 = scalar_lea.vmem %s82_s12, 512  ;;  %p6021_p2 = scmp.lt.s32.totalorder %s82_s12, %s82_s12 }
  0x5e   :  { %p6017_p1 = scmp.ne.s32.totalorder %s82_s12, %s6016_s20  ;;  %p6022_p3 = scmp.lt.s32.totalorder %s6016_s20, %s6016_s20 }
  0x60   :  { %p6023_p4 = por %p6022_p3, %p6021_p2 }
  0x62   :  { %p6024_p5 = pnand %p6023_p4, %p6017_p1 }
  0x64   :  { %6027 = shalt.err (!%p6024_p5)
}
  0x65   :  { %87 = dma.hbm_to_vmem [thread:$0]  %s6869_s5, 512, %s82_s12, [#allocation12], %s6062_s9, %s6062_s9, %s6063_s10  }
  0x66   :  { %6050 = dma.done.wait [#allocation3], 256  }
  0x67   :  { %6051 = vsyncadd [#allocation3], 4294967040 }
  0x68   :  { %6052 = dma.done.wait [#allocation6], 512  }
  0x69   :  { %6053 = vsyncadd [#allocation6], 4294966784 }
  0x6a   :  { %6054 = dma.done.wait [#allocation9], 3840  }
  0x6b   :  { %6055 = vsyncadd [#allocation9], 4294963456 }
  0x6c   :  { %6056 = dma.done.wait [#allocation12], 512  }
  0x6d   :  { %6057 = vsyncadd [#allocation12], 4294966784  ;;  %vm156_vm0 = vcmask 261120   ;;  %v6223_v0 = vld [vmem:[#allocation2] sm:$0xff]  ;;  %v6225_v1 = vld [vmem:[#allocation2 + $0x8] sm:$0xff]  ;;  %v6070_v15 = vmov 0.0  }
  0x6e   :  { %v157_v2 = vsel %vm156_vm0, %v6223_v0, 0.0  ;;  %v160_v3 = vsel %vm156_vm0, %v6225_v1, 0.0  ;;  %v5712_v14 = vld [vmem:[#allocation10] sm:$0xff]   ;;  %4963 = vmatprep.subr.bf16.mxu1 %v6070_v15  ;;  %vm6071_vm1 = vmmov 0   ;;  %v5713_v16 = vld [vmem:[#allocation10 + $0x8] sm:$0xff]   ;;  %vm263_vm2 = vcmask 64512  }
  0x6f   :  { %158 = vadd.xlane.f32.xlu0 %v157_v2  ;;  %4967 = vmatprep.mubr.msk.bf16.mxu1 %vm6071_vm1, %v6070_v15  ;;  %v4627_v25 = vld [vmem:[#allocation11 + $0x6] ss:$0 sm:$0xff]  ;;  %v4628_v29 = vld [vmem:[#allocation11 + $0x9] ss:$0 sm:$0xff]  ;;  %v4629_v34 = vld [vmem:[#allocation11] ss:$0 sm:$0xff] }
  0x70   :  { %4964 = vmatpush3.bf16.msra.mxu1 %v5712_v14  ;;  %s6072_s5 = smov 88   ;;  %s6073_s1 = smov 96   ;;  %vm6266_vm3 = vmpackc.low %vm263_vm2, %vm263_vm2  ;;  %v6288_v59 = vld [vmem:[#allocation7 + $0x8] sm:$0xff]  ;;  %v6290_v60 = vld [vmem:[#allocation7] sm:$0xff]  ;;  %vm347_vm4 = vcmask 130048   ;;  %vm1085_vm5 = vcmask 195584  }
  0x71   :  { %4965 = vmatprep.subr.bf16.mxu1 %v6070_v15  ;;  %s6074_s21 = smov 120   ;;  %s6075_s22 = smov 80   ;;  %vm2317_vm6 = vcmask 523264  }
  0x72   :  { %s6076_s23 = smov 112   ;;  %s6077_s25 = smov 48  }
  0x73   :  { %161 = vadd.xlane.f32.xlu0 %v160_v3  ;;  %s6078_s27 = smov 72   ;;  %s6079_s28 = smov 56  }
  0x74   :  { %4966 = vmatpush3.bf16.msra.mxu1 %v5713_v16  ;;  %s6080_s29 = smov 104   ;;  %s6081_s30 = smov 40  }
  0x75   :  { %s6082_s7 = smov 16   ;;  %s6083_s8 = smov 24  }
  0xfc   :  { %v159_v4 = vpop.xlane.xlu0 %158 }
  0xfd   :  { %v164_v5 = vmul.f32 0.03125, %v159_v4 }
  0xff   :  { %v166_v6 = vsub.f32 %v6223_v0, %v164_v5 }
 0x100   :  { %v162_v7 = vpop.xlane.xlu0 %161 }
 0x101   :  { %v165_v8 = vmul.f32 0.03125, %v162_v7  ;;  %v168_v9 = vmul.f32 %v166_v6, %v166_v6 }
 0x103   :  { %v167_v10 = vsub.f32 %v6225_v1, %v165_v8  ;;  %v170_v11 = vsel %vm156_vm0, %v168_v9, 0.0 }
 0x104   :  { %171 = vadd.xlane.f32.xlu1 %v170_v11 }
 0x105   :  { %v169_v12 = vmul.f32 %v167_v10, %v167_v10 }
 0x107   :  { %v173_v13 = vsel %vm156_vm0, %v169_v12, 0.0 }
 0x108   :  { %174 = vadd.xlane.f32.xlu1 %v173_v13 }
 0x191   :  { %v172_v17 = vpop.xlane.xlu1 %171 }
 0x192   :  { %v176_v18 = vmul.f32 0.03125, %v172_v17 }
 0x194   :  { %v178_v19 = vadd.f32 1e-05, %v176_v18 }
 0x195   :  { %v175_v20 = vpop.xlane.xlu1 %174 }
 0x196   :  { %5740 = vrsqrt.f32 %v178_v19  ;;  %v177_v21 = vmul.f32 0.03125, %v175_v20 }
 0x198   :  { %v179_v22 = vadd.f32 1e-05, %v177_v21 }
 0x19a   :  { %5742 = vrsqrt.f32 %v179_v22 }
 0x1a0   :  { %v5741_v23 = vpop.eup %5740 }
 0x1a1   :  { %v182_v24 = vmul.f32 %v5741_v23, %v166_v6 }
 0x1a3   :  { %v188_v28 = vmul.f32 %v4627_v25, %v182_v24 }
 0x1a4   :  { %v5743_v26 = vpop.eup %5742 }
 0x1a5   :  { %v183_v27 = vmul.f32 %v5743_v26, %v167_v10  ;;  %v194_v31 = vadd.f32 %v4628_v29, %v188_v28 }
 0x1a7   :  { %v189_v30 = vmul.f32 %v4627_v25, %v183_v27 }
 0x1a9   :  { %v195_v32 = vadd.f32 %v4628_v29, %v189_v30 }
 0x1ab   :  { %v196_v33 = vpack.c.bf16 %v195_v32, %v194_v31 }
 0x1ad   :  { %4968 = vmatmul.mubr.msk.bf16.vlgmr.msra.gmra.mrb[0].mxu1 %vm156_vm0, %v196_v33 }
 0x280   :  { %v250_v35 = vpop.f32.mrb[0].mxu1 }
 0x281   :  { %v6240_v36 = vadd.f32 %v4629_v34, %v250_v35  ;;  %v4969_v37 = vpop.f32.mrb[1].mxu1 }
 0x282   :  { %v253_v38 = vpop.f32.mrb[2].mxu1 }
 0x283   :  { %v6242_v39 = vadd.f32 %v4629_v34, %v253_v38  ;;  %v4970_v40 = vpop.f32.mrb[3].mxu1  ;;  %4975 = vmatprep.mubr.msk.f32.mxu1 %vm263_vm2, %v6240_v36 }
 0x285   :  { %v6248_v41 = vpack.i.bf16 %v6242_v39, %v6240_v36 }
 0x287   :  { %5498 = vrot.lane.b32.xlu1 %v6248_v41, %s6072_s5  ;;  %5493 = vrot.lane.b32.xlu0 %v6248_v41, %s6073_s1 }
 0x28b   :  { %457 = vrot.lane.b32.xlu1 %v6240_v36, %s6074_s21  ;;  %459 = vrot.lane.b32.xlu0 %v6242_v39, %s6074_s21 }
 0x28f   :  { %5503 = vrot.lane.b32.xlu1 %v6248_v41, %s6075_s22  ;;  %659 = vrot.lane.b32.xlu0 %v6242_v39, %s6076_s23 }
 0x293   :  { %657 = vrot.lane.b32.xlu1 %v6240_v36, %s6076_s23 }
 0x2f9   :  { %v5499_v42 = vpop.permute.xlu1 %5498  ;;  %v5494_v43 = vpop.permute.xlu0 %5493 }
 0x2fa   :  { %v5496_v44 = vunpack.i.h.bf16 %v5494_v43  ;;  %v5495_v45 = vunpack.i.l.bf16 %v5494_v43  ;;  %v5501_v46 = vunpack.i.h.bf16 %v5499_v42  ;;  %v5500_v47 = vunpack.i.l.bf16 %v5499_v42 }
 0x2fc   :  { %v5307_v49 = vpack.c.bf16 %v5496_v44, %v5495_v45  ;;  %v5317_v50 = vpack.c.bf16 %v5501_v46, %v5500_v47 }
 0x2fd   :  { %v458_v51 = vpop.permute.xlu1 %457  ;;  %v460_v57 = vpop.permute.xlu0 %459 }
 0x2fe   :  { %5309 = vmatprep.subr.msk.bf16.mxu1 %vm6266_vm3, %v5307_v49  ;;  %5319 = vmatprep.subr.msk.bf16.mxu0 %vm6266_vm3, %v5317_v50 }
 0x2ff   :  { %4989 = vmatprep.mubr.msk.f32.mxu0 %vm263_vm2, %v458_v51  ;;  %5312 = vmatpush3.bf16.xpose.msk.msra.mxu1 %vm6266_vm3, %v5307_v49 }
 0x300   :  { %5322 = vmatpush3.bf16.xpose.msk.msra.mxu0 %vm6266_vm3, %v5317_v50 }
 0x301   :  { %v5504_v52 = vpop.permute.xlu1 %5503  ;;  %v660_v58 = vpop.permute.xlu0 %659 }
 0x302   :  { %v5506_v53 = vunpack.i.h.bf16 %v5504_v52  ;;  %v5505_v54 = vunpack.i.l.bf16 %v5504_v52 }
 0x304   :  { %v5327_v55 = vpack.c.bf16 %v5506_v53, %v5505_v54 }
 0x305   :  { %v658_v56 = vpop.permute.xlu1 %657 }
 0x306   :  { %4976 = vmatmul.mubr.msk.f32.vlgmr.msra.gmra.mrb[4].mxu1 %vm263_vm2, %v6242_v39  ;;  %5329 = vmatprep.subr.msk.bf16.mxu0 %vm6266_vm3, %v5327_v55 }
 0x307   :  { %4990 = vmatmul.mubr.msk.f32.vlgmr.msra.gmra.mrb[0].mxu0 %vm263_vm2, %v460_v57 }
 0x308   :  { %5332 = vmatpush3.bf16.xpose.msk.msra.mxu0 %vm6266_vm3, %v5327_v55  ;;  %5003 = vmatprep.mubr.msk.f32.mxu0 %vm263_vm2, %v658_v56 }
 0x30f   :  { %5004 = vmatmul.mubr.msk.f32.vlgmr.msra.gmra.mrb[2].mxu0 %vm263_vm2, %v660_v58 }
 0x3d9   :  { %v4977_v61 = vpop.f32.mrb[4].mxu1 }
 0x3da   :  { %v344_v62 = vadd.f32 %v4977_v61, %v6288_v59  ;;  %v4991_v63 = vpop.f32.mrb[0].mxu0  ;;  %v338_v2 = vpop.f32.mrb[5].mxu1 }
 0x3db   :  { %v339_v3 = vadd.f32 %v338_v2, %v6290_v60  ;;  %v539_v4 = vpop.f32.mrb[1].mxu0  ;;  %v545_v8 = vadd.f32 %v4991_v63, %v6288_v59 }
 0x3dc   :  { %v540_v5 = vadd.f32 %v539_v4, %v6290_v60  ;;  %v351_v6 = vsel %vm347_vm4, %v344_v62, -inf }
 0x3dd   :  { %352 = vmax.xlane.f32.xlu0 %v351_v6  ;;  %v348_v7 = vsel %vm347_vm4, %v339_v3, -inf  ;;  %v551_v14 = vsel %vm347_vm4, %v545_v8, -inf }
 0x3de   :  { %349 = vmax.xlane.f32.xlu1 %v348_v7  ;;  %v548_v9 = vsel %vm347_vm4, %v540_v5, -inf }
 0x3e1   :  { %549 = vmax.xlane.f32.xlu0 %v548_v9 }
 0x3e2   :  { %v5005_v10 = vpop.f32.mrb[2].mxu0 }
 0x3e3   :  { %v739_v11 = vpop.f32.mrb[3].mxu0  ;;  %v745_v12 = vadd.f32 %v5005_v10, %v6288_v59 }
 0x3e4   :  { %v740_v13 = vadd.f32 %v739_v11, %v6290_v60 }
 0x3e5   :  { %552 = vmax.xlane.f32.xlu0 %v551_v14  ;;  %v751_v17 = vsel %vm347_vm4, %v745_v12, -inf }
 0x3e6   :  { %v748_v16 = vsel %vm347_vm4, %v740_v13, -inf }
 0x3e7   :  { %749 = vmax.xlane.f32.xlu1 %v748_v16 }
 0x3e9   :  { %752 = vmax.xlane.f32.xlu0 %v751_v17 }
 0x3f8   :  { %5508 = vrot.lane.b32.xlu1 %v6248_v41, %s6067_s2 }
 0x46a   :  { %v353_v18 = vpop.xlane.xlu0 %352 }
 0x46b   :  { %v355_v19 = vsub.f32 %v344_v62, %v353_v18  ;;  %v350_v20 = vpop.xlane.xlu1 %349 }
 0x46c   :  { %v354_v21 = vsub.f32 %v339_v3, %v350_v20 }
 0x46d   :  { %v358_v22 = vmul.f32 1.442695, %v355_v19 }
 0x46e   :  { %v356_v23 = vmul.f32 1.442695, %v354_v21  ;;  %v550_v24 = vpop.xlane.xlu0 %549 }
 0x46f   :  { %5744 = vpow2.f32 %v358_v22  ;;  %v554_v25 = vsub.f32 %v540_v5, %v550_v24 }
 0x470   :  { %5746 = vpow2.f32 %v356_v23 }
 0x471   :  { %v556_v26 = vmul.f32 1.442695, %v554_v25 }
 0x472   :  { %v553_v27 = vpop.xlane.xlu0 %552 }
 0x473   :  { %5748 = vpow2.f32 %v556_v26  ;;  %v555_v28 = vsub.f32 %v545_v8, %v553_v27 }
 0x474   :  { %v750_v29 = vpop.xlane.xlu1 %749 }
 0x475   :  { %v558_v30 = vmul.f32 1.442695, %v555_v28  ;;  %v754_v52 = vsub.f32 %v740_v13, %v750_v29 }
 0x476   :  { %v753_v31 = vpop.xlane.xlu0 %752 }
 0x477   :  { %5750 = vpow2.f32 %v558_v30  ;;  %v755_v32 = vsub.f32 %v745_v12, %v753_v31  ;;  %v756_v53 = vmul.f32 1.442695, %v754_v52 }
 0x478   :  { %v5509_v33 = vpop.permute.xlu1 %5508 }
 0x479   :  { %v5745_v34 = vpop.eup %5744  ;;  %v758_v35 = vmul.f32 1.442695, %v755_v32  ;;  %v5511_v37 = vunpack.i.h.bf16 %v5509_v33  ;;  %v5510_v38 = vunpack.i.l.bf16 %v5509_v33 }
 0x47a   :  { %v5747_v40 = vpop.eup %5746  ;;  %v363_v42 = vsel %vm347_vm4, %v5745_v34, 0.0 }
 0x47b   :  { %5752 = vpow2.f32 %v758_v35  ;;  %364 = vadd.xlane.f32.xlu0 %v363_v42  ;;  %v360_v43 = vsel %vm347_vm4, %v5747_v40, 0.0  ;;  %v5313_v44 = vpack.c.bf16 %v5511_v37, %v5510_v38 }
 0x47c   :  { %361 = vadd.xlane.f32.xlu1 %v360_v43  ;;  %5754 = vpow2.f32 %v756_v53 }
 0x47d   :  { %v5749_v45 = vpop.eup %5748  ;;  %5314 = vmatprep.subr.bf16.mxu1 %v5313_v44 }
 0x47e   :  { %5316 = vmatpush3.bf16.msra.mxu1 %v5313_v44  ;;  %v560_v46 = vsel %vm347_vm4, %v5749_v45, 0.0 }
 0x480   :  { %561 = vadd.xlane.f32.xlu1 %v560_v46 }
 0x481   :  { %v5751_v47 = vpop.eup %5750 }
 0x482   :  { %v563_v49 = vsel %vm347_vm4, %v5751_v47, 0.0 }
 0x483   :  { %564 = vadd.xlane.f32.xlu0 %v563_v49 }
 0x485   :  { %v5753_v50 = vpop.eup %5752 }
 0x486   :  { %v763_v51 = vsel %vm347_vm4, %v5753_v50, 0.0  ;;  %v5755_v54 = vpop.eup %5754 }
 0x487   :  { %764 = vadd.xlane.f32.xlu0 %v763_v51  ;;  %v760_v55 = vsel %vm347_vm4, %v5755_v54, 0.0 }
 0x491   :  { %5518 = vrot.lane.b32.xlu1 %v6248_v41, %s6077_s25 }
 0x495   :  { %5523 = vrot.lane.b32.xlu1 %v6248_v41, %s6078_s27 }
 0x49d   :  { %5513 = vrot.lane.b32.xlu0 %v6248_v41, %s6079_s28 }
 0x4a1   :  { %859 = vrot.lane.b32.xlu0 %v6242_v39, %s6080_s29 }
 0x4b9   :  { %761 = vadd.xlane.f32.xlu1 %v760_v55 }
 0x4ca   :  { %857 = vrot.lane.b32.xlu1 %v6240_v36, %s6080_s29 }
 0x508   :  { %v365_v56 = vpop.xlane.xlu0 %364 }
 0x509   :  { %5756 = vrcp.f32 %v365_v56  ;;  %v362_v57 = vpop.xlane.xlu1 %361 }
 0x50a   :  { %5758 = vrcp.f32 %v362_v57 }
 0x50d   :  { %v562_v58 = vpop.xlane.xlu1 %561 }
 0x50e   :  { %5760 = vrcp.f32 %v562_v58 }
 0x510   :  { %v565_v61 = vpop.xlane.xlu0 %564 }
 0x511   :  { %5762 = vrcp.f32 %v565_v61  ;;  %v5519_v63 = vpop.permute.xlu1 %5518 }
 0x512   :  { %v5521_v6 = vunpack.i.h.bf16 %v5519_v63  ;;  %v5520_v36 = vunpack.i.l.bf16 %v5519_v63  ;;  %v5714_v63 = vld [vmem:[#allocation10 + $0x20] sm:$0xff]  }
 0x513   :  { %v5757_v62 = vpop.eup %5756 }
 0x514   :  { %v5759_v39 = vpop.eup %5758  ;;  %v765_v2 = vpop.xlane.xlu0 %764  ;;  %v369_v4 = vmul.f32 %v5757_v62, %v5745_v34  ;;  %v5333_v17 = vpack.c.bf16 %v5521_v6, %v5520_v36 }
 0x515   :  { %v368_v3 = vmul.f32 %v5759_v39, %v5747_v40  ;;  %v5524_v11 = vpop.permute.xlu1 %5523  ;;  %5764 = vrcp.f32 %v765_v2  ;;  %v5715_v2 = vld [vmem:[#allocation10 + $0x28] sm:$0xff]  }
 0x516   :  { %v5526_v14 = vunpack.i.h.bf16 %v5524_v11  ;;  %v5525_v16 = vunpack.i.l.bf16 %v5524_v11 }
 0x517   :  { %4982 = vmatprep.mubr.msk.f32.mxu1 %vm347_vm4, %v368_v3 }
 0x518   :  { %v5761_v5 = vpop.eup %5760  ;;  %v5514_v7 = vpop.permute.xlu0 %5513  ;;  %4983 = vmatmul.mubr.msk.f32.vlgmr.msra.gmra.mrb[6].mxu1 %vm347_vm4, %v369_v4  ;;  %v5337_v19 = vpack.c.bf16 %v5526_v14, %v5525_v16 }
 0x519   :  { %v5516_v8 = vunpack.i.h.bf16 %v5514_v7  ;;  %v5515_v9 = vunpack.i.l.bf16 %v5514_v7  ;;  %v568_v10 = vmul.f32 %v5761_v5, %v5749_v45 }
 0x51b   :  { %4996 = vmatprep.mubr.msk.f32.mxu1 %vm347_vm4, %v568_v10  ;;  %v5323_v12 = vpack.c.bf16 %v5516_v8, %v5515_v9  ;;  %v5763_v13 = vpop.eup %5762 }
 0x51c   :  { %v569_v18 = vmul.f32 %v5763_v13, %v5751_v47  ;;  %v860_v26 = vpop.permute.xlu0 %859 }
 0x51d   :  { %5324 = vmatprep.subr.bf16.mxu1 %v5323_v12 }
 0x51e   :  { %5326 = vmatpush3.bf16.msra.mxu1 %v5323_v12 }
 0x51f   :  { %5334 = vmatprep.subr.bf16.mxu1 %v5333_v17  ;;  %v5765_v21 = vpop.eup %5764 }
 0x520   :  { %v769_v24 = vmul.f32 %v5765_v21, %v5753_v50 }
 0x521   :  { %4997 = vmatmul.mubr.msk.f32.vlgmr.msra.gmra.mrb[8].mxu1 %vm347_vm4, %v569_v18 }
 0x522   :  { %5336 = vmatpush3.bf16.msra.mxu1 %v5333_v17 }
 0x523   :  { %5339 = vmatprep.subr.msk.bf16.mxu1 %vm6266_vm3, %v5337_v19 }
 0x546   :  { %v762_v20 = vpop.xlane.xlu1 %761 }
 0x547   :  { %5766 = vrcp.f32 %v762_v20 }
 0x54a   :  { %v858_v25 = vpop.permute.xlu1 %857 }
 0x551   :  { %v5767_v22 = vpop.eup %5766 }
 0x552   :  { %v768_v23 = vmul.f32 %v5767_v22, %v5755_v54  ;;  %v4657_v22 = vld [vmem:[#allocation11 + $0x2] ss:$0 sm:$0xff] }
 0x554   :  { %5010 = vmatprep.mubr.msk.f32.mxu1 %vm347_vm4, %v768_v23 }
 0x555   :  { %5011 = vmatmul.mubr.msk.f32.vlgmr.msra.gmra.mrb[10].mxu1 %vm347_vm4, %v769_v24 }
 0x556   :  { %5342 = vmatpush3.bf16.xpose.msk.msra.mxu1 %vm6266_vm3, %v5337_v19  ;;  %5017 = vmatprep.mubr.msk.f32.mxu1 %vm263_vm2, %v858_v25 }
 0x557   :  { %5035 = vmatprep.subr.bf16.mxu1 %v6070_v15 }
 0x55d   :  { %5018 = vmatmul.mubr.msk.f32.vlgmr.msra.gmra.mrb[12].mxu1 %vm263_vm2, %v860_v26 }
 0x55e   :  { %5039 = vmatprep.mubr.msk.bf16.mxu1 %vm6071_vm1, %v6070_v15 }
 0x5eb   :  { %v6337_v27 = vpop.f32.mrb[6].mxu1 }
 0x5ec   :  { %v6339_v28 = vpop.f32.mrb[7].mxu1 }
 0x5f4   :  { %v4998_v29 = vpop.f32.mrb[8].mxu1 }
 0x5f5   :  { %v648_v30 = vpop.f32.mrb[9].mxu1 }
 0x5f6   :  { %v5532_v31 = vpack.i.bf16 %v4998_v29, %v648_v30 }
 0x628   :  { %v5012_v32 = vpop.f32.mrb[10].mxu1 }
 0x629   :  { %v848_v33 = vpop.f32.mrb[11].mxu1 }
 0x62a   :  { %v5537_v34 = vpack.i.bf16 %v5012_v32, %v848_v33  ;;  %v5716_v33 = vld [vmem:[#allocation10 + $0x10] sm:$0xff]  }
 0x62b   :  { %5036 = vmatpush3.bf16.msra.mxu1 %v5716_v33 }
 0x62c   :  { %5037 = vmatprep.subr.bf16.mxu1 %v6070_v15 }
 0x630   :  { %v5019_v35 = vpop.f32.mrb[12].mxu1 }
 0x631   :  { %v945_v37 = vadd.f32 %v5019_v35, %v6288_v59  ;;  %v939_v38 = vpop.f32.mrb[13].mxu1  ;;  %v109_v35 = vld [vmem:[#allocation5] sm:$0xff] }
 0x632   :  { %v940_v40 = vadd.f32 %v939_v38, %v6290_v60 }
 0x633   :  { %v951_v42 = vsel %vm347_vm4, %v945_v37, -inf }
 0x634   :  { %952 = vmax.xlane.f32.xlu0 %v951_v42  ;;  %v948_v43 = vsel %vm347_vm4, %v940_v40, -inf }
 0x635   :  { %949 = vmax.xlane.f32.xlu1 %v948_v43 }
 0x646   :  { %5528 = vrot.lane.b32.xlu1 %v6248_v41, %s6081_s30 }
 0x64a   :  { %5538 = vrot.lane.b32.xlu1 %v5537_v34, %s6082_s7  ;;  %v5717_v34 = vld [vmem:[#allocation10 + $0x18] sm:$0xff]  }
 0x64b   :  { %5038 = vmatpush3.bf16.msra.mxu1 %v5717_v34 }
 0x6c1   :  { %v953_v44 = vpop.xlane.xlu0 %952 }
 0x6c2   :  { %v955_v45 = vsub.f32 %v945_v37, %v953_v44  ;;  %v950_v46 = vpop.xlane.xlu1 %949  ;;  %v110_v37 = vld [vmem:[#allocation5 + $0x8] sm:$0xff] }
 0x6c3   :  { %v954_v59 = vsub.f32 %v940_v40, %v950_v46 }
 0x6c4   :  { %v958_v47 = vmul.f32 1.442695, %v955_v45 }
 0x6c5   :  { %v956_v49 = vmul.f32 1.442695, %v954_v59 }
 0x6c6   :  { %v5529_v60 = vpop.permute.xlu1 %5528 }
 0x6c7   :  { %5768 = vpow2.f32 %v956_v49  ;;  %v5531_v50 = vunpack.i.h.bf16 %v5529_v60  ;;  %v5530_v51 = vunpack.i.l.bf16 %v5529_v60  ;;  %v4663_v49 = vld [vmem:[#allocation11 + $0x1] ss:$0 sm:$0xff] }
 0x6c8   :  { %5770 = vpow2.f32 %v958_v47 }
 0x6c9   :  { %v5343_v52 = vpack.c.bf16 %v5531_v50, %v5530_v51 }
 0x6ca   :  { %v5539_v8 = vpop.permute.xlu1 %5538 }
 0x6cb   :  { %5344 = vmatprep.subr.bf16.mxu0 %v5343_v52  ;;  %v5541_v11 = vunpack.i.h.bf16 %v5539_v8  ;;  %v5540_v12 = vunpack.i.l.bf16 %v5539_v8 }
 0x6cc   :  { %5346 = vmatpush3.bf16.msra.mxu0 %v5343_v52 }
 0x6cd   :  { %5027 = vmatprep.subr.bf16.mxu0 %v6070_v15 }
 0x6d1   :  { %v5769_v41 = vpop.eup %5768 }
 0x6d2   :  { %v960_v53 = vsel %vm347_vm4, %v5769_v41, 0.0  ;;  %v5771_v54 = vpop.eup %5770 }
 0x6d3   :  { %961 = vadd.xlane.f32.xlu0 %v960_v53  ;;  %v963_v55 = vsel %vm347_vm4, %v5771_v54, 0.0 }
 0x6d7   :  { %964 = vadd.xlane.f32.xlu0 %v963_v55 }
 0x6ed   :  { %5533 = vrot.lane.b32.xlu0 %v5532_v31, %s6063_s10 }
 0x760   :  { %v962_v56 = vpop.xlane.xlu0 %961 }
 0x761   :  { %5772 = vrcp.f32 %v962_v56 }
 0x764   :  { %v965_v57 = vpop.xlane.xlu0 %964 }
 0x765   :  { %5774 = vrcp.f32 %v965_v57 }
 0x768   :  { %v5534_v6 = vpop.permute.xlu0 %5533 }
 0x769   :  { %v5536_v7 = vunpack.i.h.bf16 %v5534_v6  ;;  %v5535_v36 = vunpack.i.l.bf16 %v5534_v6  ;;  %v4662_v6 = vld [vmem:[#allocation11 + $0xa] ss:$0 sm:$0xff] }
 0x76b   :  { %v5773_v58 = vpop.eup %5772  ;;  %v1082_v9 = vsel %vm263_vm2, %v6337_v27, %v5536_v7  ;;  %v1081_v10 = vsel %vm263_vm2, %v6339_v28, %v5535_v36 }
 0x76c   :  { %v968_v61 = vmul.f32 %v5773_v58, %v5769_v41  ;;  %v1083_v17 = vsel %vm347_vm4, %v1081_v10, %v5540_v12  ;;  %v1084_v18 = vsel %vm347_vm4, %v1082_v9, %v5541_v11 }
 0x76e   :  { %5024 = vmatprep.mubr.msk.f32.mxu0 %vm347_vm4, %v968_v61 }
 0x76f   :  { %v5775_v62 = vpop.eup %5774 }
 0x770   :  { %v969_v39 = vmul.f32 %v5775_v62, %v5771_v54 }
 0x772   :  { %5025 = vmatmul.mubr.msk.f32.vlgmr.msra.gmra.mrb[4].mxu0 %vm347_vm4, %v969_v39 }
 0x773   :  { %5031 = vmatprep.mubr.msk.bf16.mxu0 %vm6071_vm1, %v6070_v15  ;;  %5028 = vmatpush3.bf16.msra.mxu0 %v5714_v63 }
 0x774   :  { %5029 = vmatprep.subr.bf16.mxu0 %v6070_v15 }
 0x777   :  { %5030 = vmatpush3.bf16.msra.mxu0 %v5715_v2  ;;  %v4661_v2 = vld [vmem:[#allocation11 + $0x7] ss:$0 sm:$0xff] }
 0x778   :  { %5043 = vmatprep.subr.bf16.mxu0 %v6070_v15 }
 0x845   :  { %v5026_v3 = vpop.f32.mrb[4].mxu0 }
 0x846   :  { %v1048_v4 = vpop.f32.mrb[5].mxu0 }
 0x847   :  { %v5542_v5 = vpack.i.bf16 %v5026_v3, %v1048_v4 }
 0x849   :  { %5543 = vrot.lane.b32.xlu1 %v5542_v5, %s6083_s8 }
 0x8bb   :  { %v5544_v13 = vpop.permute.xlu1 %5543 }
 0x8bc   :  { %v5546_v14 = vunpack.i.h.bf16 %v5544_v13  ;;  %v5545_v16 = vunpack.i.l.bf16 %v5544_v13 }
 0x8be   :  { %v1087_v19 = vsel %vm1085_vm5, %v1084_v18, %v5546_v14  ;;  %v1086_v20 = vsel %vm1085_vm5, %v1083_v17, %v5545_v16 }
 0x8bf   :  { %v1088_v21 = vpack.c.bf16 %v1087_v19, %v1086_v20 }
 0x8c1   :  { %5032 = vmatmul.mubr.msk.bf16.vlgmr.msra.gmra.mrb[8].mxu0 %vm156_vm0, %v1088_v21 }
 0x8c2   :  { %5047 = vmatprep.mubr.msk.bf16.mxu0 %vm6071_vm1, %v6070_v15  ;;  %5044 = vmatpush3.bf16.msra.mxu0 %v5716_v33 }
 0x8c3   :  { %5045 = vmatprep.subr.bf16.mxu0 %v6070_v15 }
 0x8c6   :  { %5046 = vmatpush3.bf16.msra.mxu0 %v5717_v34 }
 0x994   :  { %v1142_v23 = vpop.f32.mrb[8].mxu0 }
 0x995   :  { %v1143_v24 = vadd.f32 %v4657_v22, %v1142_v23  ;;  %v5033_v25 = vpop.f32.mrb[9].mxu0 }
 0x996   :  { %v1145_v26 = vpop.f32.mrb[10].mxu0 }
 0x997   :  { %v6371_v27 = vadd.f32 %v1143_v24, %v6223_v0  ;;  %v1146_v28 = vadd.f32 %v4657_v22, %v1145_v26  ;;  %v5034_v29 = vpop.f32.mrb[11].mxu0  ;;  %v6382_v0 = vpack.c.bf16 %v110_v37, %v109_v35  ;;  %v6431_v35 = vld [vmem:[#allocation8 + $0x8] sm:$0xff]  ;;  %v6433_v37 = vld [vmem:[#allocation8] sm:$0xff] }
 0x999   :  { %v6374_v30 = vadd.f32 %v1146_v28, %v6225_v1  ;;  %v1151_v31 = vsel %vm156_vm0, %v6371_v27, 0.0  ;;  %5048 = vmatmul.mubr.msk.bf16.vlgmr.msra.gmra.mrb[12].mxu0 %vm156_vm0, %v6382_v0 }
 0x99a   :  { %1152 = vadd.xlane.f32.xlu1 %v1151_v31 }
 0x99b   :  { %v1154_v32 = vsel %vm156_vm0, %v6374_v30, 0.0 }
 0x99c   :  { %1155 = vadd.xlane.f32.xlu0 %v1154_v32 }
 0xa27   :  { %v1153_v1 = vpop.xlane.xlu1 %1152 }
 0xa28   :  { %v1157_v38 = vmul.f32 0.03125, %v1153_v1 }
 0xa29   :  { %v1156_v40 = vpop.xlane.xlu0 %1155 }
 0xa2a   :  { %v1159_v42 = vsub.f32 %v6371_v27, %v1157_v38  ;;  %v1158_v43 = vmul.f32 0.03125, %v1156_v40 }
 0xa2c   :  { %v1160_v44 = vsub.f32 %v6374_v30, %v1158_v43  ;;  %v1161_v45 = vmul.f32 %v1159_v42, %v1159_v42 }
 0xa2e   :  { %v1163_v46 = vsel %vm156_vm0, %v1161_v45, 0.0  ;;  %v1162_v59 = vmul.f32 %v1160_v44, %v1160_v44 }
 0xa2f   :  { %1164 = vadd.xlane.f32.xlu0 %v1163_v46 }
 0xa30   :  { %v1166_v47 = vsel %vm156_vm0, %v1162_v59, 0.0 }
 0xa33   :  { %1167 = vadd.xlane.f32.xlu0 %v1166_v47 }
 0xa6c   :  { %v1287_v60 = vpop.f32.mrb[12].mxu0 }
 0xa6d   :  { %v1288_v50 = vadd.f32 %v4663_v49, %v1287_v60  ;;  %v5049_v51 = vpop.f32.mrb[13].mxu0 }
 0xa6e   :  { %v1290_v52 = vpop.f32.mrb[14].mxu0 }
 0xa6f   :  { %v1291_v41 = vadd.f32 %v4663_v49, %v1290_v52  ;;  %v5050_v53 = vpop.f32.mrb[15].mxu0 }
 0xa71   :  { %v6390_v54 = vpack.i.bf16 %v1291_v41, %v1288_v50 }
 0xa73   :  { %5548 = vrot.lane.b32.xlu1 %v6390_v54, %s6073_s1  ;;  %5553 = vrot.lane.b32.xlu0 %v6390_v54, %s6072_s5 }
 0xa77   :  { %5558 = vrot.lane.b32.xlu1 %v6390_v54, %s6075_s22 }
 0xabc   :  { %v1165_v55 = vpop.xlane.xlu0 %1164 }
 0xabd   :  { %v1169_v56 = vmul.f32 0.03125, %v1165_v55 }
 0xabf   :  { %v1171_v57 = vadd.f32 1e-05, %v1169_v56 }
 0xac0   :  { %v1168_v58 = vpop.xlane.xlu0 %1167 }
 0xac1   :  { %5776 = vrsqrt.f32 %v1171_v57  ;;  %v1170_v61 = vmul.f32 0.03125, %v1168_v58 }
 0xac3   :  { %v1172_v62 = vadd.f32 1e-05, %v1170_v61 }
 0xac5   :  { %5778 = vrsqrt.f32 %v1172_v62 }
 0xacb   :  { %v5777_v39 = vpop.eup %5776 }
 0xacc   :  { %v1175_v63 = vmul.f32 %v5777_v39, %v1159_v42 }
 0xace   :  { %v1181_v4 = vmul.f32 %v4661_v2, %v1175_v63 }
 0xacf   :  { %v5779_v3 = vpop.eup %5778 }
 0xad0   :  { %v1176_v5 = vmul.f32 %v5779_v3, %v1160_v44  ;;  %v1187_v36 = vadd.f32 %v4662_v6, %v1181_v4 }
 0xad2   :  { %v1182_v7 = vmul.f32 %v4661_v2, %v1176_v5 }
 0xad4   :  { %v1188_v8 = vadd.f32 %v4662_v6, %v1182_v7 }
 0xad6   :  { %v1189_v9 = vpack.c.bf16 %v1188_v8, %v1187_v36 }
 0xad8   :  { %5040 = vmatmul.mubr.msk.bf16.vlgmr.msra.gmra.mrb[16].mxu1 %vm156_vm0, %v1189_v9 }
 0xae5   :  { %v5549_v10 = vpop.permute.xlu1 %5548  ;;  %v5554_v14 = vpop.permute.xlu0 %5553 }
 0xae6   :  { %v5551_v11 = vunpack.i.h.bf16 %v5549_v10  ;;  %v5550_v12 = vunpack.i.l.bf16 %v5549_v10  ;;  %v5556_v17 = vunpack.i.h.bf16 %v5554_v14  ;;  %v5555_v18 = vunpack.i.l.bf16 %v5554_v14 }
 0xae8   :  { %v5347_v13 = vpack.c.bf16 %v5551_v11, %v5550_v12  ;;  %v5357_v21 = vpack.c.bf16 %v5556_v17, %v5555_v18 }
 0xae9   :  { %v5559_v16 = vpop.permute.xlu1 %5558 }
 0xaea   :  { %5349 = vmatprep.subr.msk.bf16.mxu1 %vm6266_vm3, %v5347_v13  ;;  %v5561_v19 = vunpack.i.h.bf16 %v5559_v16  ;;  %v5560_v20 = vunpack.i.l.bf16 %v5559_v16  ;;  %5359 = vmatprep.subr.msk.bf16.mxu0 %vm6266_vm3, %v5357_v21 }
 0xaeb   :  { %5352 = vmatpush3.bf16.xpose.msk.msra.mxu1 %vm6266_vm3, %v5347_v13  ;;  %5362 = vmatpush3.bf16.xpose.msk.msra.mxu0 %vm6266_vm3, %v5357_v21 }
 0xaec   :  { %v5367_v22 = vpack.c.bf16 %v5561_v19, %v5560_v20 }
 0xaee   :  { %5369 = vmatprep.subr.msk.bf16.mxu0 %vm6266_vm3, %v5367_v22 }
 0xbab   :  { %v1243_v23 = vpop.f32.mrb[16].mxu1 }
 0xbac   :  { %v6409_v24 = vadd.f32 %v4663_v49, %v1243_v23  ;;  %v5041_v25 = vpop.f32.mrb[17].mxu1 }
 0xbad   :  { %v1246_v26 = vpop.f32.mrb[18].mxu1 }
 0xbae   :  { %v6411_v28 = vadd.f32 %v4663_v49, %v1246_v26  ;;  %v5042_v29 = vpop.f32.mrb[19].mxu1  ;;  %5055 = vmatprep.mubr.msk.f32.mxu1 %vm263_vm2, %v6409_v24  ;;  %1694 = vrot.lane.b32.xlu0 %v6409_v24, %s6076_s23 }
 0xbaf   :  { %1494 = vrot.lane.b32.xlu1 %v6409_v24, %s6074_s21 }
 0xbb0   :  { %5056 = vmatmul.mubr.msk.f32.vlgmr.msra.gmra.mrb[14].mxu1 %vm263_vm2, %v6411_v28 }
 0xbb3   :  { %1496 = vrot.lane.b32.xlu1 %v6411_v28, %s6074_s21 }
 0xbb7   :  { %1696 = vrot.lane.b32.xlu1 %v6411_v28, %s6076_s23 }
 0xc20   :  { %v1695_v33 = vpop.permute.xlu0 %1694 }
 0xc21   :  { %v1495_v31 = vpop.permute.xlu1 %1494 }
 0xc22   :  { %5069 = vmatprep.mubr.msk.f32.mxu0 %vm263_vm2, %v1495_v31 }
 0xc25   :  { %v1497_v32 = vpop.permute.xlu1 %1496 }
 0xc26   :  { %5070 = vmatmul.mubr.msk.f32.vlgmr.msra.gmra.mrb[6].mxu0 %vm263_vm2, %v1497_v32 }
 0xc27   :  { %5372 = vmatpush3.bf16.xpose.msk.msra.mxu0 %vm6266_vm3, %v5367_v22  ;;  %5083 = vmatprep.mubr.msk.f32.mxu0 %vm263_vm2, %v1695_v33 }
 0xc29   :  { %v1697_v34 = vpop.permute.xlu1 %1696 }
 0xc2e   :  { %5084 = vmatmul.mubr.msk.f32.vlgmr.msra.gmra.mrb[16].mxu0 %vm263_vm2, %v1697_v34 }
 0xc83   :  { %v5057_v1 = vpop.f32.mrb[14].mxu1 }
 0xc84   :  { %v1382_v38 = vadd.f32 %v5057_v1, %v6431_v35  ;;  %v1376_v40 = vpop.f32.mrb[15].mxu1 }
 0xc85   :  { %v1377_v42 = vadd.f32 %v1376_v40, %v6433_v37 }
 0xc86   :  { %v1388_v43 = vsel %vm347_vm4, %v1382_v38, -inf }
 0xc87   :  { %1389 = vmax.xlane.f32.xlu1 %v1388_v43  ;;  %v1385_v44 = vsel %vm347_vm4, %v1377_v42, -inf }
 0xc88   :  { %1386 = vmax.xlane.f32.xlu0 %v1385_v44 }
 0xcf9   :  { %v5071_v45 = vpop.f32.mrb[6].mxu0 }
 0xcfa   :  { %v1576_v46 = vpop.f32.mrb[7].mxu0  ;;  %v1582_v47 = vadd.f32 %v5071_v45, %v6431_v35 }
 0xcfb   :  { %v1577_v59 = vadd.f32 %v1576_v46, %v6433_v37 }
 0xcfc   :  { %v1588_v50 = vsel %vm347_vm4, %v1582_v47, -inf }
 0xcfd   :  { %v1585_v49 = vsel %vm347_vm4, %v1577_v59, -inf }
 0xcfe   :  { %1586 = vmax.xlane.f32.xlu0 %v1585_v49 }
 0xd01   :  { %v5085_v60 = vpop.f32.mrb[16].mxu0 }
 0xd02   :  { %v1782_v51 = vadd.f32 %v5085_v60, %v6431_v35  ;;  %v1776_v52 = vpop.f32.mrb[17].mxu0  ;;  %1589 = vmax.xlane.f32.xlu0 %v1588_v50 }
 0xd03   :  { %v1777_v41 = vadd.f32 %v1776_v52, %v6433_v37 }
 0xd04   :  { %v1788_v53 = vsel %vm347_vm4, %v1782_v51, -inf }
 0xd05   :  { %1789 = vmax.xlane.f32.xlu1 %v1788_v53  ;;  %v1785_v55 = vsel %vm347_vm4, %v1777_v41, -inf }
 0xd06   :  { %1786 = vmax.xlane.f32.xlu0 %v1785_v55 }
 0xd14   :  { %v1390_v56 = vpop.xlane.xlu1 %1389 }
 0xd15   :  { %v1392_v57 = vsub.f32 %v1382_v38, %v1390_v56  ;;  %v1387_v58 = vpop.xlane.xlu0 %1386 }
 0xd16   :  { %v1391_v61 = vsub.f32 %v1377_v42, %v1387_v58 }
 0xd17   :  { %v1395_v62 = vmul.f32 1.442695, %v1392_v57 }
 0xd18   :  { %v1393_v39 = vmul.f32 1.442695, %v1391_v61 }
 0xd19   :  { %5780 = vpow2.f32 %v1395_v62 }
 0xd1a   :  { %5782 = vpow2.f32 %v1393_v39 }
 0xd23   :  { %v6447_v63 = vpop.eup %5780 }
 0xd24   :  { %v5783_v2 = vpop.eup %5782  ;;  %v1400_v3 = vsel %vm347_vm4, %v6447_v63, 0.0 }
 0xd25   :  { %1401 = vadd.xlane.f32.xlu1 %v1400_v3  ;;  %v1397_v4 = vsel %vm347_vm4, %v5783_v2, 0.0 }
 0xd26   :  { %1398 = vadd.xlane.f32.xlu0 %v1397_v4 }
 0xd8b   :  { %v1587_v5 = vpop.xlane.xlu0 %1586 }
 0xd8c   :  { %v1591_v6 = vsub.f32 %v1577_v59, %v1587_v5 }
 0xd8e   :  { %v1593_v7 = vmul.f32 1.442695, %v1591_v6 }
 0xd8f   :  { %v1590_v36 = vpop.xlane.xlu0 %1589 }
 0xd90   :  { %5784 = vpow2.f32 %v1593_v7  ;;  %v1592_v8 = vsub.f32 %v1582_v47, %v1590_v36 }
 0xd92   :  { %v1595_v9 = vmul.f32 1.442695, %v1592_v8  ;;  %v1790_v10 = vpop.xlane.xlu1 %1789 }
 0xd93   :  { %v1792_v11 = vsub.f32 %v1782_v51, %v1790_v10  ;;  %v1787_v12 = vpop.xlane.xlu0 %1786 }
 0xd94   :  { %5786 = vpow2.f32 %v1595_v9  ;;  %v1791_v13 = vsub.f32 %v1777_v41, %v1787_v12 }
 0xd95   :  { %v1795_v14 = vmul.f32 1.442695, %v1792_v11 }
 0xd96   :  { %v1793_v16 = vmul.f32 1.442695, %v1791_v13 }
 0xd97   :  { %5788 = vpow2.f32 %v1795_v14 }
 0xd98   :  { %5790 = vpow2.f32 %v1793_v16 }
 0xd9a   :  { %v5785_v17 = vpop.eup %5784 }
 0xd9b   :  { %v1597_v18 = vsel %vm347_vm4, %v5785_v17, 0.0 }
 0xd9c   :  { %1598 = vadd.xlane.f32.xlu0 %v1597_v18 }
 0xd9e   :  { %v5787_v19 = vpop.eup %5786 }
 0xd9f   :  { %v1600_v20 = vsel %vm347_vm4, %v5787_v19, 0.0 }
 0xda0   :  { %1601 = vadd.xlane.f32.xlu1 %v1600_v20 }
 0xda1   :  { %v5789_v21 = vpop.eup %5788 }
 0xda2   :  { %v5791_v22 = vpop.eup %5790  ;;  %v1800_v23 = vsel %vm347_vm4, %v5789_v21, 0.0 }
 0xda3   :  { %v1797_v25 = vsel %vm347_vm4, %v5791_v22, 0.0 }
 0xda4   :  { %1801 = vadd.xlane.f32.xlu1 %v1800_v23  ;;  %1798 = vadd.xlane.f32.xlu0 %v1797_v25 }
 0xdb2   :  { %v1402_v32 = vpop.xlane.xlu1 %1401 }
 0xdb3   :  { %v1399_v26 = vpop.xlane.xlu0 %1398 }
 0xdb4   :  { %5792 = vrcp.f32 %v1399_v26 }
 0xdb5   :  { %5568 = vrot.lane.b32.xlu1 %v6390_v54, %s6079_s28  ;;  %5794 = vrcp.f32 %v1402_v32 }
 0xdb9   :  { %5573 = vrot.lane.b32.xlu1 %v6390_v54, %s6077_s25 }
 0xdba   :  { %5563 = vrot.lane.b32.xlu0 %v6390_v54, %s6067_s2 }
 0xdbd   :  { %5578 = vrot.lane.b32.xlu1 %v6390_v54, %s6078_s27 }
 0xdbe   :  { %v5793_v29 = vpop.eup %5792  ;;  %1894 = vrot.lane.b32.xlu0 %v6409_v24, %s6080_s29 }
 0xdbf   :  { %v1405_v31 = vmul.f32 %v5793_v29, %v5783_v2 }
 0xdc1   :  { %1896 = vrot.lane.b32.xlu1 %v6411_v28, %s6080_s29  ;;  %5062 = vmatprep.mubr.msk.f32.mxu1 %vm347_vm4, %v1405_v31  ;;  %v5795_v28 = vpop.eup %5794 }
 0xdc2   :  { %v1406_v51 = vmul.f32 %v5795_v28, %v6447_v63 }
 0xe29   :  { %v1599_v33 = vpop.xlane.xlu0 %1598 }
 0xe2a   :  { %5796 = vrcp.f32 %v1599_v33 }
 0xe2d   :  { %v1602_v34 = vpop.xlane.xlu1 %1601 }
 0xe2e   :  { %5798 = vrcp.f32 %v1602_v34 }
 0xe31   :  { %v1802_v1 = vpop.xlane.xlu1 %1801  ;;  %v1799_v38 = vpop.xlane.xlu0 %1798 }
 0xe32   :  { %5800 = vrcp.f32 %v1799_v38 }
 0xe33   :  { %5802 = vrcp.f32 %v1802_v1 }
 0xe34   :  { %v5797_v47 = vpop.eup %5796 }
 0xe35   :  { %v5569_v40 = vpop.permute.xlu1 %5568  ;;  %v5564_v42 = vpop.permute.xlu0 %5563  ;;  %v1605_v53 = vmul.f32 %v5797_v47, %v5785_v17 }
 0xe36   :  { %v5571_v43 = vunpack.i.h.bf16 %v5569_v40  ;;  %v5570_v44 = vunpack.i.l.bf16 %v5569_v40  ;;  %v5566_v24 = vunpack.i.h.bf16 %v5564_v42  ;;  %v5565_v45 = vunpack.i.l.bf16 %v5564_v42 }
 0xe38   :  { %v5353_v46 = vpack.c.bf16 %v5566_v24, %v5565_v45  ;;  %v5363_v49 = vpack.c.bf16 %v5571_v43, %v5570_v44  ;;  %v5799_v52 = vpop.eup %5798  ;;  %v5719_v24 = vld [vmem:[#allocation10 + $0x38] sm:$0xff]  }
 0xe39   :  { %v5574_v59 = vpop.permute.xlu1 %5573  ;;  %v1606_v61 = vmul.f32 %v5799_v52, %v5787_v19  ;;  %v1895_v3 = vpop.permute.xlu0 %1894 }
 0xe3a   :  { %v5576_v60 = vunpack.i.h.bf16 %v5574_v59  ;;  %v5575_v50 = vunpack.i.l.bf16 %v5574_v59  ;;  %5354 = vmatprep.subr.bf16.mxu1 %v5353_v46 }
 0xe3b   :  { %5356 = vmatpush3.bf16.msra.mxu1 %v5353_v46 }
 0xe3c   :  { %5364 = vmatprep.subr.bf16.mxu1 %v5363_v49  ;;  %v5801_v55 = vpop.eup %5800  ;;  %v5373_v56 = vpack.c.bf16 %v5576_v60, %v5575_v50 }
 0xe3d   :  { %v5579_v41 = vpop.permute.xlu1 %5578  ;;  %v5803_v62 = vpop.eup %5802  ;;  %v1805_v39 = vmul.f32 %v5801_v55, %v5791_v22 }
 0xe3e   :  { %v5581_v57 = vunpack.i.h.bf16 %v5579_v41  ;;  %v5580_v58 = vunpack.i.l.bf16 %v5579_v41  ;;  %5063 = vmatmul.mubr.msk.f32.vlgmr.msra.gmra.mrb[20].mxu1 %vm347_vm4, %v1406_v51  ;;  %v1806_v63 = vmul.f32 %v5803_v62, %v5789_v21 }
 0xe3f   :  { %5366 = vmatpush3.bf16.msra.mxu1 %v5363_v49  ;;  %5076 = vmatprep.mubr.msk.f32.mxu1 %vm347_vm4, %v1605_v53 }
 0xe40   :  { %5374 = vmatprep.subr.bf16.mxu1 %v5373_v56  ;;  %v5377_v2 = vpack.c.bf16 %v5581_v57, %v5580_v58 }
 0xe41   :  { %v1897_v4 = vpop.permute.xlu1 %1896 }
 0xe42   :  { %5077 = vmatmul.mubr.msk.f32.vlgmr.msra.gmra.mrb[22].mxu1 %vm347_vm4, %v1606_v61 }
 0xe43   :  { %5376 = vmatpush3.bf16.msra.mxu1 %v5373_v56  ;;  %5090 = vmatprep.mubr.msk.f32.mxu1 %vm347_vm4, %v1805_v39 }
 0xe44   :  { %5379 = vmatprep.subr.msk.bf16.mxu1 %vm6266_vm3, %v5377_v2 }
 0xe46   :  { %5091 = vmatmul.mubr.msk.f32.vlgmr.msra.gmra.mrb[24].mxu1 %vm347_vm4, %v1806_v63 }
 0xe47   :  { %5097 = vmatprep.mubr.msk.f32.mxu1 %vm263_vm2, %v1895_v3 }
 0xe4c   :  { %5382 = vmatpush3.bf16.xpose.msk.msra.mxu1 %vm6266_vm3, %v5377_v2  ;;  %v4692_v2 = vld [vmem:[#allocation11 + $0x3] ss:$0 sm:$0xff] }
 0xe4d   :  { %5115 = vmatprep.subr.bf16.mxu1 %v6070_v15 }
 0xe53   :  { %5098 = vmatmul.mubr.msk.f32.vlgmr.msra.gmra.mrb[26].mxu1 %vm263_vm2, %v1897_v4 }
 0xe54   :  { %5119 = vmatprep.mubr.msk.bf16.mxu1 %vm6071_vm1, %v6070_v15 }
 0xf11   :  { %v6484_v5 = vpop.f32.mrb[20].mxu1 }
 0xf12   :  { %v6486_v6 = vpop.f32.mrb[21].mxu1 }
 0xf15   :  { %v5078_v7 = vpop.f32.mrb[22].mxu1 }
 0xf16   :  { %v1685_v36 = vpop.f32.mrb[23].mxu1 }
 0xf17   :  { %v5587_v8 = vpack.i.bf16 %v5078_v7, %v1685_v36 }
 0xf19   :  { %v5092_v9 = vpop.f32.mrb[24].mxu1 }
 0xf1a   :  { %v1885_v10 = vpop.f32.mrb[25].mxu1 }
 0xf1b   :  { %v5592_v11 = vpack.i.bf16 %v5092_v9, %v1885_v10 }
 0xf26   :  { %v5099_v12 = vpop.f32.mrb[26].mxu1 }
 0xf27   :  { %v1982_v13 = vadd.f32 %v5099_v12, %v6431_v35  ;;  %v1976_v14 = vpop.f32.mrb[27].mxu1 }
 0xf28   :  { %v1977_v16 = vadd.f32 %v1976_v14, %v6433_v37 }
 0xf29   :  { %v1988_v17 = vsel %vm347_vm4, %v1982_v13, -inf }
 0xf2a   :  { %1989 = vmax.xlane.f32.xlu1 %v1988_v17  ;;  %v1985_v18 = vsel %vm347_vm4, %v1977_v16, -inf }
 0xf2b   :  { %1986 = vmax.xlane.f32.xlu0 %v1985_v18 }
 0xf3b   :  { %5588 = vrot.lane.b32.xlu1 %v5587_v8, %s6063_s10 }
 0xf3f   :  { %5593 = vrot.lane.b32.xlu1 %v5592_v11, %s6082_s7 }
 0xfb7   :  { %v1990_v19 = vpop.xlane.xlu1 %1989 }
 0xfb8   :  { %v1992_v20 = vsub.f32 %v1982_v13, %v1990_v19  ;;  %v1987_v21 = vpop.xlane.xlu0 %1986 }
 0xfb9   :  { %v1991_v22 = vsub.f32 %v1977_v16, %v1987_v21  ;;  %v5721_v21 = vld [vmem:[#allocation10 + $0x48] sm:$0xff]  }
 0xfba   :  { %v1995_v23 = vmul.f32 1.442695, %v1992_v20  ;;  %v5720_v20 = vld [vmem:[#allocation10 + $0x40] sm:$0xff]  }
 0xfbb   :  { %v1993_v25 = vmul.f32 1.442695, %v1991_v22  ;;  %v5589_v59 = vpop.permute.xlu1 %5588  ;;  %5116 = vmatpush3.bf16.msra.mxu1 %v5720_v20  ;;  %v5722_v22 = vld [vmem:[#allocation10 + $0x50] sm:$0xff]  }
 0xfbc   :  { %5804 = vpow2.f32 %v1995_v23  ;;  %v5591_v49 = vunpack.i.h.bf16 %v5589_v59  ;;  %v5590_v60 = vunpack.i.l.bf16 %v5589_v59  ;;  %5117 = vmatprep.subr.bf16.mxu1 %v6070_v15  ;;  %v5723_v23 = vld [vmem:[#allocation10 + $0x58] sm:$0xff]  }
 0xfbd   :  { %5806 = vpow2.f32 %v1993_v25 }
 0xfbe   :  { %v2119_v41 = vsel %vm263_vm2, %v6484_v5, %v5591_v49  ;;  %v2118_v53 = vsel %vm263_vm2, %v6486_v6, %v5590_v60 }
 0xfbf   :  { %v5594_v47 = vpop.permute.xlu1 %5593  ;;  %5118 = vmatpush3.bf16.msra.mxu1 %v5721_v21 }
 0xfc0   :  { %v5596_v50 = vunpack.i.h.bf16 %v5594_v47  ;;  %v5595_v51 = vunpack.i.l.bf16 %v5594_v47  ;;  %5135 = vmatprep.subr.bf16.mxu1 %v6070_v15 }
 0xfc2   :  { %v2120_v57 = vsel %vm347_vm4, %v2118_v53, %v5595_v51  ;;  %v2121_v58 = vsel %vm347_vm4, %v2119_v41, %v5596_v50 }
 0xfc6   :  { %v5805_v35 = vpop.eup %5804 }
 0xfc7   :  { %v2000_v37 = vsel %vm347_vm4, %v5805_v35, 0.0  ;;  %v5807_v26 = vpop.eup %5806 }
 0xfc8   :  { %2001 = vadd.xlane.f32.xlu0 %v2000_v37  ;;  %v1997_v29 = vsel %vm347_vm4, %v5807_v26, 0.0 }
 0xfcc   :  { %1998 = vadd.xlane.f32.xlu0 %v1997_v29 }
 0xfe2   :  { %5583 = vrot.lane.b32.xlu0 %v6390_v54, %s6081_s30  ;;  %v5718_v54 = vld [vmem:[#allocation10 + $0x30] sm:$0xff]  }
0x1055   :  { %v2002_v31 = vpop.xlane.xlu0 %2001 }
0x1056   :  { %5808 = vrcp.f32 %v2002_v31 }
0x1059   :  { %v1999_v32 = vpop.xlane.xlu0 %1998 }
0x105a   :  { %5810 = vrcp.f32 %v1999_v32 }
0x105d   :  { %v5584_v33 = vpop.permute.xlu0 %5583 }
0x105e   :  { %v5586_v34 = vunpack.i.h.bf16 %v5584_v33  ;;  %v5585_v1 = vunpack.i.l.bf16 %v5584_v33 }
0x1060   :  { %v5383_v38 = vpack.c.bf16 %v5586_v34, %v5585_v1  ;;  %v5809_v40 = vpop.eup %5808  ;;  %v4696_v34 = vld [vmem:[#allocation11 + $0x8] ss:$0 sm:$0xff] }
0x1061   :  { %v2006_v44 = vmul.f32 %v5809_v40, %v5805_v35 }
0x1062   :  { %5384 = vmatprep.subr.bf16.mxu0 %v5383_v38 }
0x1063   :  { %5386 = vmatpush3.bf16.msra.mxu0 %v5383_v38 }
0x1064   :  { %v5811_v42 = vpop.eup %5810  ;;  %5107 = vmatprep.subr.bf16.mxu0 %v6070_v15 }
0x1065   :  { %v2005_v43 = vmul.f32 %v5811_v42, %v5807_v26  ;;  %v4697_v42 = vld [vmem:[#allocation11 + $0xb] ss:$0 sm:$0xff] }
0x1067   :  { %5104 = vmatprep.mubr.msk.f32.mxu0 %vm347_vm4, %v2005_v43 }
0x1068   :  { %5105 = vmatmul.mubr.msk.f32.vlgmr.msra.gmra.mrb[18].mxu0 %vm347_vm4, %v2006_v44 }
0x1069   :  { %5111 = vmatprep.mubr.msk.bf16.mxu0 %vm6071_vm1, %v6070_v15  ;;  %5108 = vmatpush3.bf16.msra.mxu0 %v5718_v54 }
0x106a   :  { %5109 = vmatprep.subr.bf16.mxu0 %v6070_v15 }
0x106d   :  { %5110 = vmatpush3.bf16.msra.mxu0 %v5719_v24 }
0x106e   :  { %5123 = vmatprep.subr.bf16.mxu0 %v6070_v15 }
0x113b   :  { %v5106_v45 = vpop.f32.mrb[18].mxu0 }
0x113c   :  { %v2085_v46 = vpop.f32.mrb[19].mxu0 }
0x113d   :  { %v5597_v28 = vpack.i.bf16 %v5106_v45, %v2085_v46  ;;  %v5724_v45 = vld [vmem:[#allocation10 + $0x60] sm:$0xff]   ;;  %v5725_v46 = vld [vmem:[#allocation10 + $0x68] sm:$0xff]  }
0x113f   :  { %5598 = vrot.lane.b32.xlu1 %v5597_v28, %s6083_s8  ;;  %v4698_v28 = vld [vmem:[#allocation11 + $0x4] ss:$0 sm:$0xff] }
0x11b1   :  { %v5599_v52 = vpop.permute.xlu1 %5598 }
0x11b2   :  { %v5601_v55 = vunpack.i.h.bf16 %v5599_v52  ;;  %v5600_v56 = vunpack.i.l.bf16 %v5599_v52 }
0x11b4   :  { %v2123_v61 = vsel %vm1085_vm5, %v2121_v58, %v5601_v55  ;;  %v2122_v62 = vsel %vm1085_vm5, %v2120_v57, %v5600_v56  ;;  %v4702_v55 = vld [vmem:[#allocation11 + $0x5] ss:$0 sm:$0xff] }
0x11b5   :  { %v2124_v39 = vpack.c.bf16 %v2123_v61, %v2122_v62 }
0x11b7   :  { %5112 = vmatmul.mubr.msk.bf16.vlgmr.msra.gmra.mrb[20].mxu0 %vm156_vm0, %v2124_v39 }
0x11b8   :  { %5131 = vmatprep.mubr.msk.bf16.mxu0 %vm6071_vm1, %v6070_v15  ;;  %5124 = vmatpush3.bf16.msra.mxu0 %v5722_v22  ;;  %v4708_v22 = vld [vmem:[#allocation11 + $0x16] ss:$0 sm:$0xff] }
0x11b9   :  { %5125 = vmatprep.subr.bf16.mxu0 %v6070_v15 }
0x11bc   :  { %5126 = vmatpush3.bf16.msra.mxu0 %v5723_v23 }
0x11bd   :  { %5127 = vmatprep.subr.bf16.mxu0 %v6070_v15 }
0x11c0   :  { %5128 = vmatpush3.bf16.msra.mxu0 %v5724_v45 }
0x11c1   :  { %5129 = vmatprep.subr.bf16.mxu0 %v6070_v15 }
0x11c4   :  { %5130 = vmatpush3.bf16.msra.mxu0 %v5725_v46 }
0x128a   :  { %v2178_v63 = vpop.f32.mrb[20].mxu0 }
0x128b   :  { %v2179_v3 = vadd.f32 %v4692_v2, %v2178_v63  ;;  %v5113_v4 = vpop.f32.mrb[21].mxu0 }
0x128c   :  { %v2181_v5 = vpop.f32.mrb[22].mxu0 }
0x128d   :  { %v6518_v6 = vadd.f32 %v2179_v3, %v6371_v27  ;;  %v2182_v7 = vadd.f32 %v4692_v2, %v2181_v5  ;;  %v5114_v36 = vpop.f32.mrb[23].mxu0 }
0x128f   :  { %v6521_v8 = vadd.f32 %v2182_v7, %v6374_v30  ;;  %v2187_v9 = vsel %vm156_vm0, %v6518_v6, 0.0 }
0x1290   :  { %2188 = vadd.xlane.f32.xlu0 %v2187_v9 }
0x1291   :  { %v2190_v10 = vsel %vm156_vm0, %v6521_v8, 0.0 }
0x1292   :  { %2191 = vadd.xlane.f32.xlu1 %v2190_v10 }
0x131d   :  { %v2189_v11 = vpop.xlane.xlu0 %2188 }
0x131e   :  { %v2193_v12 = vmul.f32 0.03125, %v2189_v11 }
0x131f   :  { %v2192_v13 = vpop.xlane.xlu1 %2191 }
0x1320   :  { %v2195_v14 = vsub.f32 %v6518_v6, %v2193_v12  ;;  %v2194_v27 = vmul.f32 0.03125, %v2192_v13 }
0x1322   :  { %v2196_v16 = vsub.f32 %v6521_v8, %v2194_v27  ;;  %v2197_v17 = vmul.f32 %v2195_v14, %v2195_v14  ;;  %v5727_v27 = vld [vmem:[#allocation10 + $0x78] sm:$0xff]  }
0x1324   :  { %v2199_v30 = vsel %vm156_vm0, %v2197_v17, 0.0  ;;  %v2198_v18 = vmul.f32 %v2196_v16, %v2196_v16 }
0x1325   :  { %2200 = vadd.xlane.f32.xlu0 %v2199_v30 }
0x1326   :  { %v2202_v19 = vsel %vm156_vm0, %v2198_v18, 0.0 }
0x1329   :  { %2203 = vadd.xlane.f32.xlu0 %v2202_v19 }
0x13b2   :  { %v2201_v25 = vpop.xlane.xlu0 %2200 }
0x13b3   :  { %v2205_v35 = vmul.f32 0.03125, %v2201_v25 }
0x13b5   :  { %v2207_v37 = vadd.f32 1e-05, %v2205_v35 }
0x13b6   :  { %v2204_v26 = vpop.xlane.xlu0 %2203 }
0x13b7   :  { %5812 = vrsqrt.f32 %v2207_v37  ;;  %v2206_v29 = vmul.f32 0.03125, %v2204_v26  ;;  %v4709_v26 = vld [vmem:[#allocation11 + $0x19] ss:$0 sm:$0xff] }
0x13b9   :  { %v2208_v31 = vadd.f32 1e-05, %v2206_v29 }
0x13bb   :  { %5814 = vrsqrt.f32 %v2208_v31 }
0x13c1   :  { %v5813_v32 = vpop.eup %5812 }
0x13c2   :  { %v2211_v33 = vmul.f32 %v5813_v32, %v2195_v14  ;;  %v5726_v14 = vld [vmem:[#allocation10 + $0x70] sm:$0xff]  }
0x13c4   :  { %v2217_v38 = vmul.f32 %v4696_v34, %v2211_v33 }
0x13c5   :  { %v5815_v1 = vpop.eup %5814 }
0x13c6   :  { %v2212_v40 = vmul.f32 %v5815_v1, %v2196_v16  ;;  %v2223_v44 = vadd.f32 %v4697_v42, %v2217_v38 }
0x13c8   :  { %v2218_v43 = vmul.f32 %v4696_v34, %v2212_v40  ;;  %v4710_v34 = vld [vmem:[#allocation11 + $0x10] ss:$0 sm:$0xff] }
0x13ca   :  { %v2224_v54 = vadd.f32 %v4697_v42, %v2218_v43 }
0x13cc   :  { %v2225_v24 = vpack.c.bf16 %v2224_v54, %v2223_v44 }
0x13ce   :  { %5120 = vmatmul.mubr.msk.bf16.vlgmr.msra.gmra.mrb[28].mxu1 %vm156_vm0, %v2225_v24 }
0x13cf   :  { %5139 = vmatprep.mubr.msk.bf16.mxu1 %vm6071_vm1, %v6070_v15  ;;  %5136 = vmatpush3.bf16.msra.mxu1 %v5726_v14 }
0x13d0   :  { %5137 = vmatprep.subr.bf16.mxu1 %v6070_v15 }
0x13d3   :  { %5138 = vmatpush3.bf16.msra.mxu1 %v5727_v27 }
0x14a1   :  { %v2279_v59 = vpop.f32.mrb[28].mxu1 }
0x14a2   :  { %v2280_v47 = vadd.f32 %v4698_v28, %v2279_v59  ;;  %v5121_v49 = vpop.f32.mrb[29].mxu1 }
0x14a3   :  { %v2282_v60 = vpop.f32.mrb[30].mxu1 }
0x14a4   :  { %v2283_v50 = vadd.f32 %v4698_v28, %v2282_v60  ;;  %v5122_v51 = vpop.f32.mrb[31].mxu1  ;;  %v2286_v52 = vmax.f32 %v2280_v47, 0.0 }
0x14a6   :  { %v2287_v41 = vmax.f32 %v2283_v50, 0.0 }
0x14a8   :  { %v2288_v53 = vpack.c.bf16 %v2287_v41, %v2286_v52 }
0x14aa   :  { %5132 = vmatmul.mubr.msk.bf16.vlgmr.msra.gmra.mrb[24].mxu0 %vm2317_vm6, %v2288_v53 }
0x157d   :  { %v2355_v56 = vpop.f32.mrb[24].mxu0 }
0x157e   :  { %v2356_v57 = vadd.f32 %v4702_v55, %v2355_v56  ;;  %v5133_v58 = vpop.f32.mrb[25].mxu0 }
0x157f   :  { %v2358_v61 = vpop.f32.mrb[26].mxu0 }
0x1580   :  { %v6541_v62 = vadd.f32 %v2356_v57, %v6518_v6  ;;  %v2359_v39 = vadd.f32 %v4702_v55, %v2358_v61  ;;  %v5134_v2 = vpop.f32.mrb[27].mxu0  ;;  %v6598_v61 = vld [vmem:[#allocation7 + $0x8] sm:$0xff] }
0x1582   :  { %v6544_v63 = vadd.f32 %v2359_v39, %v6521_v8  ;;  %v2406_v3 = vsel %vm156_vm0, %v6541_v62, 0.0 }
0x1583   :  { %2407 = vadd.xlane.f32.xlu0 %v2406_v3 }
0x1584   :  { %v2409_v4 = vsel %vm156_vm0, %v6544_v63, 0.0 }
0x1585   :  { %2410 = vadd.xlane.f32.xlu1 %v2409_v4  ;;  %v6601_v4 = vld [vmem:[#allocation7] sm:$0xff] }
0x1610   :  { %v2408_v5 = vpop.xlane.xlu0 %2407 }
0x1611   :  { %v2412_v7 = vmul.f32 0.03125, %v2408_v5 }
0x1612   :  { %v2411_v36 = vpop.xlane.xlu1 %2410 }
0x1613   :  { %v2414_v9 = vsub.f32 %v6541_v62, %v2412_v7  ;;  %v2413_v6 = vmul.f32 0.03125, %v2411_v36 }
0x1615   :  { %v2415_v10 = vsub.f32 %v6544_v63, %v2413_v6  ;;  %v2416_v11 = vmul.f32 %v2414_v9, %v2414_v9 }
0x1617   :  { %v2418_v8 = vsel %vm156_vm0, %v2416_v11, 0.0  ;;  %v2417_v12 = vmul.f32 %v2415_v10, %v2415_v10 }
0x1618   :  { %2419 = vadd.xlane.f32.xlu0 %v2418_v8 }
0x1619   :  { %v2421_v13 = vsel %vm156_vm0, %v2417_v12, 0.0 }
0x161a   :  { %2422 = vadd.xlane.f32.xlu1 %v2421_v13 }
0x16a5   :  { %v2420_v16 = vpop.xlane.xlu0 %2419 }
0x16a6   :  { %v2424_v17 = vmul.f32 0.03125, %v2420_v16 }
0x16a7   :  { %v2423_v30 = vpop.xlane.xlu1 %2422 }
0x16a8   :  { %v2426_v18 = vadd.f32 1e-05, %v2424_v17  ;;  %v2425_v19 = vmul.f32 0.03125, %v2423_v30 }
0x16aa   :  { %5816 = vrsqrt.f32 %v2426_v18  ;;  %v2427_v20 = vadd.f32 1e-05, %v2425_v19 }
0x16ac   :  { %5818 = vrsqrt.f32 %v2427_v20 }
0x16b4   :  { %v5817_v21 = vpop.eup %5816 }
0x16b5   :  { %v2430_v23 = vmul.f32 %v5817_v21, %v2414_v9 }
0x16b6   :  { %v5819_v25 = vpop.eup %5818 }
0x16b7   :  { %v2436_v35 = vmul.f32 %v4708_v22, %v2430_v23  ;;  %v2431_v37 = vmul.f32 %v5819_v25, %v2415_v10 }
0x16b9   :  { %v2437_v29 = vmul.f32 %v4708_v22, %v2431_v37  ;;  %v2442_v31 = vadd.f32 %v4709_v26, %v2436_v35 }
0x16bb   :  { %v2443_v32 = vadd.f32 %v4709_v26, %v2437_v29 }
0x16bd   :  { %v2444_v33 = vpack.c.bf16 %v2443_v32, %v2442_v31 }
0x16bf   :  { %5140 = vmatmul.mubr.msk.bf16.vlgmr.msra.gmra.mrb[32].mxu1 %vm156_vm0, %v2444_v33 }
0x1792   :  { %v2498_v1 = vpop.f32.mrb[32].mxu1 }
0x1793   :  { %v6556_v38 = vadd.f32 %v4710_v34, %v2498_v1  ;;  %v5141_v40 = vpop.f32.mrb[33].mxu1 }
0x1794   :  { %v2501_v42 = vpop.f32.mrb[34].mxu1 }
0x1795   :  { %v6558_v43 = vadd.f32 %v4710_v34, %v2501_v42  ;;  %v5142_v44 = vpop.f32.mrb[35].mxu1  ;;  %5147 = vmatprep.mubr.msk.f32.mxu1 %vm263_vm2, %v6556_v38 }
0x1797   :  { %v6564_v54 = vpack.i.bf16 %v6558_v43, %v6556_v38 }
0x1799   :  { %5608 = vrot.lane.b32.xlu1 %v6564_v54, %s6072_s5  ;;  %5603 = vrot.lane.b32.xlu0 %v6564_v54, %s6073_s1 }
0x179d   :  { %2703 = vrot.lane.b32.xlu1 %v6556_v38, %s6074_s21  ;;  %2705 = vrot.lane.b32.xlu0 %v6558_v43, %s6074_s21 }
0x17a1   :  { %5613 = vrot.lane.b32.xlu1 %v6564_v54, %s6075_s22  ;;  %2905 = vrot.lane.b32.xlu0 %v6558_v43, %s6076_s23 }
0x17a5   :  { %2903 = vrot.lane.b32.xlu1 %v6556_v38, %s6076_s23 }
0x180b   :  { %v5609_v24 = vpop.permute.xlu1 %5608  ;;  %v5604_v45 = vpop.permute.xlu0 %5603 }
0x180c   :  { %v5611_v46 = vunpack.i.h.bf16 %v5609_v24  ;;  %v5610_v28 = vunpack.i.l.bf16 %v5609_v24  ;;  %v5606_v59 = vunpack.i.h.bf16 %v5604_v45  ;;  %v5605_v47 = vunpack.i.l.bf16 %v5604_v45 }
0x180e   :  { %v5397_v49 = vpack.c.bf16 %v5611_v46, %v5610_v28  ;;  %v5387_v60 = vpack.c.bf16 %v5606_v59, %v5605_v47 }
0x180f   :  { %v2704_v50 = vpop.permute.xlu1 %2703  ;;  %v2706_v56 = vpop.permute.xlu0 %2705 }
0x1810   :  { %5389 = vmatprep.subr.msk.bf16.mxu1 %vm6266_vm3, %v5387_v60  ;;  %5399 = vmatprep.subr.msk.bf16.mxu0 %vm6266_vm3, %v5397_v49 }
0x1811   :  { %5161 = vmatprep.mubr.msk.f32.mxu0 %vm263_vm2, %v2704_v50  ;;  %5392 = vmatpush3.bf16.xpose.msk.msra.mxu1 %vm6266_vm3, %v5387_v60 }
0x1812   :  { %5402 = vmatpush3.bf16.xpose.msk.msra.mxu0 %vm6266_vm3, %v5397_v49 }
0x1813   :  { %v5614_v51 = vpop.permute.xlu1 %5613  ;;  %v2906_v57 = vpop.permute.xlu0 %2905 }
0x1814   :  { %v5616_v52 = vunpack.i.h.bf16 %v5614_v51  ;;  %v5615_v41 = vunpack.i.l.bf16 %v5614_v51 }
0x1816   :  { %v5407_v53 = vpack.c.bf16 %v5616_v52, %v5615_v41 }
0x1817   :  { %v2904_v55 = vpop.permute.xlu1 %2903 }
0x1818   :  { %5148 = vmatmul.mubr.msk.f32.vlgmr.msra.gmra.mrb[36].mxu1 %vm263_vm2, %v6558_v43  ;;  %5409 = vmatprep.subr.msk.bf16.mxu0 %vm6266_vm3, %v5407_v53 }
0x1819   :  { %5162 = vmatmul.mubr.msk.f32.vlgmr.msra.gmra.mrb[28].mxu0 %vm263_vm2, %v2706_v56 }
0x181a   :  { %5412 = vmatpush3.bf16.xpose.msk.msra.mxu0 %vm6266_vm3, %v5407_v53  ;;  %5175 = vmatprep.mubr.msk.f32.mxu0 %vm263_vm2, %v2904_v55 }
0x1821   :  { %5176 = vmatmul.mubr.msk.f32.vlgmr.msra.gmra.mrb[30].mxu0 %vm263_vm2, %v2906_v57 }
0x18eb   :  { %v5149_v58 = vpop.f32.mrb[36].mxu1 }
0x18ec   :  { %v2591_v39 = vadd.f32 %v6598_v61, %v5149_v58  ;;  %v5163_v2 = vpop.f32.mrb[28].mxu0  ;;  %v2585_v3 = vpop.f32.mrb[37].mxu1 }
0x18ed   :  { %v2586_v5 = vadd.f32 %v6601_v4, %v2585_v3  ;;  %v2785_v7 = vpop.f32.mrb[29].mxu0  ;;  %v2791_v10 = vadd.f32 %v6598_v61, %v5163_v2 }
0x18ee   :  { %v2786_v36 = vadd.f32 %v6601_v4, %v2785_v7  ;;  %v2597_v9 = vsel %vm347_vm4, %v2591_v39, -inf }
0x18ef   :  { %2598 = vmax.xlane.f32.xlu0 %v2597_v9  ;;  %v2594_v6 = vsel %vm347_vm4, %v2586_v5, -inf  ;;  %v2797_v27 = vsel %vm347_vm4, %v2791_v10, -inf }
0x18f0   :  { %2595 = vmax.xlane.f32.xlu1 %v2594_v6  ;;  %v2794_v11 = vsel %vm347_vm4, %v2786_v36, -inf }
0x18f3   :  { %2795 = vmax.xlane.f32.xlu0 %v2794_v11 }
0x18f4   :  { %v5177_v8 = vpop.f32.mrb[30].mxu0 }
0x18f5   :  { %v2985_v12 = vpop.f32.mrb[31].mxu0  ;;  %v2991_v13 = vadd.f32 %v6598_v61, %v5177_v8 }
0x18f6   :  { %v2986_v14 = vadd.f32 %v6601_v4, %v2985_v12 }
0x18f7   :  { %2798 = vmax.xlane.f32.xlu0 %v2797_v27  ;;  %v2997_v17 = vsel %vm347_vm4, %v2991_v13, -inf }
0x18f8   :  { %v2994_v16 = vsel %vm347_vm4, %v2986_v14, -inf }
0x18f9   :  { %2995 = vmax.xlane.f32.xlu1 %v2994_v16 }
0x18fb   :  { %2998 = vmax.xlane.f32.xlu0 %v2997_v17 }
0x190a   :  { %5618 = vrot.lane.b32.xlu1 %v6564_v54, %s6067_s2 }
0x197c   :  { %v2599_v30 = vpop.xlane.xlu0 %2598 }
0x197d   :  { %v2601_v18 = vsub.f32 %v2591_v39, %v2599_v30  ;;  %v2596_v19 = vpop.xlane.xlu1 %2595 }
0x197e   :  { %v2600_v20 = vsub.f32 %v2586_v5, %v2596_v19 }
0x197f   :  { %v2604_v21 = vmul.f32 1.442695, %v2601_v18 }
0x1980   :  { %v2602_v22 = vmul.f32 1.442695, %v2600_v20  ;;  %v2796_v23 = vpop.xlane.xlu0 %2795 }
0x1981   :  { %5820 = vpow2.f32 %v2604_v21  ;;  %v2800_v25 = vsub.f32 %v2786_v36, %v2796_v23 }
0x1982   :  { %5822 = vpow2.f32 %v2602_v22 }
0x1983   :  { %v2802_v35 = vmul.f32 1.442695, %v2800_v25 }
0x1984   :  { %v2799_v37 = vpop.xlane.xlu0 %2798 }
0x1985   :  { %5824 = vpow2.f32 %v2802_v35  ;;  %v2801_v26 = vsub.f32 %v2791_v10, %v2799_v37 }
0x1986   :  { %v2996_v29 = vpop.xlane.xlu1 %2995 }
0x1987   :  { %v2804_v31 = vmul.f32 1.442695, %v2801_v26  ;;  %v3000_v52 = vsub.f32 %v2986_v14, %v2996_v29 }
0x1988   :  { %v2999_v32 = vpop.xlane.xlu0 %2998 }
0x1989   :  { %5826 = vpow2.f32 %v2804_v31  ;;  %v3001_v33 = vsub.f32 %v2991_v13, %v2999_v32  ;;  %v3002_v41 = vmul.f32 1.442695, %v3000_v52 }
0x198a   :  { %v5619_v34 = vpop.permute.xlu1 %5618 }
0x198b   :  { %v5821_v1 = vpop.eup %5820  ;;  %v3004_v40 = vmul.f32 1.442695, %v3001_v33  ;;  %v5621_v42 = vunpack.i.h.bf16 %v5619_v34  ;;  %v5620_v44 = vunpack.i.l.bf16 %v5619_v34 }
0x198c   :  { %v5823_v24 = vpop.eup %5822  ;;  %v2609_v45 = vsel %vm347_vm4, %v5821_v1, 0.0 }
0x198d   :  { %5828 = vpow2.f32 %v3004_v40  ;;  %v5393_v46 = vpack.c.bf16 %v5621_v42, %v5620_v44  ;;  %2610 = vadd.xlane.f32.xlu0 %v2609_v45  ;;  %v2606_v28 = vsel %vm347_vm4, %v5823_v24, 0.0 }
0x198e   :  { %2607 = vadd.xlane.f32.xlu1 %v2606_v28  ;;  %5830 = vpow2.f32 %v3002_v41 }
0x198f   :  { %v5825_v59 = vpop.eup %5824  ;;  %5394 = vmatprep.subr.bf16.mxu1 %v5393_v46 }
0x1990   :  { %5396 = vmatpush3.bf16.msra.mxu1 %v5393_v46  ;;  %v2806_v47 = vsel %vm347_vm4, %v5825_v59, 0.0 }
0x1992   :  { %2807 = vadd.xlane.f32.xlu1 %v2806_v47 }
0x1993   :  { %v5827_v49 = vpop.eup %5826 }
0x1994   :  { %v2809_v60 = vsel %vm347_vm4, %v5827_v49, 0.0 }
0x1995   :  { %2810 = vadd.xlane.f32.xlu0 %v2809_v60 }
0x1997   :  { %v5829_v50 = vpop.eup %5828 }
0x1998   :  { %v3009_v51 = vsel %vm347_vm4, %v5829_v50, 0.0  ;;  %v5831_v53 = vpop.eup %5830 }
0x1999   :  { %3010 = vadd.xlane.f32.xlu0 %v3009_v51  ;;  %v3006_v55 = vsel %vm347_vm4, %v5831_v53, 0.0 }
0x19a3   :  { %5628 = vrot.lane.b32.xlu1 %v6564_v54, %s6077_s25 }
0x19a7   :  { %5633 = vrot.lane.b32.xlu1 %v6564_v54, %s6078_s27 }
0x19af   :  { %5623 = vrot.lane.b32.xlu0 %v6564_v54, %s6079_s28 }
0x19b3   :  { %3105 = vrot.lane.b32.xlu0 %v6558_v43, %s6080_s29 }
0x19cb   :  { %3007 = vadd.xlane.f32.xlu1 %v3006_v55 }
0x19dc   :  { %3103 = vrot.lane.b32.xlu1 %v6556_v38, %s6080_s29 }
0x1a1a   :  { %v2611_v56 = vpop.xlane.xlu0 %2610 }
0x1a1b   :  { %5832 = vrcp.f32 %v2611_v56  ;;  %v2608_v57 = vpop.xlane.xlu1 %2607 }
0x1a1c   :  { %5834 = vrcp.f32 %v2608_v57 }
0x1a1f   :  { %v2808_v58 = vpop.xlane.xlu1 %2807 }
0x1a20   :  { %5836 = vrcp.f32 %v2808_v58 }
0x1a22   :  { %v2811_v39 = vpop.xlane.xlu0 %2810 }
0x1a23   :  { %5838 = vrcp.f32 %v2811_v39  ;;  %v5629_v3 = vpop.permute.xlu1 %5628 }
0x1a24   :  { %v5631_v6 = vunpack.i.h.bf16 %v5629_v3  ;;  %v5630_v10 = vunpack.i.l.bf16 %v5629_v3 }
0x1a25   :  { %v5833_v2 = vpop.eup %5832 }
0x1a26   :  { %v5835_v43 = vpop.eup %5834  ;;  %v3011_v5 = vpop.xlane.xlu0 %3010  ;;  %v2615_v36 = vmul.f32 %v5833_v2, %v5821_v1  ;;  %v5413_v16 = vpack.c.bf16 %v5631_v6, %v5630_v10 }
0x1a27   :  { %v2614_v7 = vmul.f32 %v5835_v43, %v5823_v24  ;;  %v5634_v13 = vpop.permute.xlu1 %5633  ;;  %5840 = vrcp.f32 %v3011_v5  ;;  %v5728_v5 = vld [vmem:[#allocation10 + $0x90] sm:$0xff]  }
0x1a28   :  { %v5636_v17 = vunpack.i.h.bf16 %v5634_v13  ;;  %v5635_v30 = vunpack.i.l.bf16 %v5634_v13 }
0x1a29   :  { %5154 = vmatprep.mubr.msk.f32.mxu1 %vm347_vm4, %v2614_v7  ;;  %v5729_v7 = vld [vmem:[#allocation10 + $0x98] sm:$0xff]  }
0x1a2a   :  { %v5837_v9 = vpop.eup %5836  ;;  %5155 = vmatmul.mubr.msk.f32.vlgmr.msra.gmra.mrb[38].mxu1 %vm347_vm4, %v2615_v36  ;;  %v5624_v38 = vpop.permute.xlu0 %5623  ;;  %v5417_v19 = vpack.c.bf16 %v5636_v17, %v5635_v30 }
0x1a2b   :  { %v5626_v11 = vunpack.i.h.bf16 %v5624_v38  ;;  %v5625_v8 = vunpack.i.l.bf16 %v5624_v38  ;;  %v2814_v12 = vmul.f32 %v5837_v9, %v5825_v59 }
0x1a2d   :  { %v5403_v14 = vpack.c.bf16 %v5626_v11, %v5625_v8  ;;  %5168 = vmatprep.mubr.msk.f32.mxu1 %vm347_vm4, %v2814_v12  ;;  %v5839_v27 = vpop.eup %5838 }
0x1a2e   :  { %v2815_v18 = vmul.f32 %v5839_v27, %v5827_v49  ;;  %v3106_v37 = vpop.permute.xlu0 %3105 }
0x1a2f   :  { %5404 = vmatprep.subr.bf16.mxu1 %v5403_v14 }
0x1a30   :  { %5406 = vmatpush3.bf16.msra.mxu1 %v5403_v14 }
0x1a31   :  { %5414 = vmatprep.subr.bf16.mxu1 %v5413_v16  ;;  %v5841_v21 = vpop.eup %5840 }
0x1a32   :  { %v3015_v25 = vmul.f32 %v5841_v21, %v5829_v50 }
0x1a33   :  { %5169 = vmatmul.mubr.msk.f32.vlgmr.msra.gmra.mrb[40].mxu1 %vm347_vm4, %v2815_v18 }
0x1a34   :  { %5416 = vmatpush3.bf16.msra.mxu1 %v5413_v16 }
0x1a35   :  { %5419 = vmatprep.subr.msk.bf16.mxu1 %vm6266_vm3, %v5417_v19 }
0x1a58   :  { %v3008_v20 = vpop.xlane.xlu1 %3007 }
0x1a59   :  { %5842 = vrcp.f32 %v3008_v20 }
0x1a5c   :  { %v3104_v35 = vpop.permute.xlu1 %3103 }
0x1a63   :  { %v5843_v22 = vpop.eup %5842 }
0x1a64   :  { %v3014_v23 = vmul.f32 %v5843_v22, %v5831_v53 }
0x1a66   :  { %5182 = vmatprep.mubr.msk.f32.mxu1 %vm347_vm4, %v3014_v23  ;;  %v4738_v23 = vld [vmem:[#allocation11 + $0x12] ss:$0 sm:$0xff] }
0x1a67   :  { %5183 = vmatmul.mubr.msk.f32.vlgmr.msra.gmra.mrb[42].mxu1 %vm347_vm4, %v3015_v25 }
0x1a68   :  { %5422 = vmatpush3.bf16.xpose.msk.msra.mxu1 %vm6266_vm3, %v5417_v19  ;;  %5189 = vmatprep.mubr.msk.f32.mxu1 %vm263_vm2, %v3104_v35 }
0x1a69   :  { %5207 = vmatprep.subr.bf16.mxu1 %v6070_v15 }
0x1a6f   :  { %5190 = vmatmul.mubr.msk.f32.vlgmr.msra.gmra.mrb[44].mxu1 %vm263_vm2, %v3106_v37 }
0x1a70   :  { %5211 = vmatprep.mubr.msk.bf16.mxu1 %vm6071_vm1, %v6070_v15 }
0x1afd   :  { %v6647_v26 = vpop.f32.mrb[38].mxu1 }
0x1afe   :  { %v6649_v29 = vpop.f32.mrb[39].mxu1 }
0x1b06   :  { %v5170_v31 = vpop.f32.mrb[40].mxu1 }
0x1b07   :  { %v2894_v32 = vpop.f32.mrb[41].mxu1 }
0x1b08   :  { %v5642_v33 = vpack.i.bf16 %v5170_v31, %v2894_v32 }
0x1b3a   :  { %v5184_v34 = vpop.f32.mrb[42].mxu1 }
0x1b3b   :  { %v3094_v1 = vpop.f32.mrb[43].mxu1 }
0x1b3c   :  { %v5647_v40 = vpack.i.bf16 %v5184_v34, %v3094_v1 }
0x1b42   :  { %v5191_v42 = vpop.f32.mrb[44].mxu1 }
0x1b43   :  { %v3191_v44 = vadd.f32 %v6598_v61, %v5191_v42  ;;  %v3185_v24 = vpop.f32.mrb[45].mxu1  ;;  %v5731_v42 = vld [vmem:[#allocation10 + $0x88] sm:$0xff]  }
0x1b44   :  { %v3186_v45 = vadd.f32 %v6601_v4, %v3185_v24 }
0x1b45   :  { %v3197_v46 = vsel %vm347_vm4, %v3191_v44, -inf }
0x1b46   :  { %3198 = vmax.xlane.f32.xlu0 %v3197_v46  ;;  %v3194_v28 = vsel %vm347_vm4, %v3186_v45, -inf }
0x1b47   :  { %3195 = vmax.xlane.f32.xlu1 %v3194_v28 }
0x1b58   :  { %5638 = vrot.lane.b32.xlu1 %v6564_v54, %s6081_s30 }
0x1b5c   :  { %5648 = vrot.lane.b32.xlu1 %v5647_v40, %s6082_s7  ;;  %v5730_v40 = vld [vmem:[#allocation10 + $0x80] sm:$0xff]  }
0x1b5d   :  { %5208 = vmatpush3.bf16.msra.mxu1 %v5730_v40 }
0x1b5e   :  { %5209 = vmatprep.subr.bf16.mxu1 %v6070_v15 }
0x1b61   :  { %5210 = vmatpush3.bf16.msra.mxu1 %v5731_v42 }
0x1bd3   :  { %v3199_v59 = vpop.xlane.xlu0 %3198 }
0x1bd4   :  { %v3201_v47 = vsub.f32 %v3191_v44, %v3199_v59  ;;  %v3196_v49 = vpop.xlane.xlu1 %3195 }
0x1bd5   :  { %v3200_v60 = vsub.f32 %v3186_v45, %v3196_v49 }
0x1bd6   :  { %v3204_v50 = vmul.f32 1.442695, %v3201_v47 }
0x1bd7   :  { %v3202_v61 = vmul.f32 1.442695, %v3200_v60  ;;  %v4744_v60 = vld [vmem:[#allocation11 + $0x11] ss:$0 sm:$0xff] }
0x1bd8   :  { %v5639_v51 = vpop.permute.xlu1 %5638 }
0x1bd9   :  { %5844 = vpow2.f32 %v3202_v61  ;;  %v5641_v4 = vunpack.i.h.bf16 %v5639_v51  ;;  %v5640_v52 = vunpack.i.l.bf16 %v5639_v51 }
0x1bda   :  { %5846 = vpow2.f32 %v3204_v50 }
0x1bdb   :  { %v5423_v41 = vpack.c.bf16 %v5641_v4, %v5640_v52 }
0x1bdc   :  { %v5649_v8 = vpop.permute.xlu1 %5648 }
0x1bdd   :  { %5424 = vmatprep.subr.bf16.mxu0 %v5423_v41  ;;  %v5651_v14 = vunpack.i.h.bf16 %v5649_v8  ;;  %v5650_v27 = vunpack.i.l.bf16 %v5649_v8 }
0x1bde   :  { %5426 = vmatpush3.bf16.msra.mxu0 %v5423_v41 }
0x1bdf   :  { %5199 = vmatprep.subr.bf16.mxu0 %v6070_v15 }
0x1be3   :  { %v5845_v53 = vpop.eup %5844 }
0x1be4   :  { %v3206_v54 = vsel %vm347_vm4, %v5845_v53, 0.0  ;;  %v5847_v55 = vpop.eup %5846 }
0x1be5   :  { %3207 = vadd.xlane.f32.xlu0 %v3206_v54  ;;  %v3209_v56 = vsel %vm347_vm4, %v5847_v55, 0.0 }
0x1be9   :  { %3210 = vadd.xlane.f32.xlu0 %v3209_v56 }
0x1bff   :  { %5643 = vrot.lane.b32.xlu0 %v5642_v33, %s6063_s10 }
0x1c72   :  { %v3208_v57 = vpop.xlane.xlu0 %3207 }
0x1c73   :  { %5848 = vrcp.f32 %v3208_v57 }
0x1c76   :  { %v3211_v58 = vpop.xlane.xlu0 %3210 }
0x1c77   :  { %5850 = vrcp.f32 %v3211_v58 }
0x1c7a   :  { %v5644_v38 = vpop.permute.xlu0 %5643 }
0x1c7b   :  { %v5646_v10 = vunpack.i.h.bf16 %v5644_v38  ;;  %v5645_v11 = vunpack.i.l.bf16 %v5644_v38 }
0x1c7d   :  { %v5849_v39 = vpop.eup %5848  ;;  %v3328_v12 = vsel %vm263_vm2, %v6647_v26, %v5646_v10  ;;  %v3327_v13 = vsel %vm263_vm2, %v6649_v29, %v5645_v11 }
0x1c7e   :  { %v3214_v2 = vmul.f32 %v5849_v39, %v5845_v53  ;;  %v3329_v18 = vsel %vm347_vm4, %v3327_v13, %v5650_v27  ;;  %v3330_v19 = vsel %vm347_vm4, %v3328_v12, %v5651_v14 }
0x1c80   :  { %5196 = vmatprep.mubr.msk.f32.mxu0 %vm347_vm4, %v3214_v2 }
0x1c81   :  { %v5851_v43 = vpop.eup %5850 }
0x1c82   :  { %v3215_v3 = vmul.f32 %v5851_v43, %v5847_v55  ;;  %v4742_v43 = vld [vmem:[#allocation11 + $0x17] ss:$0 sm:$0xff] }
0x1c84   :  { %5197 = vmatmul.mubr.msk.f32.vlgmr.msra.gmra.mrb[32].mxu0 %vm347_vm4, %v3215_v3 }
0x1c85   :  { %5203 = vmatprep.mubr.msk.bf16.mxu0 %vm6071_vm1, %v6070_v15  ;;  %5200 = vmatpush3.bf16.msra.mxu0 %v5728_v5 }
0x1c86   :  { %5201 = vmatprep.subr.bf16.mxu0 %v6070_v15 }
0x1c89   :  { %5202 = vmatpush3.bf16.msra.mxu0 %v5729_v7 }
0x1c8a   :  { %5215 = vmatprep.subr.bf16.mxu0 %v6070_v15 }
0x1d57   :  { %v5198_v36 = vpop.f32.mrb[32].mxu0 }
0x1d58   :  { %v3294_v9 = vpop.f32.mrb[33].mxu0 }
0x1d59   :  { %v5652_v6 = vpack.i.bf16 %v5198_v36, %v3294_v9  ;;  %v4743_v36 = vld [vmem:[#allocation11 + $0x1a] ss:$0 sm:$0xff] }
0x1d5b   :  { %5653 = vrot.lane.b32.xlu1 %v5652_v6, %s6083_s8 }
0x1dcd   :  { %v5654_v16 = vpop.permute.xlu1 %5653 }
0x1dce   :  { %v5656_v17 = vunpack.i.h.bf16 %v5654_v16  ;;  %v5655_v30 = vunpack.i.l.bf16 %v5654_v16 }
0x1dd0   :  { %v3332_v20 = vsel %vm1085_vm5, %v3330_v19, %v5656_v17  ;;  %v3331_v21 = vsel %vm1085_vm5, %v3329_v18, %v5655_v30 }
0x1dd1   :  { %v3333_v22 = vpack.c.bf16 %v3332_v20, %v3331_v21 }
0x1dd3   :  { %5204 = vmatmul.mubr.msk.bf16.vlgmr.msra.gmra.mrb[36].mxu0 %vm156_vm0, %v3333_v22 }
0x1dd4   :  { %5219 = vmatprep.mubr.msk.bf16.mxu0 %vm6071_vm1, %v6070_v15  ;;  %5216 = vmatpush3.bf16.msra.mxu0 %v5730_v40  ;;  %v6739_v40 = vld [vmem:[#allocation8 + $0x8] sm:$0xff] }
0x1dd5   :  { %5217 = vmatprep.subr.bf16.mxu0 %v6070_v15 }
0x1dd8   :  { %5218 = vmatpush3.bf16.msra.mxu0 %v5731_v42 }
0x1ddb   :  { %5220 = vmatmul.mubr.msk.bf16.vlgmr.msra.gmra.mrb[40].mxu0 %vm156_vm0, %v6382_v0 }
0x1ea6   :  { %v3387_v25 = vpop.f32.mrb[36].mxu0 }
0x1ea7   :  { %v3388_v35 = vadd.f32 %v4738_v23, %v3387_v25  ;;  %v5205_v37 = vpop.f32.mrb[37].mxu0 }
0x1ea8   :  { %v3390_v26 = vpop.f32.mrb[38].mxu0 }
0x1ea9   :  { %v6681_v29 = vadd.f32 %v3388_v35, %v6541_v62  ;;  %v3391_v31 = vadd.f32 %v4738_v23, %v3390_v26  ;;  %v5206_v32 = vpop.f32.mrb[39].mxu0 }
0x1eab   :  { %v6684_v33 = vadd.f32 %v3391_v31, %v6544_v63  ;;  %v3396_v34 = vsel %vm156_vm0, %v6681_v29, 0.0 }
0x1eac   :  { %3397 = vadd.xlane.f32.xlu1 %v3396_v34 }
0x1ead   :  { %v3399_v1 = vsel %vm156_vm0, %v6684_v33, 0.0 }
0x1eae   :  { %3400 = vadd.xlane.f32.xlu0 %v3399_v1  ;;  %v3529_v50 = vpop.f32.mrb[40].mxu0 }
0x1eaf   :  { %v3530_v61 = vadd.f32 %v4744_v60, %v3529_v50  ;;  %v5221_v0 = vpop.f32.mrb[41].mxu0 }
0x1eb0   :  { %v3532_v51 = vpop.f32.mrb[42].mxu0 }
0x1eb1   :  { %v3533_v4 = vadd.f32 %v4744_v60, %v3532_v51  ;;  %v5222_v52 = vpop.f32.mrb[43].mxu0 }
0x1eb3   :  { %v6698_v41 = vpack.i.bf16 %v3533_v4, %v3530_v61 }
0x1ebd   :  { %5658 = vrot.lane.b32.xlu1 %v6698_v41, %s6073_s1 }
0x1ec1   :  { %5668 = vrot.lane.b32.xlu1 %v6698_v41, %s6075_s22 }
0x1f39   :  { %v3398_v62 = vpop.xlane.xlu1 %3397 }
0x1f3a   :  { %v3402_v63 = vmul.f32 0.03125, %v3398_v62 }
0x1f3b   :  { %v3401_v44 = vpop.xlane.xlu0 %3400 }
0x1f3c   :  { %v3404_v24 = vsub.f32 %v6681_v29, %v3402_v63  ;;  %v3403_v45 = vmul.f32 0.03125, %v3401_v44  ;;  %v6742_v63 = vld [vmem:[#allocation8] sm:$0xff] }
0x1f3d   :  { %v5659_v11 = vpop.permute.xlu1 %5658 }
0x1f3e   :  { %v3405_v46 = vsub.f32 %v6684_v33, %v3403_v45  ;;  %v3406_v28 = vmul.f32 %v3404_v24, %v3404_v24  ;;  %v5661_v8 = vunpack.i.h.bf16 %v5659_v11  ;;  %v5660_v12 = vunpack.i.l.bf16 %v5659_v11 }
0x1f40   :  { %v3408_v59 = vsel %vm156_vm0, %v3406_v28, 0.0  ;;  %v3407_v47 = vmul.f32 %v3405_v46, %v3405_v46  ;;  %v5427_v13 = vpack.c.bf16 %v5661_v8, %v5660_v12 }
0x1f41   :  { %3409 = vadd.xlane.f32.xlu0 %v3408_v59  ;;  %v5669_v27 = vpop.permute.xlu1 %5668 }
0x1f42   :  { %v3411_v49 = vsel %vm156_vm0, %v3407_v47, 0.0  ;;  %5429 = vmatprep.subr.msk.bf16.mxu1 %vm6266_vm3, %v5427_v13  ;;  %v5671_v30 = vunpack.i.h.bf16 %v5669_v27  ;;  %v5670_v18 = vunpack.i.l.bf16 %v5669_v27 }
0x1f44   :  { %v5447_v20 = vpack.c.bf16 %v5671_v30, %v5670_v18 }
0x1f45   :  { %3412 = vadd.xlane.f32.xlu0 %v3411_v49 }
0x1f5b   :  { %5663 = vrot.lane.b32.xlu0 %v6698_v41, %s6072_s5 }
0x1fce   :  { %v3410_v53 = vpop.xlane.xlu0 %3409 }
0x1fcf   :  { %v3414_v54 = vmul.f32 0.03125, %v3410_v53 }
0x1fd1   :  { %v3416_v55 = vadd.f32 1e-05, %v3414_v54 }
0x1fd2   :  { %v3413_v56 = vpop.xlane.xlu0 %3412 }
0x1fd3   :  { %5852 = vrsqrt.f32 %v3416_v55  ;;  %v3415_v57 = vmul.f32 0.03125, %v3413_v56 }
0x1fd5   :  { %v3417_v58 = vadd.f32 1e-05, %v3415_v57 }
0x1fd6   :  { %v5664_v14 = vpop.permute.xlu0 %5663 }
0x1fd7   :  { %5854 = vrsqrt.f32 %v3417_v58  ;;  %v5666_v16 = vunpack.i.h.bf16 %v5664_v14  ;;  %v5665_v17 = vunpack.i.l.bf16 %v5664_v14 }
0x1fd9   :  { %v5437_v19 = vpack.c.bf16 %v5666_v16, %v5665_v17 }
0x1fdb   :  { %5439 = vmatprep.subr.msk.bf16.mxu0 %vm6266_vm3, %v5437_v19 }
0x1fdc   :  { %5442 = vmatpush3.bf16.xpose.msk.msra.mxu0 %vm6266_vm3, %v5437_v19 }
0x1fdd   :  { %v5853_v39 = vpop.eup %5852  ;;  %5449 = vmatprep.subr.msk.bf16.mxu0 %vm6266_vm3, %v5447_v20 }
0x1fde   :  { %v3420_v2 = vmul.f32 %v5853_v39, %v3404_v24 }
0x1fe0   :  { %v3426_v5 = vmul.f32 %v4742_v43, %v3420_v2 }
0x1fe1   :  { %v5855_v3 = vpop.eup %5854 }
0x1fe2   :  { %v3421_v7 = vmul.f32 %v5855_v3, %v3405_v46  ;;  %v3432_v6 = vadd.f32 %v4743_v36, %v3426_v5 }
0x1fe4   :  { %v3427_v9 = vmul.f32 %v4742_v43, %v3421_v7 }
0x1fe6   :  { %v3433_v38 = vadd.f32 %v4743_v36, %v3427_v9 }
0x1fe8   :  { %v3434_v10 = vpack.c.bf16 %v3433_v38, %v3432_v6 }
0x1fea   :  { %5212 = vmatmul.mubr.msk.bf16.vlgmr.msra.gmra.mrb[48].mxu1 %vm156_vm0, %v3434_v10 }
0x1feb   :  { %5432 = vmatpush3.bf16.xpose.msk.msra.mxu1 %vm6266_vm3, %v5427_v13 }
0x20bd   :  { %v3488_v21 = vpop.f32.mrb[48].mxu1 }
0x20be   :  { %v6717_v22 = vadd.f32 %v4744_v60, %v3488_v21  ;;  %v5213_v23 = vpop.f32.mrb[49].mxu1 }
0x20bf   :  { %v3491_v25 = vpop.f32.mrb[50].mxu1 }
0x20c0   :  { %v6719_v35 = vadd.f32 %v4744_v60, %v3491_v25  ;;  %v5214_v37 = vpop.f32.mrb[51].mxu1  ;;  %5227 = vmatprep.mubr.msk.f32.mxu1 %vm263_vm2, %v6717_v22  ;;  %3936 = vrot.lane.b32.xlu0 %v6717_v22, %s6076_s23 }
0x20c1   :  { %3736 = vrot.lane.b32.xlu1 %v6717_v22, %s6074_s21 }
0x20c2   :  { %5228 = vmatmul.mubr.msk.f32.vlgmr.msra.gmra.mrb[46].mxu1 %vm263_vm2, %v6719_v35 }
0x20c5   :  { %3738 = vrot.lane.b32.xlu1 %v6719_v35, %s6074_s21 }
0x20c9   :  { %3938 = vrot.lane.b32.xlu1 %v6719_v35, %s6076_s23 }
0x2132   :  { %v3937_v32 = vpop.permute.xlu0 %3936 }
0x2133   :  { %v3737_v26 = vpop.permute.xlu1 %3736 }
0x2134   :  { %5241 = vmatprep.mubr.msk.f32.mxu0 %vm263_vm2, %v3737_v26 }
0x2137   :  { %v3739_v31 = vpop.permute.xlu1 %3738 }
0x2138   :  { %5242 = vmatmul.mubr.msk.f32.vlgmr.msra.gmra.mrb[34].mxu0 %vm263_vm2, %v3739_v31 }
0x2139   :  { %5452 = vmatpush3.bf16.xpose.msk.msra.mxu0 %vm6266_vm3, %v5447_v20  ;;  %5255 = vmatprep.mubr.msk.f32.mxu0 %vm263_vm2, %v3937_v32 }
0x213b   :  { %v3939_v34 = vpop.permute.xlu1 %3938 }
0x2140   :  { %5256 = vmatmul.mubr.msk.f32.vlgmr.msra.gmra.mrb[44].mxu0 %vm263_vm2, %v3939_v34 }
0x2195   :  { %v5229_v1 = vpop.f32.mrb[46].mxu1 }
0x2196   :  { %v3624_v42 = vadd.f32 %v6739_v40, %v5229_v1  ;;  %v3618_v62 = vpop.f32.mrb[47].mxu1 }
0x2197   :  { %v3619_v44 = vadd.f32 %v6742_v63, %v3618_v62 }
0x2198   :  { %v3630_v24 = vsel %vm347_vm4, %v3624_v42, -inf }
0x2199   :  { %3631 = vmax.xlane.f32.xlu1 %v3630_v24  ;;  %v3627_v45 = vsel %vm347_vm4, %v3619_v44, -inf }
0x219a   :  { %3628 = vmax.xlane.f32.xlu0 %v3627_v45 }
0x220b   :  { %v5243_v46 = vpop.f32.mrb[34].mxu0 }
0x220c   :  { %v3818_v28 = vpop.f32.mrb[35].mxu0  ;;  %v3824_v47 = vadd.f32 %v6739_v40, %v5243_v46 }
0x220d   :  { %v3819_v59 = vadd.f32 %v6742_v63, %v3818_v28 }
0x220e   :  { %v3830_v50 = vsel %vm347_vm4, %v3824_v47, -inf }
0x220f   :  { %v3827_v49 = vsel %vm347_vm4, %v3819_v59, -inf }
0x2210   :  { %3828 = vmax.xlane.f32.xlu0 %v3827_v49 }
0x2213   :  { %v5257_v60 = vpop.f32.mrb[44].mxu0 }
0x2214   :  { %v4024_v61 = vadd.f32 %v6739_v40, %v5257_v60  ;;  %v4018_v0 = vpop.f32.mrb[45].mxu0  ;;  %3831 = vmax.xlane.f32.xlu0 %v3830_v50 }
0x2215   :  { %v4019_v51 = vadd.f32 %v6742_v63, %v4018_v0 }
0x2216   :  { %v4030_v4 = vsel %vm347_vm4, %v4024_v61, -inf }
0x2217   :  { %4031 = vmax.xlane.f32.xlu1 %v4030_v4  ;;  %v4027_v52 = vsel %vm347_vm4, %v4019_v51, -inf }
0x2218   :  { %4028 = vmax.xlane.f32.xlu0 %v4027_v52 }
0x2226   :  { %v3632_v53 = vpop.xlane.xlu1 %3631 }
0x2227   :  { %v3634_v54 = vsub.f32 %v3624_v42, %v3632_v53  ;;  %v3629_v55 = vpop.xlane.xlu0 %3628 }
0x2228   :  { %v3633_v56 = vsub.f32 %v3619_v44, %v3629_v55 }
0x2229   :  { %v3637_v57 = vmul.f32 1.442695, %v3634_v54 }
0x222a   :  { %v3635_v58 = vmul.f32 1.442695, %v3633_v56 }
0x222b   :  { %5856 = vpow2.f32 %v3637_v57 }
0x222c   :  { %5858 = vpow2.f32 %v3635_v58 }
0x2235   :  { %v6755_v39 = vpop.eup %5856 }
0x2236   :  { %v5859_v2 = vpop.eup %5858  ;;  %v3642_v43 = vsel %vm347_vm4, %v6755_v39, 0.0 }
0x2237   :  { %3643 = vadd.xlane.f32.xlu1 %v3642_v43  ;;  %v3639_v3 = vsel %vm347_vm4, %v5859_v2, 0.0 }
0x2238   :  { %3640 = vadd.xlane.f32.xlu0 %v3639_v3 }
0x229d   :  { %v3829_v5 = vpop.xlane.xlu0 %3828 }
0x229e   :  { %v3833_v7 = vsub.f32 %v3819_v59, %v3829_v5 }
0x22a0   :  { %v3835_v36 = vmul.f32 1.442695, %v3833_v7 }
0x22a1   :  { %v3832_v9 = vpop.xlane.xlu0 %3831 }
0x22a2   :  { %5860 = vpow2.f32 %v3835_v36  ;;  %v3834_v6 = vsub.f32 %v3824_v47, %v3832_v9 }
0x22a4   :  { %v3837_v38 = vmul.f32 1.442695, %v3834_v6  ;;  %v4032_v10 = vpop.xlane.xlu1 %4031 }
0x22a5   :  { %v4034_v11 = vsub.f32 %v4024_v61, %v4032_v10  ;;  %v4029_v8 = vpop.xlane.xlu0 %4028 }
0x22a6   :  { %5862 = vpow2.f32 %v3837_v38  ;;  %v4033_v12 = vsub.f32 %v4019_v51, %v4029_v8 }
0x22a7   :  { %v4037_v13 = vmul.f32 1.442695, %v4034_v11 }
0x22a8   :  { %v4035_v14 = vmul.f32 1.442695, %v4033_v12 }
0x22a9   :  { %5864 = vpow2.f32 %v4037_v13 }
0x22aa   :  { %5866 = vpow2.f32 %v4035_v14 }
0x22ac   :  { %v5861_v27 = vpop.eup %5860 }
0x22ad   :  { %v3839_v16 = vsel %vm347_vm4, %v5861_v27, 0.0 }
0x22ae   :  { %3840 = vadd.xlane.f32.xlu0 %v3839_v16 }
0x22b0   :  { %v5863_v17 = vpop.eup %5862 }
0x22b1   :  { %v3842_v30 = vsel %vm347_vm4, %v5863_v17, 0.0 }
0x22b2   :  { %3843 = vadd.xlane.f32.xlu1 %v3842_v30 }
0x22b3   :  { %v5865_v18 = vpop.eup %5864 }
0x22b4   :  { %v5867_v19 = vpop.eup %5866  ;;  %v4042_v20 = vsel %vm347_vm4, %v5865_v18, 0.0 }
0x22b5   :  { %v4039_v21 = vsel %vm347_vm4, %v5867_v19, 0.0 }
0x22b6   :  { %4043 = vadd.xlane.f32.xlu1 %v4042_v20  ;;  %4040 = vadd.xlane.f32.xlu0 %v4039_v21 }
0x22c4   :  { %v3644_v26 = vpop.xlane.xlu1 %3643 }
0x22c5   :  { %v3641_v23 = vpop.xlane.xlu0 %3640 }
0x22c6   :  { %5868 = vrcp.f32 %v3641_v23 }
0x22c7   :  { %5678 = vrot.lane.b32.xlu1 %v6698_v41, %s6079_s28  ;;  %5870 = vrcp.f32 %v3644_v26 }
0x22cb   :  { %5683 = vrot.lane.b32.xlu1 %v6698_v41, %s6077_s25 }
0x22cc   :  { %5673 = vrot.lane.b32.xlu0 %v6698_v41, %s6067_s2  ;;  %s6084_s2 = smov [#allocation13]  }
0x22cd   :  { %s4612_s26 = sshll.u32 %s6084_s2, 4  ;;  %s4613_s26 = int_to_ptr.vmem [resolvable:$true] %s4612_s26 }
0x22ce   :  { %s6028_s11 = scalar_lea.vmem %s4613_s26, 256  ;;  %p6033_p7 = scmp.lt.s32.totalorder %s4613_s26, %s4613_s26 }
0x22cf   :  { %5688 = vrot.lane.b32.xlu1 %v6698_v41, %s6078_s27  ;;  %p6029_p6 = scmp.ne.s32.totalorder %s4613_s26, %s6028_s11  ;;  %p6034_p8 = scmp.lt.s32.totalorder %s6028_s11, %s6028_s11 }
0x22d0   :  { %v5869_v25 = vpop.eup %5868  ;;  %4136 = vrot.lane.b32.xlu0 %v6717_v22, %s6080_s29 }
0x22d1   :  { %v3647_v37 = vmul.f32 %v5869_v25, %v5859_v2  ;;  %p6035_p9 = por %p6034_p8, %p6033_p7 }
0x22d3   :  { %4138 = vrot.lane.b32.xlu1 %v6719_v35, %s6080_s29  ;;  %5234 = vmatprep.mubr.msk.f32.mxu1 %vm347_vm4, %v3647_v37  ;;  %v5871_v35 = vpop.eup %5870  ;;  %p6036_p10 = pnand %p6035_p9, %p6029_p6 }
0x22d4   :  { %v3648_v50 = vmul.f32 %v5871_v35, %v6755_v39 }
0x233b   :  { %v3841_v31 = vpop.xlane.xlu0 %3840 }
0x233c   :  { %5872 = vrcp.f32 %v3841_v31 }
0x233f   :  { %v3844_v32 = vpop.xlane.xlu1 %3843 }
0x2340   :  { %5874 = vrcp.f32 %v3844_v32 }
0x2343   :  { %v4044_v34 = vpop.xlane.xlu1 %4043  ;;  %v4041_v1 = vpop.xlane.xlu0 %4040 }
0x2344   :  { %5876 = vrcp.f32 %v4041_v1 }
0x2345   :  { %5878 = vrcp.f32 %v4044_v34 }
0x2346   :  { %v5873_v59 = vpop.eup %5872 }
0x2347   :  { %v5679_v42 = vpop.permute.xlu1 %5678  ;;  %v5674_v62 = vpop.permute.xlu0 %5673  ;;  %v3847_v51 = vmul.f32 %v5873_v59, %v5861_v27 }
0x2348   :  { %v5681_v44 = vunpack.i.h.bf16 %v5679_v42  ;;  %v5680_v24 = vunpack.i.l.bf16 %v5679_v42  ;;  %v5676_v22 = vunpack.i.h.bf16 %v5674_v62  ;;  %v5675_v45 = vunpack.i.l.bf16 %v5674_v62 }
0x234a   :  { %v5433_v46 = vpack.c.bf16 %v5676_v22, %v5675_v45  ;;  %v5443_v47 = vpack.c.bf16 %v5681_v44, %v5680_v24  ;;  %v5875_v61 = vpop.eup %5874  ;;  %v5733_v44 = vld [vmem:[#allocation10 + $0xa8] sm:$0xff]  }
0x234b   :  { %v5684_v28 = vpop.permute.xlu1 %5683  ;;  %v3848_v55 = vmul.f32 %v5875_v61, %v5863_v17  ;;  %v4137_v2 = vpop.permute.xlu0 %4136 }
0x234c   :  { %v5686_v49 = vunpack.i.h.bf16 %v5684_v28  ;;  %v5685_v60 = vunpack.i.l.bf16 %v5684_v28  ;;  %5434 = vmatprep.subr.bf16.mxu1 %v5433_v46 }
0x234d   :  { %5436 = vmatpush3.bf16.msra.mxu1 %v5433_v46 }
0x234e   :  { %5444 = vmatprep.subr.bf16.mxu1 %v5443_v47  ;;  %v5877_v4 = vpop.eup %5876  ;;  %v5453_v52 = vpack.c.bf16 %v5686_v49, %v5685_v60 }
0x234f   :  { %v5689_v0 = vpop.permute.xlu1 %5688  ;;  %v5879_v56 = vpop.eup %5878  ;;  %v4047_v57 = vmul.f32 %v5877_v4, %v5867_v19 }
0x2350   :  { %v5691_v53 = vunpack.i.h.bf16 %v5689_v0  ;;  %v5690_v54 = vunpack.i.l.bf16 %v5689_v0  ;;  %5235 = vmatmul.mubr.msk.f32.vlgmr.msra.gmra.mrb[52].mxu1 %vm347_vm4, %v3648_v50  ;;  %v4048_v39 = vmul.f32 %v5879_v56, %v5865_v18  ;;  %v4773_v56 = vld [vmem:[#allocation11 + $0x13] ss:$0 sm:$0xff] }
0x2351   :  { %5446 = vmatpush3.bf16.msra.mxu1 %v5443_v47  ;;  %5248 = vmatprep.mubr.msk.f32.mxu1 %vm347_vm4, %v3847_v51 }
0x2352   :  { %5454 = vmatprep.subr.bf16.mxu1 %v5453_v52  ;;  %v5457_v58 = vpack.c.bf16 %v5691_v53, %v5690_v54 }
0x2353   :  { %v4139_v43 = vpop.permute.xlu1 %4138 }
0x2354   :  { %5249 = vmatmul.mubr.msk.f32.vlgmr.msra.gmra.mrb[54].mxu1 %vm347_vm4, %v3848_v55 }
0x2355   :  { %5456 = vmatpush3.bf16.msra.mxu1 %v5453_v52  ;;  %5262 = vmatprep.mubr.msk.f32.mxu1 %vm347_vm4, %v4047_v57 }
0x2356   :  { %5459 = vmatprep.subr.msk.bf16.mxu1 %vm6266_vm3, %v5457_v58 }
0x2358   :  { %5263 = vmatmul.mubr.msk.f32.vlgmr.msra.gmra.mrb[56].mxu1 %vm347_vm4, %v4048_v39 }
0x2359   :  { %5269 = vmatprep.mubr.msk.f32.mxu1 %vm263_vm2, %v4137_v2 }
0x235e   :  { %5462 = vmatpush3.bf16.xpose.msk.msra.mxu1 %vm6266_vm3, %v5457_v58 }
0x235f   :  { %5287 = vmatprep.subr.bf16.mxu1 %v6070_v15 }
0x2365   :  { %5270 = vmatmul.mubr.msk.f32.vlgmr.msra.gmra.mrb[58].mxu1 %vm263_vm2, %v4139_v43 }
0x2366   :  { %5291 = vmatprep.mubr.msk.bf16.mxu1 %vm6071_vm1, %v6070_v15 }
0x2423   :  { %v6792_v3 = vpop.f32.mrb[52].mxu1 }
0x2424   :  { %v6794_v5 = vpop.f32.mrb[53].mxu1 }
0x2427   :  { %v5250_v7 = vpop.f32.mrb[54].mxu1 }
0x2428   :  { %v3927_v36 = vpop.f32.mrb[55].mxu1 }
0x2429   :  { %v5697_v9 = vpack.i.bf16 %v5250_v7, %v3927_v36 }
0x242b   :  { %v5264_v6 = vpop.f32.mrb[56].mxu1 }
0x242c   :  { %v4127_v38 = vpop.f32.mrb[57].mxu1 }
0x242d   :  { %v5702_v10 = vpack.i.bf16 %v5264_v6, %v4127_v38 }
0x2438   :  { %v5271_v48 = vpop.f32.mrb[58].mxu1 }
0x2439   :  { %v4224_v11 = vadd.f32 %v6739_v40, %v5271_v48  ;;  %v4218_v8 = vpop.f32.mrb[59].mxu1 }
0x243a   :  { %v4219_v12 = vadd.f32 %v6742_v63, %v4218_v8 }
0x243b   :  { %v4230_v13 = vsel %vm347_vm4, %v4224_v11, -inf }
0x243c   :  { %4231 = vmax.xlane.f32.xlu1 %v4230_v13  ;;  %v4227_v14 = vsel %vm347_vm4, %v4219_v12, -inf }
0x243d   :  { %4228 = vmax.xlane.f32.xlu0 %v4227_v14  ;;  %v5734_v14 = vld [vmem:[#allocation10 + $0xb0] sm:$0xff]  }
0x243e   :  { %5288 = vmatpush3.bf16.msra.mxu1 %v5734_v14 }
0x243f   :  { %5289 = vmatprep.subr.bf16.mxu1 %v6070_v15 }
0x244d   :  { %5698 = vrot.lane.b32.xlu1 %v5697_v9, %s6063_s10 }
0x2451   :  { %5703 = vrot.lane.b32.xlu1 %v5702_v10, %s6082_s7 }
0x24c9   :  { %v4232_v27 = vpop.xlane.xlu1 %4231 }
0x24ca   :  { %v4234_v16 = vsub.f32 %v4224_v11, %v4232_v27  ;;  %v4229_v17 = vpop.xlane.xlu0 %4228  ;;  %v5735_v27 = vld [vmem:[#allocation10 + $0xb8] sm:$0xff]  }
0x24cb   :  { %v4233_v30 = vsub.f32 %v4219_v12, %v4229_v17  ;;  %5290 = vmatpush3.bf16.msra.mxu1 %v5735_v27  ;;  %v5737_v17 = vld [vmem:[#allocation10 + $0xc8] sm:$0xff]  }
0x24cc   :  { %v4237_v18 = vmul.f32 1.442695, %v4234_v16  ;;  %v5736_v16 = vld [vmem:[#allocation10 + $0xc0] sm:$0xff]  }
0x24cd   :  { %v4235_v19 = vmul.f32 1.442695, %v4233_v30  ;;  %v5699_v46 = vpop.permute.xlu1 %5698 }
0x24ce   :  { %5880 = vpow2.f32 %v4237_v18  ;;  %v5701_v28 = vunpack.i.h.bf16 %v5699_v46  ;;  %v5700_v59 = vunpack.i.l.bf16 %v5699_v46 }
0x24cf   :  { %5882 = vpow2.f32 %v4235_v19 }
0x24d0   :  { %v4361_v50 = vsel %vm263_vm2, %v6792_v3, %v5701_v28  ;;  %v4360_v61 = vsel %vm263_vm2, %v6794_v5, %v5700_v59 }
0x24d1   :  { %v5704_v35 = vpop.permute.xlu1 %5703 }
0x24d2   :  { %v5706_v47 = vunpack.i.h.bf16 %v5704_v35  ;;  %v5705_v49 = vunpack.i.l.bf16 %v5704_v35 }
0x24d4   :  { %v4362_v4 = vsel %vm347_vm4, %v4360_v61, %v5705_v49  ;;  %v4363_v52 = vsel %vm347_vm4, %v4361_v50, %v5706_v47  ;;  %v4783_v50 = vld [vmem:[#allocation11 + $0x15] ss:$0 sm:$0xff] }
0x24d8   :  { %v5881_v40 = vpop.eup %5880 }
0x24d9   :  { %v4242_v63 = vsel %vm347_vm4, %v5881_v40, 0.0  ;;  %v5883_v20 = vpop.eup %5882 }
0x24da   :  { %4243 = vadd.xlane.f32.xlu0 %v4242_v63  ;;  %v4239_v21 = vsel %vm347_vm4, %v5883_v20, 0.0 }
0x24de   :  { %4240 = vadd.xlane.f32.xlu0 %v4239_v21 }
0x24f4   :  { %5693 = vrot.lane.b32.xlu0 %v6698_v41, %s6081_s30  ;;  %v5732_v41 = vld [vmem:[#allocation10 + $0xa0] sm:$0xff]  }
0x2567   :  { %v4244_v23 = vpop.xlane.xlu0 %4243 }
0x2568   :  { %5884 = vrcp.f32 %v4244_v23 }
0x256b   :  { %v4241_v25 = vpop.xlane.xlu0 %4240 }
0x256c   :  { %5886 = vrcp.f32 %v4241_v25  ;;  %v4777_v25 = vld [vmem:[#allocation11 + $0x18] ss:$0 sm:$0xff] }
0x256f   :  { %v5694_v37 = vpop.permute.xlu0 %5693 }
0x2570   :  { %v5696_v26 = vunpack.i.h.bf16 %v5694_v37  ;;  %v5695_v31 = vunpack.i.l.bf16 %v5694_v37 }
0x2572   :  { %v5463_v32 = vpack.c.bf16 %v5696_v26, %v5695_v31  ;;  %v5885_v34 = vpop.eup %5884 }
0x2573   :  { %v4248_v62 = vmul.f32 %v5885_v34, %v5881_v40 }
0x2574   :  { %5464 = vmatprep.subr.bf16.mxu0 %v5463_v32 }
0x2575   :  { %5466 = vmatpush3.bf16.msra.mxu0 %v5463_v32  ;;  %v4778_v32 = vld [vmem:[#allocation11 + $0x1b] ss:$0 sm:$0xff] }
0x2576   :  { %v5887_v1 = vpop.eup %5886  ;;  %5279 = vmatprep.subr.bf16.mxu0 %v6070_v15 }
0x2577   :  { %v4247_v42 = vmul.f32 %v5887_v1, %v5883_v20 }
0x2579   :  { %5276 = vmatprep.mubr.msk.f32.mxu0 %vm347_vm4, %v4247_v42 }
0x257a   :  { %5277 = vmatmul.mubr.msk.f32.vlgmr.msra.gmra.mrb[46].mxu0 %vm347_vm4, %v4248_v62 }
0x257b   :  { %5283 = vmatprep.mubr.msk.bf16.mxu0 %vm6071_vm1, %v6070_v15  ;;  %5280 = vmatpush3.bf16.msra.mxu0 %v5732_v41  ;;  %v5738_v41 = vld [vmem:[#allocation10 + $0xd0] sm:$0xff]  }
0x257c   :  { %5281 = vmatprep.subr.bf16.mxu0 %v6070_v15 }
0x257f   :  { %5282 = vmatpush3.bf16.msra.mxu0 %v5733_v44  ;;  %v5739_v44 = vld [vmem:[#allocation10 + $0xd8] sm:$0xff]  }
0x2580   :  { %5295 = vmatprep.subr.bf16.mxu0 %v6070_v15 }
0x264d   :  { %v5278_v24 = vpop.f32.mrb[46].mxu0 }
0x264e   :  { %v4327_v22 = vpop.f32.mrb[47].mxu0 }
0x264f   :  { %v5707_v45 = vpack.i.bf16 %v5278_v24, %v4327_v22  ;;  %v4779_v24 = vld [vmem:[#allocation11 + $0x14] ss:$0 sm:$0xff] }
0x2651   :  { %5708 = vrot.lane.b32.xlu1 %v5707_v45, %s6083_s8 }
0x26c3   :  { %v5709_v60 = vpop.permute.xlu1 %5708 }
0x26c4   :  { %v5711_v0 = vunpack.i.h.bf16 %v5709_v60  ;;  %v5710_v51 = vunpack.i.l.bf16 %v5709_v60 }
0x26c6   :  { %v4365_v53 = vsel %vm1085_vm5, %v4363_v52, %v5711_v0  ;;  %v4364_v54 = vsel %vm1085_vm5, %v4362_v4, %v5710_v51 }
0x26c7   :  { %v4366_v55 = vpack.c.bf16 %v4365_v53, %v4364_v54 }
0x26c9   :  { %5284 = vmatmul.mubr.msk.bf16.vlgmr.msra.gmra.mrb[48].mxu0 %vm156_vm0, %v4366_v55 }
0x26ca   :  { %5303 = vmatprep.mubr.msk.bf16.mxu0 %vm6071_vm1, %v6070_v15  ;;  %5296 = vmatpush3.bf16.msra.mxu0 %v5736_v16 }
0x26cb   :  { %5297 = vmatprep.subr.bf16.mxu0 %v6070_v15 }
0x26ce   :  { %5298 = vmatpush3.bf16.msra.mxu0 %v5737_v17 }
0x26cf   :  { %5299 = vmatprep.subr.bf16.mxu0 %v6070_v15 }
0x26d2   :  { %5300 = vmatpush3.bf16.msra.mxu0 %v5738_v41 }
0x26d3   :  { %5301 = vmatprep.subr.bf16.mxu0 %v6070_v15 }
0x26d6   :  { %5302 = vmatpush3.bf16.msra.mxu0 %v5739_v44 }
0x279c   :  { %v4420_v57 = vpop.f32.mrb[48].mxu0 }
0x279d   :  { %v4421_v58 = vadd.f32 %v4773_v56, %v4420_v57  ;;  %v5285_v39 = vpop.f32.mrb[49].mxu0 }
0x279e   :  { %v4423_v2 = vpop.f32.mrb[50].mxu0 }
0x279f   :  { %v6826_v43 = vadd.f32 %v4421_v58, %v6681_v29  ;;  %v4424_v3 = vadd.f32 %v4773_v56, %v4423_v2  ;;  %v5286_v5 = vpop.f32.mrb[51].mxu0 }
0x27a1   :  { %v6829_v7 = vadd.f32 %v4424_v3, %v6684_v33  ;;  %v4429_v36 = vsel %vm156_vm0, %v6826_v43, 0.0 }
0x27a2   :  { %4430 = vadd.xlane.f32.xlu0 %v4429_v36 }
0x27a3   :  { %v4432_v9 = vsel %vm156_vm0, %v6829_v7, 0.0 }
0x27a4   :  { %4433 = vadd.xlane.f32.xlu1 %v4432_v9 }
0x282f   :  { %v4431_v6 = vpop.xlane.xlu0 %4430 }
0x2830   :  { %v4435_v38 = vmul.f32 0.03125, %v4431_v6 }
0x2831   :  { %v4434_v10 = vpop.xlane.xlu1 %4433 }
0x2832   :  { %v4437_v48 = vsub.f32 %v6826_v43, %v4435_v38  ;;  %v4436_v29 = vmul.f32 0.03125, %v4434_v10 }
0x2834   :  { %v4438_v11 = vsub.f32 %v6829_v7, %v4436_v29  ;;  %v4439_v8 = vmul.f32 %v4437_v48, %v4437_v48 }
0x2836   :  { %v4441_v33 = vsel %vm156_vm0, %v4439_v8, 0.0  ;;  %v4440_v12 = vmul.f32 %v4438_v11, %v4438_v11 }
0x2837   :  { %4442 = vadd.xlane.f32.xlu0 %v4441_v33 }
0x2838   :  { %v4444_v13 = vsel %vm156_vm0, %v4440_v12, 0.0 }
0x283b   :  { %4445 = vadd.xlane.f32.xlu0 %v4444_v13 }
0x28c4   :  { %v4443_v30 = vpop.xlane.xlu0 %4442 }
0x28c5   :  { %v4447_v18 = vmul.f32 0.03125, %v4443_v30 }
0x28c7   :  { %v4449_v19 = vadd.f32 1e-05, %v4447_v18 }
0x28c8   :  { %v4446_v40 = vpop.xlane.xlu0 %4445 }
0x28c9   :  { %5888 = vrsqrt.f32 %v4449_v19  ;;  %v4448_v63 = vmul.f32 0.03125, %v4446_v40 }
0x28cb   :  { %v4450_v20 = vadd.f32 1e-05, %v4448_v63 }
0x28cd   :  { %5890 = vrsqrt.f32 %v4450_v20 }
0x28d3   :  { %v5889_v21 = vpop.eup %5888 }
0x28d4   :  { %v4453_v23 = vmul.f32 %v5889_v21, %v4437_v48 }
0x28d6   :  { %v4459_v26 = vmul.f32 %v4777_v25, %v4453_v23 }
0x28d7   :  { %v5891_v37 = vpop.eup %5890 }
0x28d8   :  { %v4454_v31 = vmul.f32 %v5891_v37, %v4438_v11  ;;  %v4465_v1 = vadd.f32 %v4778_v32, %v4459_v26 }
0x28da   :  { %v4460_v34 = vmul.f32 %v4777_v25, %v4454_v31 }
0x28dc   :  { %v4466_v42 = vadd.f32 %v4778_v32, %v4460_v34 }
0x28de   :  { %v4467_v62 = vpack.c.bf16 %v4466_v42, %v4465_v1 }
0x28e0   :  { %5292 = vmatmul.mubr.msk.bf16.vlgmr.msra.gmra.mrb[60].mxu1 %vm156_vm0, %v4467_v62 }
0x29b3   :  { %v4521_v22 = vpop.f32.mrb[60].mxu1 }
0x29b4   :  { %v4522_v45 = vadd.f32 %v4779_v24, %v4521_v22  ;;  %v5293_v46 = vpop.f32.mrb[61].mxu1 }
0x29b5   :  { %v4524_v35 = vpop.f32.mrb[62].mxu1 }
0x29b6   :  { %v4525_v28 = vadd.f32 %v4779_v24, %v4524_v35  ;;  %v5294_v59 = vpop.f32.mrb[63].mxu1  ;;  %v4528_v47 = vmax.f32 %v4522_v45, 0.0 }
0x29b8   :  { %v4529_v49 = vmax.f32 %v4525_v28, 0.0 }
0x29ba   :  { %v4530_v60 = vpack.c.bf16 %v4529_v49, %v4528_v47 }
0x29bc   :  { %5304 = vmatmul.mubr.msk.bf16.vlgmr.msra.gmra.mrb[52].mxu0 %vm2317_vm6, %v4530_v60 }
0x2a8f   :  { %v4596_v61 = vpop.f32.mrb[52].mxu0 }
0x2a90   :  { %v4597_v0 = vadd.f32 %v4783_v50, %v4596_v61  ;;  %v5305_v51 = vpop.f32.mrb[53].mxu0 }
0x2a91   :  { %v4599_v4 = vpop.f32.mrb[54].mxu0 }
0x2a92   :  { %v4603_v15 = vadd.f32 %v4597_v0, %v6826_v43  ;;  %v4600_v52 = vadd.f32 %v4783_v50, %v4599_v4  ;;  %v5306_v53 = vpop.f32.mrb[55].mxu0 }
0x2a94   :  { %4605 = vst.msk [vmem:[#allocation13] sm:$0xff] %vm156_vm0, %v4603_v15  ;;  %v4604_v54 = vadd.f32 %v4600_v52, %v6829_v7 }
0x2a96   :  { %4606 = vst.msk [vmem:[#allocation13 + $0x8] sm:$0xff] %vm156_vm0, %v4604_v54 }
0x2a97   :  { %6039 = shalt.err (!%p6036_p10)
}
0x2a98   :  { %s6040_s12 = scalar_lea.hbm %s6870_s6, 256 }
0x2a99   :  { %p6041_p11 = scmp.ne.s32.totalorder %s6870_s6, %s6040_s12  ;;  %p6044_p12 = scmp.lt.u32.totalorder %s6040_s12, %s6870_s6 }
0x2a9b   :  { %p6046_p13 = pnand %p6044_p12, %p6041_p11 }
0x2a9d   :  { %6049 = shalt.err (!%p6046_p13)
}
0x2a9e   :  { %4618 = dma.vmem_to_hbm [thread:$0]  %s4613_s26, 256, %s6870_s6, [#allocation4], %s6062_s9, %s6062_s9, %s6063_s10  }
0x2a9f   :  { %6058 = dma.done.wait [#allocation4], 256  }
0x2aa0   :  { %6059 = vsyncadd [#allocation4], 4294967040 }
0x2aa1   :  { %4622 = vsyncpa [#allocation3], 1 }
0x2aa2   :  { %4623 = vsyncpa [#allocation6], 1 }
0x2aa3   :  { %4624 = vsyncpa [#allocation9], 1 }
0x2aa4   :  { %4625 = vsyncpa [#allocation12], 1 }
0x2aa5   :  { %4626 = vsyncpa [#allocation4], 1 }

</bundles_post_ra>
